<compile_context>
chip_gen: v7x
topology: tpu7x:2x2x1
jax: 0.10.0
libtpu: 0.0.40
codegen_flags: <defaults>
</compile_context>

<pallas_src>
import jax
import jax.numpy as jnp
from jax import lax
from jax.experimental import pallas as pl
from jax.experimental.pallas import tpu as pltpu


def _make_vametric2_kernel(tt: int, t_total: int, d_out: int):
    """Builds the kernel body; tt / t_total / d_out are static parameters."""
    needs_mask = (t_total % tt) != 0

    def kernel(vfeat_ref, afeat_ref, wv_ref, bv_ref, wf_ref, bf_ref,
               out_ref, vmax_ref, amax_ref):
        ti = pl.program_id(1)
        nt = pl.num_programs(1)

        # ---- init running max on the first T step ----
        @pl.when(ti == 0)
        def _init():
            vmax_ref[...] = jnp.full(vmax_ref.shape, -jnp.inf, vmax_ref.dtype)
            amax_ref[...] = jnp.full(amax_ref.shape, -jnp.inf, amax_ref.dtype)

        vblk = vfeat_ref[...]                       # (TB, TT, 1024)
        ablk = afeat_ref[...]                       # (TB, TT, 128)
        if needs_mask:
            # Last T tile may extend past the real frame count: mask padded
            # frames to -inf so they cannot win the max.
            frame = ti * tt + lax.broadcasted_iota(jnp.int32, (1, tt, 1), 1)
            valid = frame < t_total
            vblk = jnp.where(valid, vblk, -jnp.inf)
            ablk = jnp.where(valid, ablk, -jnp.inf)

        vmax_ref[...] = jnp.maximum(
            vmax_ref[...], jnp.max(vblk, axis=1).astype(vmax_ref.dtype))
        amax_ref[...] = jnp.maximum(
            amax_ref[...], jnp.max(ablk, axis=1).astype(amax_ref.dtype))

        # ---- epilogue (matmuls + distance) only on the last T step ----
        @pl.when(ti == nt - 1)
        def _finalize():
            v = vmax_ref[...]                        # (TB, 1024)
            a = amax_ref[...]                        # (TB, 128)
            # vfeat branch: relu(vfc(v)) -> fc
            v = jnp.dot(v, wv_ref[...], preferred_element_type=jnp.float32) + bv_ref[...]
            v = jnp.maximum(v, 0.0)
            v = jnp.dot(v, wf_ref[...], preferred_element_type=jnp.float32) + bf_ref[...]
            # afeat branch: fc only
            a = jnp.dot(a, wf_ref[...], preferred_element_type=jnp.float32) + bf_ref[...]
            # F.pairwise_distance: ||v - a + eps||_2 with eps = 1e-6.
            diff = v - a + jnp.float32(1e-6)
            # fc was lane-padded to 128 outputs; zero the padded columns so
            # they do not contribute to the norm.
            col = lax.broadcasted_iota(jnp.int32, diff.shape, 1)
            diff = jnp.where(col < d_out, diff, 0.0)
            dist = jnp.sqrt(jnp.sum(diff * diff, axis=1, keepdims=True))   # (TB, 1)
            # Lane-dense store: broadcast across the full 128-lane slab.
            out_ref[...] = jnp.broadcast_to(dist, out_ref.shape).astype(out_ref.dtype)

    return kernel


def vametric2_forward(vfeat, afeat, w_vfc, b_vfc, w_fc, b_fc, *, tb=None, tt=None):
    """vfeat: (B, T, 1024), afeat: (B, T, 128). Returns (B,) pairwise distances."""
    B, T, DV = vfeat.shape
    DA = afeat.shape[-1]
    DH = w_vfc.shape[0]          # 128
    DO = w_fc.shape[0]           # 96
    LANES = 128                  # lane-padded fc output width

    # ---- tile selection ----
    if tb is None:
        tb = 8 if B % 8 == 0 else B                 # sublane-aligned batch tile
    if tt is None:
        tt = T
        for cand in (512, 256, 128, 64, 32, 16, 8):  # biggest T tile that divides T
            if T >= cand and T % cand == 0:
                tt = cand
                break
    assert B % tb == 0, "batch tile must divide B"
    nb = B // tb
    nt = pl.cdiv(T, tt)

    # ---- parameter prep: (in, out) weights, lane-padded fc ----
    f32 = jnp.float32
    wv_t = jnp.asarray(w_vfc, f32).T                                    # (1024, 128)
    bv = jnp.asarray(b_vfc, f32).reshape(1, DH)                         # (1, 128)
    wf_t = jnp.zeros((DH, LANES), f32).at[:, :DO].set(jnp.asarray(w_fc, f32).T)
    bf = jnp.zeros((1, LANES), f32).at[:, :DO].set(jnp.asarray(b_fc, f32))

    # ---- explicit VMEM budget (double-buffered tiles + resident weights + scratch),
    #      capped at 48 MiB so the same tiling is safe on v5e/v6e/v7x ----
    elt = 4
    vmem_est = (2 * tb * tt * (DV + DA)              # double-buffered input tiles
                + DV * DH + DH * LANES + DH + LANES  # resident weights / biases
                + 2 * tb * LANES                     # output block buffers
                + tb * (DV + DA)) * elt              # running-max scratch
    vmem_limit = int(min(max(2 * vmem_est, 16 * 1024 * 1024), 48 * 1024 * 1024))

    kernel = _make_vametric2_kernel(tt=tt, t_total=T, d_out=DO)

    out = pl.pallas_call(
        kernel,
        out_shape=jax.ShapeDtypeStruct((B, LANES), f32),
        grid_spec=pltpu.PrefetchScalarGridSpec(
            num_scalar_prefetch=0,
            grid=(nb, nt),
            in_specs=[
                pl.BlockSpec((tb, tt, DV), lambda bi, ti: (bi, ti, 0)),   # vfeat tile
                pl.BlockSpec((tb, tt, DA), lambda bi, ti: (bi, ti, 0)),   # afeat tile
                pl.BlockSpec((DV, DH), lambda bi, ti: (0, 0)),            # vfc weight
                pl.BlockSpec((1, DH), lambda bi, ti: (0, 0)),             # vfc bias
                pl.BlockSpec((DH, LANES), lambda bi, ti: (0, 0)),         # fc weight (padded)
                pl.BlockSpec((1, LANES), lambda bi, ti: (0, 0)),          # fc bias (padded)
            ],
            out_specs=pl.BlockSpec((tb, LANES), lambda bi, ti: (bi, 0)),
            scratch_shapes=[
                pltpu.VMEM((tb, DV), f32),   # running max of vfeat
                pltpu.VMEM((tb, DA), f32),   # running max of afeat
            ],
        ),
        compiler_params=pltpu.CompilerParams(
            dimension_semantics=("parallel", "arbitrary"),
            vmem_limit_bytes=vmem_limit,
        ),
    )(vfeat, afeat, wv_t, bv, wf_t, bf)
    return out[:, 0]


def xavier_uniform(key, shape):
    # nn.init.xavier_uniform for a Linear weight of shape (out, in)
    fan_out, fan_in = shape
    bound = jnp.sqrt(6.0 / (fan_in + fan_out))
    return jax.random.uniform(key, shape, jnp.float32, minval=-bound, maxval=bound)


def reference_forward(vfeat, afeat, w_vfc, b_vfc, w_fc, b_fc):
    v = jnp.max(vfeat, axis=1)
    a = jnp.max(afeat, axis=1)
    v = jnp.maximum(v @ w_vfc.T + b_vfc, 0.0)
    v = v @ w_fc.T + b_fc
    a = a @ w_fc.T + b_fc
    d = v - a + 1e-6
    return jnp.sqrt(jnp.sum(d * d, axis=1))


if __name__ == "__main__":
    key = jax.random.PRNGKey(0)
    k1, k2, k3, k4 = jax.random.split(key, 4)

    # Small demo shapes; feature dims fixed by the module (1024 -> 128 -> 96).
    B, T = 16, 128
    D_V, D_A, D_H, D_O = 1024, 128, 128, 96

    vfeat = jax.random.normal(k1, (B, T, D_V), jnp.float32)
    afeat = jax.random.normal(k2, (B, T, D_A), jnp.float32)

    # Deterministic init mirroring init_params(): xavier_uniform weights, zero biases.
    w_vfc = xavier_uniform(k3, (D_H, D_V))   # Linear(1024, 128).weight -> (128, 1024)
    b_vfc = jnp.zeros((D_H,), jnp.float32)
    w_fc = xavier_uniform(k4, (D_O, D_H))    # Linear(128, 96).weight -> (96, 128)
    b_fc = jnp.zeros((D_O,), jnp.float32)

    # tb=8, tt=64 -> grid (2, 2): exercises both the parallel batch axis and the
    # multi-step running-max reduction over T.
    out = vametric2_forward(vfeat, afeat, w_vfc, b_vfc, w_fc, b_fc, tb=8, tt=64)
    out = jax.block_until_ready(out)

    ref = reference_forward(vfeat, afeat, w_vfc, b_vfc, w_fc, b_fc)
    assert out.shape == (B,)
    assert jnp.allclose(out, ref, rtol=1e-4, atol=1e-5), (out, ref)

    print("KERNEL_OK")
</pallas_src>

<mosaic_0001>
module attributes {stable_mosaic.version = 11 : i64} {
  func.func @kernel(%arg0: i32, %arg1: i32, %arg2: memref<8x64x1024xf32, #tpu.memory_space<vmem>>, %arg3: memref<8x64x128xf32, #tpu.memory_space<vmem>>, %arg4: memref<1024x128xf32, #tpu.memory_space<vmem>>, %arg5: memref<1x128xf32, #tpu.memory_space<vmem>>, %arg6: memref<128x128xf32, #tpu.memory_space<vmem>>, %arg7: memref<1x128xf32, #tpu.memory_space<vmem>>, %arg8: memref<8x128xf32, #tpu.memory_space<vmem>>, %arg9: memref<8x1024xf32, #tpu.memory_space<vmem>>, %arg10: memref<8x128xf32, #tpu.memory_space<vmem>>) attributes {dimension_semantics = [#tpu.dimension_semantics<parallel>, #tpu.dimension_semantics<arbitrary>], iteration_bounds = array<i64: 2, 2>, scalar_prefetch = 0 : i64, scratch_operands = 2 : i64, tpu.core_type = #tpu.core_type<tc>, window_params = [{transform_indices = @transform_0, window_bounds = array<i64: 8, 64, 1024>}, {transform_indices = @transform_1, window_bounds = array<i64: 8, 64, 128>}, {pipeline_mode = #tpu.pipeline_mode<synchronous>, transform_indices = @transform_2, window_bounds = array<i64: 1024, 128>}, {pipeline_mode = #tpu.pipeline_mode<synchronous>, transform_indices = @transform_3, window_bounds = array<i64: 1, 128>}, {pipeline_mode = #tpu.pipeline_mode<synchronous>, transform_indices = @transform_4, window_bounds = array<i64: 128, 128>}, {pipeline_mode = #tpu.pipeline_mode<synchronous>, transform_indices = @transform_5, window_bounds = array<i64: 1, 128>}, {transform_indices = @transform_6, window_bounds = array<i64: 8, 128>}]} {
    %c0_i32 = arith.constant 0 : i32
    %0 = arith.cmpi eq, %arg1, %c0_i32 : i32
    %1 = arith.extui %0 : i1 to i32
    %c0_i32_0 = arith.constant 0 : i32
    %2 = arith.cmpi ne, %1, %c0_i32_0 : i32
    scf.if %2 {
      %cst_16 = arith.constant 0xFF800000 : f32
      %16 = vector.broadcast %cst_16 : f32 to vector<8x1024xf32>
      %c0_17 = arith.constant 0 : index
      %c0_18 = arith.constant 0 : index
      %17 = vector.load %arg9[%c0_17, %c0_18] : memref<8x1024xf32, #tpu.memory_space<vmem>>, vector<8x1024xf32>
      tpu.vector_store %arg9[%c0_17, %c0_18], %16 {strides = array<i32>} : memref<8x1024xf32, #tpu.memory_space<vmem>>, vector<8x1024xf32>,
      %cst_19 = arith.constant 0xFF800000 : f32
      %18 = vector.broadcast %cst_19 : f32 to vector<8x128xf32>
      %c0_20 = arith.constant 0 : index
      %c0_21 = arith.constant 0 : index
      %19 = vector.load %arg10[%c0_20, %c0_21] : memref<8x128xf32, #tpu.memory_space<vmem>>, vector<8x128xf32>
      tpu.vector_store %arg10[%c0_20, %c0_21], %18 {strides = array<i32>} : memref<8x128xf32, #tpu.memory_space<vmem>>, vector<8x128xf32>,
    } else {
    }
    %c0 = arith.constant 0 : index
    %c0_1 = arith.constant 0 : index
    %c0_2 = arith.constant 0 : index
    %3 = vector.load %arg2[%c0, %c0_1, %c0_2] : memref<8x64x1024xf32, #tpu.memory_space<vmem>>, vector<8x64x1024xf32>
    %c0_3 = arith.constant 0 : index
    %c0_4 = arith.constant 0 : index
    %c0_5 = arith.constant 0 : index
    %4 = vector.load %arg3[%c0_3, %c0_4, %c0_5] : memref<8x64x128xf32, #tpu.memory_space<vmem>>, vector<8x64x128xf32>
    %c0_6 = arith.constant 0 : index
    %c0_7 = arith.constant 0 : index
    %5 = vector.load %arg9[%c0_6, %c0_7] : memref<8x1024xf32, #tpu.memory_space<vmem>>, vector<8x1024xf32>
    %cst = arith.constant dense<0xFF800000> : vector<8x1024xf32>
    %6 = vector.multi_reduction <maximumf>, %3, %cst [1] : vector<8x64x1024xf32> to vector<8x1024xf32>
    %7 = arith.maximumf %5, %6 : vector<8x1024xf32>
    %c0_8 = arith.constant 0 : index
    %c0_9 = arith.constant 0 : index
    %8 = vector.load %arg9[%c0_8, %c0_9] : memref<8x1024xf32, #tpu.memory_space<vmem>>, vector<8x1024xf32>
    tpu.vector_store %arg9[%c0_8, %c0_9], %7 {strides = array<i32>} : memref<8x1024xf32, #tpu.memory_space<vmem>>, vector<8x1024xf32>,
    %c0_10 = arith.constant 0 : index
    %c0_11 = arith.constant 0 : index
    %9 = vector.load %arg10[%c0_10, %c0_11] : memref<8x128xf32, #tpu.memory_space<vmem>>, vector<8x128xf32>
    %cst_12 = arith.constant dense<0xFF800000> : vector<8x128xf32>
    %10 = vector.multi_reduction <maximumf>, %4, %cst_12 [1] : vector<8x64x128xf32> to vector<8x128xf32>
    %11 = arith.maximumf %9, %10 : vector<8x128xf32>
    %c0_13 = arith.constant 0 : index
    %c0_14 = arith.constant 0 : index
    %12 = vector.load %arg10[%c0_13, %c0_14] : memref<8x128xf32, #tpu.memory_space<vmem>>, vector<8x128xf32>
    tpu.vector_store %arg10[%c0_13, %c0_14], %11 {strides = array<i32>} : memref<8x128xf32, #tpu.memory_space<vmem>>, vector<8x128xf32>,
    %c1_i32 = arith.constant 1 : i32
    %13 = arith.cmpi eq, %arg1, %c1_i32 : i32
    %14 = arith.extui %13 : i1 to i32
    %c0_i32_15 = arith.constant 0 : i32
    %15 = arith.cmpi ne, %14, %c0_i32_15 : i32
    scf.if %15 {
      %c0_16 = arith.constant 0 : index
      %c0_17 = arith.constant 0 : index
      %16 = vector.load %arg9[%c0_16, %c0_17] : memref<8x1024xf32, #tpu.memory_space<vmem>>, vector<8x1024xf32>
      %c0_18 = arith.constant 0 : index
      %c0_19 = arith.constant 0 : index
      %17 = vector.load %arg10[%c0_18, %c0_19] : memref<8x128xf32, #tpu.memory_space<vmem>>, vector<8x128xf32>
      %c0_20 = arith.constant 0 : index
      %c0_21 = arith.constant 0 : index
      %18 = vector.load %arg4[%c0_20, %c0_21] : memref<1024x128xf32, #tpu.memory_space<vmem>>, vector<1024x128xf32>
      %cst_22 = arith.constant dense<0.000000e+00> : vector<8x128xf32>
      %19 = tpu.matmul %16, %18, %cst_22 {dimension_numbers = #tpu.dot_dimension_numbers<[1], [0], [0], [1], [0, 0, 1, 1], [], []>} : vector<8x1024xf32>, vector<1024x128xf32>, vector<8x128xf32> -> vector<8x128xf32>
      %c0_23 = arith.constant 0 : index
      %c0_24 = arith.constant 0 : index
      %20 = vector.load %arg5[%c0_23, %c0_24] : memref<1x128xf32, #tpu.memory_space<vmem>>, vector<1x128xf32>
      %21 = vector.broadcast %20 : vector<1x128xf32> to vector<8x128xf32>
      %22 = arith.addf %19, %21 : vector<8x128xf32>
      %cst_25 = arith.constant 0.000000e+00 : f32
      %23 = vector.broadcast %cst_25 : f32 to vector<8x128xf32>
      %24 = arith.maximumf %22, %23 : vector<8x128xf32>
      %c0_26 = arith.constant 0 : index
      %c0_27 = arith.constant 0 : index
      %25 = vector.load %arg6[%c0_26, %c0_27] : memref<128x128xf32, #tpu.memory_space<vmem>>, vector<128x128xf32>
      %cst_28 = arith.constant dense<0.000000e+00> : vector<8x128xf32>
      %26 = tpu.matmul %24, %25, %cst_28 {dimension_numbers = #tpu.dot_dimension_numbers<[1], [0], [0], [1], [0, 0, 1, 1], [], []>} : vector<8x128xf32>, vector<128x128xf32>, vector<8x128xf32> -> vector<8x128xf32>
      %c0_29 = arith.constant 0 : index
      %c0_30 = arith.constant 0 : index
      %27 = vector.load %arg7[%c0_29, %c0_30] : memref<1x128xf32, #tpu.memory_space<vmem>>, vector<1x128xf32>
      %28 = vector.broadcast %27 : vector<1x128xf32> to vector<8x128xf32>
      %29 = arith.addf %26, %28 : vector<8x128xf32>
      %c0_31 = arith.constant 0 : index
      %c0_32 = arith.constant 0 : index
      %30 = vector.load %arg6[%c0_31, %c0_32] : memref<128x128xf32, #tpu.memory_space<vmem>>, vector<128x128xf32>
      %cst_33 = arith.constant dense<0.000000e+00> : vector<8x128xf32>
      %31 = tpu.matmul %17, %30, %cst_33 {dimension_numbers = #tpu.dot_dimension_numbers<[1], [0], [0], [1], [0, 0, 1, 1], [], []>} : vector<8x128xf32>, vector<128x128xf32>, vector<8x128xf32> -> vector<8x128xf32>
      %c0_34 = arith.constant 0 : index
      %c0_35 = arith.constant 0 : index
      %32 = vector.load %arg7[%c0_34, %c0_35] : memref<1x128xf32, #tpu.memory_space<vmem>>, vector<1x128xf32>
      %33 = vector.broadcast %32 : vector<1x128xf32> to vector<8x128xf32>
      %34 = arith.addf %31, %33 : vector<8x128xf32>
      %35 = arith.subf %29, %34 : vector<8x128xf32>
      %cst_36 = arith.constant 9.99999997E-7 : f32
      %36 = vector.broadcast %cst_36 : f32 to vector<8x128xf32>
      %37 = arith.addf %35, %36 : vector<8x128xf32>
      %38 = tpu.iota {dimensions = array<i32: 1>} : vector<8x128xi32>
      %c96_i32 = arith.constant 96 : i32
      %39 = vector.broadcast %c96_i32 : i32 to vector<8x128xi32>
      %40 = arith.cmpi slt, %38, %39 : vector<8x128xi32>
      %cst_37 = arith.constant 0.000000e+00 : f32
      %41 = vector.broadcast %cst_37 : f32 to vector<8x128xf32>
      %42 = arith.select %40, %37, %41 : vector<8x128xi1>, vector<8x128xf32>
      %43 = arith.mulf %42, %42 : vector<8x128xf32>
      %cst_38 = arith.constant dense<0.000000e+00> : vector<8xf32>
      %44 = vector.multi_reduction <add>, %43, %cst_38 [1] : vector<8x128xf32> to vector<8xf32>
      %45 = vector.shape_cast %44 : vector<8xf32> to vector<8x1xf32>
      %46 = math.sqrt %45 : vector<8x1xf32>
      %47 = vector.shape_cast %46 : vector<8x1xf32> to vector<8x1xf32>
      %48 = vector.broadcast %47 : vector<8x1xf32> to vector<8x128xf32>
      %c0_39 = arith.constant 0 : index
      %c0_40 = arith.constant 0 : index
      %49 = vector.load %arg8[%c0_39, %c0_40] : memref<8x128xf32, #tpu.memory_space<vmem>>, vector<8x128xf32>
      tpu.vector_store %arg8[%c0_39, %c0_40], %48 {strides = array<i32>} : memref<8x128xf32, #tpu.memory_space<vmem>>, vector<8x128xf32>,
    } else {
    }
    return
  }
  func.func @transform_0(%arg0: i32, %arg1: i32) -> (i32, i32, i32) {
    %c0_i32 = arith.constant 0 : i32
    %c0_i32_0 = arith.constant 0 : i32
    return %arg0, %arg1, %c0_i32 : i32, i32, i32
  }
  func.func @transform_1(%arg0: i32, %arg1: i32) -> (i32, i32, i32) {
    %c0_i32 = arith.constant 0 : i32
    %c0_i32_0 = arith.constant 0 : i32
    return %arg0, %arg1, %c0_i32 : i32, i32, i32
  }
  func.func @transform_2(%arg0: i32, %arg1: i32) -> (i32, i32) {
    %c0_i32 = arith.constant 0 : i32
    %c0_i32_0 = arith.constant 0 : i32
    %c0_i32_1 = arith.constant 0 : i32
    return %c0_i32, %c0_i32_0 : i32, i32
  }
  func.func @transform_3(%arg0: i32, %arg1: i32) -> (i32, i32) {
    %c0_i32 = arith.constant 0 : i32
    %c0_i32_0 = arith.constant 0 : i32
    %c0_i32_1 = arith.constant 0 : i32
    return %c0_i32, %c0_i32_0 : i32, i32
  }
  func.func @transform_4(%arg0: i32, %arg1: i32) -> (i32, i32) {
    %c0_i32 = arith.constant 0 : i32
    %c0_i32_0 = arith.constant 0 : i32
    %c0_i32_1 = arith.constant 0 : i32
    return %c0_i32, %c0_i32_0 : i32, i32
  }
  func.func @transform_5(%arg0: i32, %arg1: i32) -> (i32, i32) {
    %c0_i32 = arith.constant 0 : i32
    %c0_i32_0 = arith.constant 0 : i32
    %c0_i32_1 = arith.constant 0 : i32
    return %c0_i32, %c0_i32_0 : i32, i32
  }
  func.func @transform_6(%arg0: i32, %arg1: i32) -> (i32, i32) {
    %c0_i32 = arith.constant 0 : i32
    %c0_i32_0 = arith.constant 0 : i32
    return %arg0, %c0_i32 : i32, i32
  }
}

</mosaic_0001>

<bundles_post_ra>
// kernel: tpu_custom_call.1
= control target key start
LH: loop header
LB: loop body
LE: loop exit
PB: predicated region body
PF: predicated region fallthrough
CT: control target
= control target key end

     0   :  { %s5247_s0 = inlined_call_operand.hbm [shape: f32[16,128,1024], index: 0, kind: input, shape index: {}]   ;;  %s5248_s1 = inlined_call_operand.hbm [shape: f32[16,128,128], index: 1, kind: input, shape index: {}]   ;;  %s5249_s2 = inlined_call_operand.hbm [shape: f32[1024,128], index: 2, kind: input, shape index: {}]   ;;  %s5250_s3 = inlined_call_operand.hbm [shape: f32[1,128], index: 3, kind: input, shape index: {}]   ;;  %s5251_s4 = inlined_call_operand.hbm [shape: f32[128,128], index: 4, kind: input, shape index: {}]   ;;  %s5252_s5 = inlined_call_operand.hbm [shape: f32[1,128], index: 5, kind: input, shape index: {}]   ;;  %s5253_s6 = inlined_call_operand.hbm [shape: f32[16,128], index: 6, kind: output, shape index: {}]  }
   0x1   :  { %5267 = sst [smem:[#allocation73_spill]] %s5250_s3 }
   0x2   :  { %5268 = sst [smem:[#allocation74_spill]] %s5253_s6 }
   0x3   :  { %11 = vsyncpa [#allocation5], 0 }
   0x4   :  { %13 = vsyncpa [#allocation5 + $0x1], 0 }
   0x5   :  { %14 = vsyncpa [#allocation8], 0 }
   0x6   :  { %16 = vsyncpa [#allocation8 + $0x1], 0 }
   0x7   :  { %17 = vsyncpa [#allocation11], 0 }
   0x8   :  { %18 = vsyncpa [#allocation14], 0 }
   0x9   :  { %19 = vsyncpa [#allocation6], 0 }
   0xa   :  { %21 = vsyncpa [#allocation6 + $0x1], 0  ;;  %s3859_s21 = smov 0   ;;  %s3861_s22 = smov 0  }
   0xb   :  { %s3863_s23 = smov 0   ;;  %s3865_s24 = smov 0  }
   0xc   :  { %s3867_s25 = smov 0   ;;  %s3869_s26 = smov 0  }
   0xd   :  { %s3871_s27 = smov 0   ;;  %s3873_s28 = smov 0  }
   0xe   :  { %s3875_s29 = smov 0   ;;  %s3877_s30 = smov 0  }
   0xf   :  { %s3879_s7 = smov 0  }
  0x10 LB: > { %5269 = sst [smem:[#allocation28_spill]] %s3760_s21  ;;  %s3913_s8 = sadd.s32 4294967295, %s3800_s7   ;;  %s3800_s7 = sphi %s3879_s7, %s27_s7   ;;  %s3796_s30 = sphi %s3877_s30, %s5388_s30   ;;  %s3792_s29 = sphi %s3875_s29, %s5387_s29   ;;  %s3788_s28 = sphi %s3873_s28, %s5386_s28   ;;  %s3784_s27 = sphi %s3871_s27, %s5385_s27   ;;  %s3780_s26 = sphi %s3869_s26, %s5384_s26   ;;  %s3776_s25 = sphi %s3867_s25, %s5383_s25   ;;  %s3772_s24 = sphi %s3865_s24, %s5382_s24   ;;  %s3768_s23 = sphi %s3863_s23, %s5376_s23   ;;  %s3764_s22 = sphi %s3861_s22, %s5381_s22   ;;  %s3760_s21 = sphi %s3859_s21, %s5380_s21  }
  0x11   : > { %5270 = sst [smem:[#allocation29_spill]] %s3768_s23  ;;  %s2916_s9 = sadd.s32 4294967294, %s3800_s7  }
  0x12   : > { %5271 = sst [smem:[#allocation30_spill]] %s3784_s27  ;;  %s36_s10 = sadd.s32 1, %s3792_s29 }
  0x13   : > { %5272 = sst [smem:[#allocation31_spill]] %s3788_s28  ;;  %s39_s11 = sadd.s32 1, %s3796_s30 }
  0x14   : > { %p37_p0 = scmp.ge.s32.totalorder %s36_s10, 2  ;;  %s48_s12 = sadd.s32 1, %s3780_s26 }
  0x15   : > { %p55_p1 = scmp.ne.s32.totalorder %s3780_s26, %s3776_s25  ;;  %p56_p2 = scmp.eq.s32.totalorder %s3800_s7, 0 }
  0x16   : > { %s5390_s10 = smov (%p37_p0, %s36_s10), 0  ;;  %s5392_s11 = smov (!%p37_p0, %s39_s11), %s3796_s30 }
  0x17   : > { %5273 = sst [smem:[#allocation32_spill]] %s5390_s10  ;;  %s44_s13 = ssub.s32 %s3792_s29, %s5390_s10 }
  0x18   : > { %p3927_p3 = por %p56_p2, %p55_p1  ;;  %p41_p4 = scmp.ge.s32.totalorder %s5392_s11, 2 }
  0x19   : > { %p61_p5 = scmp.ne.s32.totalorder %s3776_s25, %s3772_s24  ;;  %p5260_p6 = scmp.eq.s32.totalorder %s3913_s8, 0 }
  0x1a   : > { %s5274_s14 = scalar_select %p3927_p3, 1, 0 }
  0x1b   : > { %s186_s15 = sadd.s32 1, %s3768_s23  ;;  %s5394_s11 = smov (%p41_p4, %s5392_s11), 0 }
  0x1c   : > { %5275 = sst [smem:[#allocation33_spill]] %s5394_s11  ;;  %p3938_p7 = por %p5260_p6, %p61_p5 }
  0x1d   : > { %p196_p8 = scmp.ne.s32.totalorder %s3768_s23, %s3764_s22  ;;  %s43_s17 = ssub.s32 %s3796_s30, %s5394_s11 }
  0x1e   : > { %s5276_s16 = scalar_select %p3938_p7, 1, 0 }
  0x1f   : > { %p197_p9 = scmp.eq.s32.totalorder %s3913_s8, 3  ;;  %s45_s18 = sor.u32 %s44_s13, %s43_s17 }
  0x20   : > { %p184_p10 = scmp.eq.s32.totalorder %s43_s17, 0  ;;  %p46_p11 = scmp.eq.s32.totalorder %s45_s18, 0 }
  0x21   : > { %p3947_p12 = por %p197_p9, %p196_p8  ;;  %p202_p13 = scmp.ne.s32.totalorder %s3764_s22, %s3760_s21 }
  0x22   : > { %s3952_s20 = scalar_select %p184_p10, %s3768_s23, %s186_s15  }
  0x23   : > { %s5277_s19 = scalar_select %p3947_p12, 1, 0 }
  0x24   : > { %5279 = sst [smem:[#allocation35_spill]] %s3952_s20  ;;  %p203_p0 = scmp.eq.s32.totalorder %s2916_s9, 3 }
  0x25   : > { %5278 = sst [smem:[#allocation34_spill]] %s5277_s19  ;;  %p2917_p1 = scmp.ge.s32.totalorder %s3800_s7, 1 }
  0x26   : > { %s3955_s24 = scalar_select %p46_p11, %s3780_s26, %s48_s12  }
  0x27   : > { %p210_p2 = scmp.lt.s32.totalorder %s3800_s7, 5  ;;  %p3961_p4 = por %p203_p0, %p202_p13 }
  0x28   : > { %5280 = sst [smem:[#allocation36_spill]] %s3955_s24  ;;  %s3802_s17 = smov [#allocation10]  }
  0x29   : > { %s5281_s10 = scalar_select %p3961_p4, 1, 0 }
  0x2a   : > { %p3965_p5 = pnand %p2917_p1, %p210_p2  ;;  %s236_s18 = sshll.u32 %s3802_s17, 4  ;;  %s237_s18 = int_to_ptr.vmem [resolvable:$true] %s236_s18 }
  0x2b   : > { %5282 = sst [smem:[#allocation37_spill]] %s5281_s10  ;;  %s3803_s9 = smov [#allocation9]  }
  0x2c   : > { %s5283_s13 = scalar_select %p3965_p5, 1, 0 }
  0x2d   : > { %p3413_p8 = pneg %p3965_p5  ;;  %s222_s15 = sshll.u32 %s3803_s9, 4  ;;  %s223_s15 = int_to_ptr.vmem [resolvable:$true] %s222_s15 }
  0x2e   : > { %s5285_s3 = sld [smem:[#allocation73_spill]] }
  0x2f   : > { %p3973_p9 = pnand %p3413_p8, %p5260_p6 }
  0x31   : > { %p3985_p11 = pneg %p3973_p9 }
  0x34   : > { %s3550_s20 = scalar_lea.hbm %s5285_s3, 16 }
  0x35   : > { %p3551_p10 = scmp.ne.s32.totalorder %s5285_s3, %s3550_s20  ;;  %p3557_p1 = scmp.lt.u32.totalorder %s3550_s20, %s5285_s3 }
  0x37   : > { %p3553_p13 = pnand %p3985_p11, %p3551_p10 }
  0x39   : > { %p3554_p0 = pneg %p3553_p13 }
  0x3b   : > { %p3559_p2 = pnand %p3557_p1, %p3554_p0 }
  0x3d   : > { %3562 = shalt.err (!%p3559_p2)
}
  0x3e   : > { %s3563_s11 = scalar_lea.vmem %s237_s18, 16  ;;  %s3570_s23 = scalar_lea.vmem %s237_s18, 32 }
  0x3f   : > { %p3564_p8 = scmp.ne.s32.totalorder %s237_s18, %s3563_s11  ;;  %p3571_p12 = scmp.lt.s32.totalorder %s237_s18, %s237_s18 }
  0x40   : > { %p3572_p7 = scmp.lt.s32.totalorder %s3570_s23, %s3563_s11 }
  0x41   : > { %p3566_p6 = pnand %p3564_p8, %p3985_p11 }
  0x42   : > { %p3573_p5 = por %p3572_p7, %p3571_p12 }
  0x43   : > { %p3567_p4 = pneg %p3566_p6 }
  0x45   : > { %p3574_p3 = pnand %p3573_p5, %p3567_p4 }
  0x47   : > { %3577 = shalt.err (!%p3574_p3)
}
  0x48   : > { %3419 = dma.hbm_to_vmem [thread:$0]  (!%p3973_p9), %s5285_s3, 16, %s237_s18, [#allocation11]  }
  0x49   : > { %s3578_s20 = scalar_lea.hbm %s5249_s2, 16384 }
  0x4a   : > { %p3579_p6 = scmp.ne.s32.totalorder %s5249_s2, %s3578_s20  ;;  %p3585_p3 = scmp.lt.u32.totalorder %s3578_s20, %s5249_s2 }
  0x4c   : > { %p3581_p7 = pnand %p3579_p6, %p3985_p11 }
  0x4e   : > { %p3582_p12 = pneg %p3581_p7 }
  0x50   : > { %p3587_p4 = pnand %p3585_p3, %p3582_p12 }
  0x52   : > { %3590 = shalt.err (!%p3587_p4)
}
  0x53   : > { %s3591_s10 = scalar_lea.vmem %s223_s15, 16384  ;;  %p3599_p0 = scmp.lt.s32.totalorder %s223_s15, %s223_s15 }
  0x54   : > { %p3592_p5 = scmp.ne.s32.totalorder %s223_s15, %s3591_s10  ;;  %p3600_p1 = scmp.lt.s32.totalorder %s3591_s10, %s3591_s10 }
  0x56   : > { %p3594_p10 = pnand %p3592_p5, %p3985_p11  ;;  %p3601_p2 = por %p3600_p1, %p3599_p0 }
  0x58   : > { %p3595_p13 = pneg %p3594_p10 }
  0x5a   : > { %p3602_p8 = pnand %p3601_p2, %p3595_p13 }
  0x5c   : > { %3605 = shalt.err (!%p3602_p8)
}
  0x5d   : > { %s3804_s19 = smov 128   ;;  %s3805_s18 = smov 8  }
  0x5e   : > { %3416 = dma.hbm_to_vmem [thread:$0]  (!%p3973_p9), %s5249_s2, 16384, %s223_s15, [#allocation8], %s3804_s19, %s3804_s19, %s3805_s18  }
  0x5f   : > { %s3806_s21 = smov [#allocation12]   ;;  %s3807_s9 = smov [#allocation13]  }
  0x60   : > { %s246_s20 = sshll.u32 %s3806_s21, 4  ;;  %s260_s11 = sshll.u32 %s3807_s9, 4  ;;  %s247_s20 = int_to_ptr.vmem [resolvable:$true] %s246_s20  ;;  %s4019_s11 = int_to_ptr.vmem [resolvable:$true] %s260_s11 }
  0x61   : > { %s3606_s3 = scalar_lea.hbm %s5251_s4, 2048 }
  0x62   : > { %p3607_p6 = scmp.ne.s32.totalorder %s5251_s4, %s3606_s3  ;;  %p3613_p3 = scmp.lt.u32.totalorder %s3606_s3, %s5251_s4 }
  0x64   : > { %p3609_p7 = pnand %p3607_p6, %p3985_p11 }
  0x66   : > { %p3610_p12 = pneg %p3609_p7 }
  0x68   : > { %p3615_p4 = pnand %p3613_p3, %p3610_p12 }
  0x6a   : > { %3618 = shalt.err (!%p3615_p4)
}
  0x6b   : > { %s3619_s6 = scalar_lea.vmem %s247_s20, 2048  ;;  %p3627_p0 = scmp.lt.s32.totalorder %s247_s20, %s247_s20 }
  0x6c   : > { %p3620_p5 = scmp.ne.s32.totalorder %s247_s20, %s3619_s6  ;;  %p3628_p1 = scmp.lt.s32.totalorder %s3619_s6, %s3619_s6 }
  0x6e   : > { %p3622_p10 = pnand %p3620_p5, %p3985_p11  ;;  %p3629_p2 = por %p3628_p1, %p3627_p0 }
  0x70   : > { %p3623_p13 = pneg %p3622_p10 }
  0x72   : > { %p3630_p8 = pnand %p3629_p2, %p3623_p13 }
  0x74   : > { %3633 = shalt.err (!%p3630_p8)
}
  0x75   : > { %3422 = dma.hbm_to_vmem [thread:$0]  (!%p3973_p9), %s5251_s4, 2048, %s247_s20, [#allocation11], %s3804_s19, %s3804_s19, %s3805_s18  }
  0x76   : > { %s3634_s9 = scalar_lea.hbm %s5252_s5, 16 }
  0x77   : > { %p3635_p6 = scmp.ne.s32.totalorder %s5252_s5, %s3634_s9  ;;  %p3641_p3 = scmp.lt.u32.totalorder %s3634_s9, %s5252_s5 }
  0x79   : > { %p3637_p7 = pnand %p3635_p6, %p3985_p11 }
  0x7b   : > { %p3638_p12 = pneg %p3637_p7 }
  0x7d   : > { %p3643_p4 = pnand %p3641_p3, %p3638_p12 }
  0x7f   : > { %3646 = shalt.err (!%p3643_p4)
}
  0x80   : > { %s3647_s19 = scalar_lea.vmem %s4019_s11, 16  ;;  %s3654_s18 = scalar_lea.vmem %s4019_s11, 32 }
  0x81   : > { %p3648_p5 = scmp.ne.s32.totalorder %s4019_s11, %s3647_s19  ;;  %p3655_p0 = scmp.lt.s32.totalorder %s4019_s11, %s4019_s11 }
  0x82   : > { %p3656_p1 = scmp.lt.s32.totalorder %s3654_s18, %s3647_s19 }
  0x83   : > { %p3650_p10 = pnand %p3648_p5, %p3985_p11 }
  0x84   : > { %p3657_p2 = por %p3656_p1, %p3655_p0 }
  0x85   : > { %p3651_p13 = pneg %p3650_p10 }
  0x87   : > { %p3658_p8 = pnand %p3657_p2, %p3651_p13 }
  0x89   : > { %3661 = shalt.err (!%p3658_p8)
}
  0x8a   : > { %3425 = dma.hbm_to_vmem [thread:$0]  (!%p3973_p9), %s5252_s5, 16, %s4019_s11, [#allocation14]  }
  0x8b   : > { %p2922_p6 = scmp.ge.s32.totalorder %s3800_s7, 4 }
  0x8d   : > { %267 = sbr.rel (%p2922_p6) target bundleno = 181 (0xb5), region = 32 }
  0x94   : > { %s4065_s17 = sand.u32 1, %s3780_s26   ;;  %s2954_s27 = sshll.u32 %s3792_s29, 6 }
  0x95   : > { %s2923_s12 = sshll.u32 %s4065_s17, 12  ;;  %s2955_s28 = sshll.u32 %s3796_s30, 10 }
  0x96   : > { %s283_s3 = sadd.s32 %s2955_s28, %s2954_s27  ;;  %s275_s11 = scalar_lea.vmem [#allocation4], %s2923_s12 }
  0x97   : > { %s298_s21 = sshll.u32 %s275_s11, 4  ;;  %s2928_s9 = sshll.u32 %s283_s3, 7  ;;  %s299_s21 = int_to_ptr.vmem [resolvable:$true] %s298_s21 }
  0x98   : > { %p5287_p9 = scmp.ne.s32.totalorder %s5274_s14, 0  ;;  %s3808_s10 = smov 16384  }
  0x99   : > { %s3809_s15 = smov 8192   ;;  %s3810_s19 = smov 8  }
  0x9a   : > { %s3385_s23 = scalar_select %p5287_p9, [#allocation0], [#allocation20] }
  0x9b   : > { %3386 = sst [smem:[#allocation17]] (%p5287_p9), %s3808_s10  ;;  %s3811_s18 = smov 1024  }
  0x9c   : > { %s290_s24 = sld [smem:[%s3385_s23]]   ;;  %s285_s27 = scalar_lea.hbm %s5247_s0, %s2928_s9 }
  0x9d   : > { %3387 = sst [smem:[#allocation17 + $0x1]] (%p5287_p9), %s3809_s15  ;;  %s3812_s12 = smov 64  }
  0x9e   : > { %3388 = sst [smem:[#allocation17 + $0x2]] (%p5287_p9), %s3810_s19  ;;  %s272_s11 = scalar_lea.sflag [#allocation5], %s4065_s17 }
  0x9f   : > { %3389 = sst [smem:[#allocation17 + $0x3]] (%p5287_p9), %s3811_s18  ;;  %s3813_s23 = smov [#allocation16]  }
  0xa0   : > { %3390 = sst [smem:[#allocation17 + $0x4]] (%p5287_p9), %s3811_s18 }
  0xa1   : > { %3391 = sst [smem:[#allocation17 + $0x5]] (%p5287_p9), %s3812_s12 }
  0xa2   : > { %s2929_s28 = sshll.u32 %s290_s24, 26 }
  0xa3   : > { %s2930_s3 = sadd.s32 134217728, %s2929_s28 }
  0xa4   : > { %3392 = dma.general (%p5287_p9), %s285_s27, 65536, %s299_s21, %s272_s11, %s3813_s23, [#allocation17], %s2930_s3, 0  }
  0xa5   : > { %s2931_s9 = sshll.u32 %s4065_s17, 9  ;;  %s2933_s10 = sshll.u32 %s3792_s29, 3 }
  0xa6   : > { %s2956_s15 = sshll.u32 %s3796_s30, 7  ;;  %s321_s18 = sand.u32 1, %s3800_s7  }
  0xa7   : > { %s332_s19 = sadd.s32 %s2956_s15, %s2933_s10  ;;  %s325_s24 = scalar_lea.vmem [#allocation7], %s2931_s9 }
  0xa8   : > { %s347_s20 = sshll.u32 %s325_s24, 4  ;;  %s2935_s6 = sshll.u32 %s332_s19, 7  ;;  %s348_s20 = int_to_ptr.vmem [resolvable:$true] %s347_s20 }
  0xa9   : > { %s3393_s21 = scalar_select %p5287_p9, [#allocation0], [#allocation21] }
  0xaa   : > { %s3814_s27 = smov 2048   ;;  %s3815_s28 = smov 1024  }
  0xab   : > { %3394 = sst [smem:[#allocation19]] (%p5287_p9), %s3814_s27  ;;  %s3816_s17 = smov 8  }
  0xac   : > { %s339_s12 = sld [smem:[%s3393_s21]]   ;;  %s3817_s3 = smov 128  }
  0xad   : > { %3395 = sst [smem:[#allocation19 + $0x1]] (%p5287_p9), %s3815_s28  ;;  %s334_s9 = scalar_lea.hbm %s5248_s1, %s2935_s6 }
  0xae   : > { %3396 = sst [smem:[#allocation19 + $0x2]] (%p5287_p9), %s3816_s17  ;;  %s322_s19 = scalar_lea.sflag [#allocation8], %s321_s18 }
  0xaf   : > { %3397 = sst [smem:[#allocation19 + $0x3]] (%p5287_p9), %s3817_s3  ;;  %s3818_s24 = smov [#allocation18]  }
  0xb0   : > { %3398 = sst [smem:[#allocation19 + $0x4]] (%p5287_p9), %s3817_s3 }
  0xb1   : > { %3399 = sst [smem:[#allocation19 + $0x5]] (%p5287_p9), %s3816_s17 }
  0xb2   : > { %s2936_s10 = sshll.u32 %s339_s12, 26 }
  0xb3   : > { %s2937_s15 = sadd.s32 134217728, %s2936_s10 }
  0xb4   : > { %3400 = dma.general (%p5287_p9), %s334_s9, 8192, %s348_s20, %s322_s19, %s3818_s24, [#allocation19], %s2937_s15, 0  }
  0xb5 PF: > { %p5288_p11 = scmp.ne.s32.totalorder %s5283_s13, 0 }
  0xb7   : > { %372 = sbr.rel (%p5288_p11) target bundleno = 1175 (0x497), region = 44 }
  0xbe   : > { %s374_s21 = sand.u32 1, %s3776_s25   ;;  %p5289_p7 = scmp.ne.s32.totalorder %s5276_s16, 0 }
  0xbf   : > { %s2939_s27 = sshll.u32 %s374_s21, 12  ;;  %s375_s28 = scalar_lea.sflag [#allocation5], %s374_s21 }
  0xc0   : > { %s4116_s6 = scalar_lea.vmem [#allocation4], %s2939_s27 }
  0xc1   : > { %3735 = dma.done.wait (%p5289_p7), %s375_s28, 65536  }
  0xc2   : > { %3737 = vsyncadd (%p5289_p7), %s375_s28, 4294901760  ;;  %s383_s14 = sand.u32 1, %s3913_s8   ;;  %s2940_s18 = sshll.u32 %s374_s21, 9 }
  0xc3   : > { %s384_s20 = scalar_lea.sflag [#allocation8], %s383_s14  ;;  %s4123_s12 = scalar_lea.vmem [#allocation7], %s2940_s18 }
  0xc4   : > { %3739 = dma.done.wait (%p5289_p7), %s384_s20, 8192  }
  0xc5   : > { %3741 = vsyncadd (%p5289_p7), %s384_s20, 4294959104  ;;  %p5290_p12 = scmp.eq.s32.totalorder %s3913_s8, 0 }
  0xc7   : > { %3743 = dma.done.wait (%p5290_p12), [#allocation8], 16384   ;;  %p5291_p3 = pmov %p5290_p12 }
  0xc9   : > { %3745 = vsyncadd (%p5291_p3), [#allocation8], 4294950912  ;;  %p5292_p4 = pmov %p5291_p3 }
  0xca   : > { %p5293_p5 = pmov %p5291_p3 }
  0xcb   : > { %3747 = dma.done.wait (%p5292_p4), [#allocation11], 2064  }
  0xcc   : > { %3749 = vsyncadd (%p5293_p5), [#allocation11], 4294965232  ;;  %p5294_p10 = pmov %p5291_p3 }
  0xcd   : > { %p5295_p13 = pmov %p5291_p3 }
  0xce   : > { %3751 = dma.done.wait (%p5294_p10), [#allocation14], 16  }
  0xcf   : > { %3753 = vsyncadd (%p5295_p13), [#allocation14], 4294967280  ;;  %s434_s16 = sand.u32 1, %s3764_s22   ;;  %s5296_s3 = sld [smem:[#allocation30_spill]] }
  0xd0   : > { %s4144_s13 = sshll.u32 %s434_s16, 3 }
  0xd1   : > { %s436_s17 = scalar_lea.vmem [#allocation15], %s4144_s13 }
  0xd5   : > { %p2946_p0 = scmp.ne.s32.totalorder %s5296_s3, 0 }
  0xd6   : > { %v3819_v0 = vmov (!%p2946_p0), -inf  }
  0xd7   : > { %444 = sbr.rel (%p2946_p0) target bundleno = 222 (0xde), region = 72  ;;  %445 = vst [vmem:[#allocation2] sm:$0xff] (!%p2946_p0), %v3819_v0  ;;  %446 = vst [vmem:[#allocation2 + $0x8] sm:$0xff] (!%p2946_p0), %v3819_v0 }
  0xd8   : > { %447 = vst [vmem:[#allocation2 + $0x10] sm:$0xff] (!%p2946_p0), %v3819_v0  ;;  %448 = vst [vmem:[#allocation2 + $0x18] sm:$0xff] (!%p2946_p0), %v3819_v0 }
  0xd9   : > { %449 = vst [vmem:[#allocation2 + $0x20] sm:$0xff] (!%p2946_p0), %v3819_v0  ;;  %450 = vst [vmem:[#allocation2 + $0x28] sm:$0xff] (!%p2946_p0), %v3819_v0 }
  0xda   : > { %451 = vst [vmem:[#allocation2 + $0x30] sm:$0xff] (!%p2946_p0), %v3819_v0  ;;  %452 = vst [vmem:[#allocation2 + $0x38] sm:$0xff] (!%p2946_p0), %v3819_v0 }
  0xdb   : > { %453 = vst [vmem:[#allocation3] sm:$0xff] (!%p2946_p0), %v3819_v0 }
  0xde PF: > { %v454_v1 = vld [vmem:[%s4116_s6] sm:$0xff]  ;;  %v455_v2 = vld [vmem:[%s4116_s6 + $0x8] sm:$0xff]  ;;  %v456_v3 = vld [vmem:[%s4116_s6 + $0x10] sm:$0xff]  ;;  %vm1934_vm0 = vcmask 1041409   ;;  %vm1936_vm1 = vcmask 1042434   ;;  %vm1938_vm2 = vcmask 1043459  }
  0xdf   : > { %v457_v4 = vld [vmem:[%s4116_s6 + $0x18] sm:$0xff]  ;;  %v462_v5 = vld [vmem:[%s4116_s6 + $0x40] sm:$0xff]  ;;  %v463_v6 = vld [vmem:[%s4116_s6 + $0x48] sm:$0xff]  ;;  %vm1940_vm3 = vcmask 1044484   ;;  %vm1942_vm4 = vcmask 1045509   ;;  %vm1944_vm5 = vcmask 1046534  }
  0xe0   : > { %v464_v7 = vld [vmem:[%s4116_s6 + $0x50] sm:$0xff]  ;;  %v465_v8 = vld [vmem:[%s4116_s6 + $0x58] sm:$0xff]  ;;  %v458_v9 = vld [vmem:[%s4116_s6 + $0x20] sm:$0xff]  ;;  %v1038_v33 = vmax.f32 %v454_v1, %v462_v5  ;;  %v1051_v34 = vmax.f32 %v455_v2, %v463_v6  ;;  %vm1946_vm6 = vcmask 1047559   ;;  %s5367_s8 = sld [smem:[#allocation30_spill]] }
  0xe1   : > { %v459_v10 = vld [vmem:[%s4116_s6 + $0x28] sm:$0xff]  ;;  %v460_v11 = vld [vmem:[%s4116_s6 + $0x30] sm:$0xff]  ;;  %v461_v12 = vld [vmem:[%s4116_s6 + $0x38] sm:$0xff]  ;;  %v1064_v35 = vmax.f32 %v456_v3, %v464_v7  ;;  %v1077_v36 = vmax.f32 %v457_v4, %v465_v8 }
  0xe2   : > { %v466_v13 = vld [vmem:[%s4116_s6 + $0x60] sm:$0xff]  ;;  %v467_v14 = vld [vmem:[%s4116_s6 + $0x68] sm:$0xff]  ;;  %v468_v15 = vld [vmem:[%s4116_s6 + $0x70] sm:$0xff] }
  0xe3   : > { %v469_v16 = vld [vmem:[%s4116_s6 + $0x78] sm:$0xff]  ;;  %v470_v17 = vld [vmem:[%s4116_s6 + $0x80] sm:$0xff]  ;;  %v471_v18 = vld [vmem:[%s4116_s6 + $0x88] sm:$0xff]  ;;  %v1090_v41 = vmax.f32 %v458_v9, %v466_v13  ;;  %v1103_v42 = vmax.f32 %v459_v10, %v467_v14  ;;  %v1116_v43 = vmax.f32 %v460_v11, %v468_v15 }
  0xe4   : > { %v472_v19 = vld [vmem:[%s4116_s6 + $0x90] sm:$0xff]  ;;  %v473_v20 = vld [vmem:[%s4116_s6 + $0x98] sm:$0xff]  ;;  %v474_v21 = vld [vmem:[%s4116_s6 + $0xa0] sm:$0xff]  ;;  %v1129_v44 = vmax.f32 %v461_v12, %v469_v16  ;;  %v1039_v49 = vmax.f32 %v1038_v33, %v470_v17  ;;  %v1052_v50 = vmax.f32 %v1051_v34, %v471_v18 }
  0xe5   : > { %v475_v22 = vld [vmem:[%s4116_s6 + $0xa8] sm:$0xff]  ;;  %v476_v23 = vld [vmem:[%s4116_s6 + $0xb0] sm:$0xff]  ;;  %v477_v24 = vld [vmem:[%s4116_s6 + $0xb8] sm:$0xff]  ;;  %v1065_v51 = vmax.f32 %v1064_v35, %v472_v19  ;;  %v1078_v52 = vmax.f32 %v1077_v36, %v473_v20  ;;  %v1091_v56 = vmax.f32 %v1090_v41, %v474_v21 }
  0xe6   : > { %v478_v25 = vld [vmem:[%s4116_s6 + $0xc0] sm:$0xff]  ;;  %v479_v26 = vld [vmem:[%s4116_s6 + $0xc8] sm:$0xff]  ;;  %v480_v27 = vld [vmem:[%s4116_s6 + $0xd0] sm:$0xff]  ;;  %v1104_v57 = vmax.f32 %v1103_v42, %v475_v22  ;;  %v1117_v58 = vmax.f32 %v1116_v43, %v476_v23  ;;  %v1130_v59 = vmax.f32 %v1129_v44, %v477_v24  ;;  %p2947_p1 = scmp.ne.s32.totalorder %s5367_s8, 1 }
  0xe7   : > { %v481_v28 = vld [vmem:[%s4116_s6 + $0xd8] sm:$0xff]  ;;  %v482_v29 = vld [vmem:[%s4116_s6 + $0xe0] sm:$0xff]  ;;  %v483_v30 = vld [vmem:[%s4116_s6 + $0xe8] sm:$0xff]  ;;  %v1040_v63 = vmax.f32 %v1039_v49, %v478_v25  ;;  %v1053_v0 = vmax.f32 %v1052_v50, %v479_v26  ;;  %v1066_v1 = vmax.f32 %v1065_v51, %v480_v27  ;;  %vm3821_vm7 = vmmov (!%p2947_p1), 0  }
  0xe8   : > { %v484_v31 = vld [vmem:[%s4116_s6 + $0xf0] sm:$0xff]  ;;  %v485_v32 = vld [vmem:[%s4116_s6 + $0xf8] sm:$0xff]  ;;  %v486_v37 = vld [vmem:[%s4116_s6 + $0x100] sm:$0xff]  ;;  %v1079_v2 = vmax.f32 %v1078_v52, %v481_v28  ;;  %v1092_v6 = vmax.f32 %v1091_v56, %v482_v29  ;;  %v1105_v7 = vmax.f32 %v1104_v57, %v483_v30 }
  0xe9   : > { %v487_v38 = vld [vmem:[%s4116_s6 + $0x108] sm:$0xff]  ;;  %v488_v39 = vld [vmem:[%s4116_s6 + $0x110] sm:$0xff]  ;;  %v489_v40 = vld [vmem:[%s4116_s6 + $0x118] sm:$0xff]  ;;  %v1118_v8 = vmax.f32 %v1117_v58, %v484_v31  ;;  %v1131_v9 = vmax.f32 %v1130_v59, %v485_v32  ;;  %v1041_v13 = vmax.f32 %v1040_v63, %v486_v37 }
  0xea   : > { %v490_v45 = vld [vmem:[%s4116_s6 + $0x120] sm:$0xff]  ;;  %v491_v46 = vld [vmem:[%s4116_s6 + $0x128] sm:$0xff]  ;;  %v492_v47 = vld [vmem:[%s4116_s6 + $0x130] sm:$0xff]  ;;  %v1054_v14 = vmax.f32 %v1053_v0, %v487_v38  ;;  %v1067_v15 = vmax.f32 %v1066_v1, %v488_v39  ;;  %v1080_v16 = vmax.f32 %v1079_v2, %v489_v40 }
  0xeb   : > { %v493_v48 = vld [vmem:[%s4116_s6 + $0x138] sm:$0xff]  ;;  %v494_v53 = vld [vmem:[%s4116_s6 + $0x140] sm:$0xff]  ;;  %v495_v54 = vld [vmem:[%s4116_s6 + $0x148] sm:$0xff]  ;;  %v1093_v20 = vmax.f32 %v1092_v6, %v490_v45  ;;  %v1106_v21 = vmax.f32 %v1105_v7, %v491_v46  ;;  %v1119_v22 = vmax.f32 %v1118_v8, %v492_v47 }
  0xec   : > { %v496_v55 = vld [vmem:[%s4116_s6 + $0x150] sm:$0xff]  ;;  %v497_v60 = vld [vmem:[%s4116_s6 + $0x158] sm:$0xff]  ;;  %v498_v61 = vld [vmem:[%s4116_s6 + $0x160] sm:$0xff]  ;;  %v1132_v23 = vmax.f32 %v1131_v9, %v493_v48  ;;  %v1042_v27 = vmax.f32 %v1041_v13, %v494_v53  ;;  %v1055_v28 = vmax.f32 %v1054_v14, %v495_v54 }
  0xed   : > { %v499_v62 = vld [vmem:[%s4116_s6 + $0x168] sm:$0xff]  ;;  %v500_v3 = vld [vmem:[%s4116_s6 + $0x170] sm:$0xff]  ;;  %v501_v4 = vld [vmem:[%s4116_s6 + $0x178] sm:$0xff]  ;;  %v1068_v29 = vmax.f32 %v1067_v15, %v496_v55  ;;  %v1081_v30 = vmax.f32 %v1080_v16, %v497_v60  ;;  %v1094_v34 = vmax.f32 %v1093_v20, %v498_v61 }
  0xee   : > { %v502_v5 = vld [vmem:[%s4116_s6 + $0x180] sm:$0xff]  ;;  %v503_v10 = vld [vmem:[%s4116_s6 + $0x188] sm:$0xff]  ;;  %v504_v11 = vld [vmem:[%s4116_s6 + $0x190] sm:$0xff]  ;;  %v1107_v35 = vmax.f32 %v1106_v21, %v499_v62  ;;  %v1120_v36 = vmax.f32 %v1119_v22, %v500_v3  ;;  %v1133_v37 = vmax.f32 %v1132_v23, %v501_v4 }
  0xef   : > { %v505_v12 = vld [vmem:[%s4116_s6 + $0x198] sm:$0xff]  ;;  %v506_v17 = vld [vmem:[%s4116_s6 + $0x1a0] sm:$0xff]  ;;  %v507_v18 = vld [vmem:[%s4116_s6 + $0x1a8] sm:$0xff]  ;;  %v1043_v41 = vmax.f32 %v1042_v27, %v502_v5  ;;  %v1056_v42 = vmax.f32 %v1055_v28, %v503_v10  ;;  %v1069_v43 = vmax.f32 %v1068_v29, %v504_v11 }
  0xf0   : > { %v508_v19 = vld [vmem:[%s4116_s6 + $0x1b0] sm:$0xff]  ;;  %v509_v24 = vld [vmem:[%s4116_s6 + $0x1b8] sm:$0xff]  ;;  %v510_v25 = vld [vmem:[%s4116_s6 + $0x1c0] sm:$0xff]  ;;  %v1082_v44 = vmax.f32 %v1081_v30, %v505_v12  ;;  %v1095_v47 = vmax.f32 %v1094_v34, %v506_v17  ;;  %v1108_v48 = vmax.f32 %v1107_v35, %v507_v18 }
  0xf1   : > { %v511_v26 = vld [vmem:[%s4116_s6 + $0x1c8] sm:$0xff]  ;;  %v512_v31 = vld [vmem:[%s4116_s6 + $0x1d0] sm:$0xff]  ;;  %v513_v32 = vld [vmem:[%s4116_s6 + $0x1d8] sm:$0xff]  ;;  %v1121_v49 = vmax.f32 %v1120_v36, %v508_v19  ;;  %v1134_v50 = vmax.f32 %v1133_v37, %v509_v24  ;;  %v1044_v53 = vmax.f32 %v1043_v41, %v510_v25 }
  0xf2   : > { %v514_v33 = vld [vmem:[%s4116_s6 + $0x1e0] sm:$0xff]  ;;  %v515_v38 = vld [vmem:[%s4116_s6 + $0x1e8] sm:$0xff]  ;;  %v516_v39 = vld [vmem:[%s4116_s6 + $0x1f0] sm:$0xff]  ;;  %v1057_v54 = vmax.f32 %v1056_v42, %v511_v26  ;;  %v1070_v55 = vmax.f32 %v1069_v43, %v512_v31  ;;  %v1083_v56 = vmax.f32 %v1082_v44, %v513_v32 }
  0xf3   : > { %v517_v40 = vld [vmem:[%s4116_s6 + $0x1f8] sm:$0xff]  ;;  %v4213_v45 = vld [vmem:[%s4116_s6 + $0x200] sm:$0xff]  ;;  %v4219_v51 = vld [vmem:[%s4116_s6 + $0x208] sm:$0xff]  ;;  %v1096_v57 = vmax.f32 %v1095_v47, %v514_v33  ;;  %v1109_v58 = vmax.f32 %v1108_v48, %v515_v38  ;;  %v1122_v59 = vmax.f32 %v1121_v49, %v516_v39  ;;  %v1045_v61 = vrot.slane %v1044_v53, 4 }
  0xf4   : > { %v4216_v46 = vld [vmem:[%s4116_s6 + $0x240] sm:$0xff]  ;;  %v4222_v52 = vld [vmem:[%s4116_s6 + $0x248] sm:$0xff]  ;;  %v1135_v60 = vmax.f32 %v1134_v50, %v517_v40  ;;  %v1058_v62 = vrot.slane %v1057_v54, 4  ;;  %v1071_v63 = vrot.slane %v1070_v55, 4  ;;  %v1084_v1 = vrot.slane %v1083_v56, 4  ;;  %v4229_v25 = vld [vmem:[%s4116_s6 + $0x210] sm:$0xff] }
  0xf5   : > { %v1142_v0 = vmax.f32 %v4213_v45, %v4216_v46  ;;  %v1097_v2 = vrot.slane %v1096_v57, 4  ;;  %v1110_v3 = vrot.slane %v1109_v58, 4  ;;  %v1155_v4 = vmax.f32 %v4219_v51, %v4222_v52  ;;  %v4232_v26 = vld [vmem:[%s4116_s6 + $0x250] sm:$0xff]  ;;  %v4235_v31 = vld [vmem:[%s4116_s6 + $0x218] sm:$0xff]  ;;  %v4238_v32 = vld [vmem:[%s4116_s6 + $0x220] sm:$0xff] }
  0xf6   : > { %v1046_v5 = vmax.f32 %v1044_v53, %v1045_v61  ;;  %v1059_v6 = vmax.f32 %v1057_v54, %v1058_v62  ;;  %v1072_v7 = vmax.f32 %v1070_v55, %v1071_v63  ;;  %v1123_v8 = vrot.slane %v1122_v59, 4  ;;  %v4241_v33 = vld [vmem:[%s4116_s6 + $0x228] sm:$0xff]  ;;  %v529_v34 = vld [vmem:[%s4116_s6 + $0x258] sm:$0xff]  ;;  %v530_v35 = vld [vmem:[%s4116_s6 + $0x260] sm:$0xff] }
  0xf7   : > { %v1085_v9 = vmax.f32 %v1083_v56, %v1084_v1  ;;  %v1098_v10 = vmax.f32 %v1096_v57, %v1097_v2  ;;  %v1111_v11 = vmax.f32 %v1109_v58, %v1110_v3  ;;  %v1136_v12 = vrot.slane %v1135_v60, 4  ;;  %v531_v36 = vld [vmem:[%s4116_s6 + $0x268] sm:$0xff]  ;;  %v4247_v41 = vld [vmem:[%s4116_s6 + $0x230] sm:$0xff]  ;;  %v534_v43 = vld [vmem:[%s4116_s6 + $0x280] sm:$0xff] }
  0xf8   : > { %v1047_v13 = vrot.slane %v1046_v5, 2  ;;  %v1060_v14 = vrot.slane %v1059_v6, 2  ;;  %v1073_v15 = vrot.slane %v1072_v7, 2  ;;  %v1124_v16 = vmax.f32 %v1122_v59, %v1123_v8  ;;  %v4250_v42 = vld [vmem:[%s4116_s6 + $0x270] sm:$0xff]  ;;  %v535_v44 = vld [vmem:[%s4116_s6 + $0x288] sm:$0xff]  ;;  %v525_v54 = vld [vmem:[%s4116_s6 + $0x238] sm:$0xff] }
  0xf9   : > { %v1086_v17 = vrot.slane %v1085_v9, 2  ;;  %v1099_v18 = vrot.slane %v1098_v10, 2  ;;  %v1112_v19 = vrot.slane %v1111_v11, 2  ;;  %v1137_v20 = vmax.f32 %v1135_v60, %v1136_v12  ;;  %v536_v47 = vld [vmem:[%s4116_s6 + $0x290] sm:$0xff]  ;;  %v533_v55 = vld [vmem:[%s4116_s6 + $0x278] sm:$0xff]  ;;  %v538_v57 = vld [vmem:[%s4116_s6 + $0x2a0] sm:$0xff] }
  0xfa   : > { %v1048_v21 = vmax.f32 %v1046_v5, %v1047_v13  ;;  %v1061_v22 = vmax.f32 %v1059_v6, %v1060_v14  ;;  %v1074_v23 = vmax.f32 %v1072_v7, %v1073_v15  ;;  %v1125_v24 = vrot.slane %v1124_v16, 2  ;;  %v537_v56 = vld [vmem:[%s4116_s6 + $0x298] sm:$0xff]  ;;  %v539_v58 = vld [vmem:[%s4116_s6 + $0x2a8] sm:$0xff]  ;;  %v540_v63 = vld [vmem:[%s4116_s6 + $0x2b0] sm:$0xff] }
  0xfb   : > { %v1087_v27 = vmax.f32 %v1085_v9, %v1086_v17  ;;  %v1100_v28 = vmax.f32 %v1098_v10, %v1099_v18  ;;  %v1113_v29 = vmax.f32 %v1111_v11, %v1112_v19  ;;  %v1138_v30 = vrot.slane %v1137_v20, 2  ;;  %v542_v1 = vld [vmem:[%s4116_s6 + $0x2c0] sm:$0xff]  ;;  %v543_v2 = vld [vmem:[%s4116_s6 + $0x2c8] sm:$0xff]  ;;  %v544_v3 = vld [vmem:[%s4116_s6 + $0x2d0] sm:$0xff] }
  0xfc   : > { %v1049_v37 = vrot.slane %v1048_v21, 1  ;;  %v1062_v38 = vrot.slane %v1061_v22, 1  ;;  %v1075_v39 = vrot.slane %v1074_v23, 1  ;;  %v1126_v40 = vmax.f32 %v1124_v16, %v1125_v24  ;;  %v541_v9 = vld [vmem:[%s4116_s6 + $0x2b8] sm:$0xff]  ;;  %v546_v11 = vld [vmem:[%s4116_s6 + $0x2e0] sm:$0xff]  ;;  %v547_v12 = vld [vmem:[%s4116_s6 + $0x2e8] sm:$0xff] }
  0xfd   : > { %v1088_v48 = vrot.slane %v1087_v27, 1  ;;  %v1101_v49 = vrot.slane %v1100_v28, 1  ;;  %v1114_v50 = vrot.slane %v1113_v29, 1  ;;  %v1139_v53 = vmax.f32 %v1137_v20, %v1138_v30  ;;  %v545_v10 = vld [vmem:[%s4116_s6 + $0x2d8] sm:$0xff]  ;;  %v548_v17 = vld [vmem:[%s4116_s6 + $0x2f0] sm:$0xff]  ;;  %v550_v18 = vld [vmem:[%s4116_s6 + $0x300] sm:$0xff] }
  0xfe   : > { %v4260_v59 = vmax.f32 %v1048_v21, %v1049_v37  ;;  %v4262_v60 = vmax.f32 %v1061_v22, %v1062_v38  ;;  %v4264_v61 = vmax.f32 %v1074_v23, %v1075_v39  ;;  %v1127_v62 = vrot.slane %v1126_v40, 1  ;;  %v551_v19 = vld [vmem:[%s4116_s6 + $0x308] sm:$0xff]  ;;  %v552_v20 = vld [vmem:[%s4116_s6 + $0x310] sm:$0xff]  ;;  %v549_v51 = vld [vmem:[%s4116_s6 + $0x2f8] sm:$0xff] }
  0xff   : > { %v4270_v5 = vmax.f32 %v1087_v27, %v1088_v48  ;;  %v4272_v6 = vmax.f32 %v1100_v28, %v1101_v49  ;;  %v4274_v7 = vmax.f32 %v1113_v29, %v1114_v50  ;;  %v1140_v8 = vrot.slane %v1139_v53, 1  ;;  %v553_v52 = vld [vmem:[%s4116_s6 + $0x318] sm:$0xff]  ;;  %v556_v27 = vld [vmem:[%s4116_s6 + $0x330] sm:$0xff]  ;;  %v558_v28 = vld [vmem:[%s4116_s6 + $0x340] sm:$0xff] }
 0x100   : > { %v4280_v13 = vmax.f32 %v1126_v40, %v1127_v62  ;;  %v1143_v14 = vmax.f32 %v1142_v0, %v534_v43  ;;  %v1156_v15 = vmax.f32 %v1155_v4, %v535_v44  ;;  %v1168_v16 = vmax.f32 %v4229_v25, %v4232_v26  ;;  %v554_v0 = vld [vmem:[%s4116_s6 + $0x320] sm:$0xff]  ;;  %v555_v4 = vld [vmem:[%s4116_s6 + $0x328] sm:$0xff]  ;;  %v568_v62 = vld [vmem:[%s4116_s6 + $0x390] sm:$0xff] }
 0x101   : > { %5297 = vst [vmem:[#allocation38_spill] sm:$0xff] %v4272_v6  ;;  %5298 = vst [vmem:[#allocation39_spill] sm:$0xff] %v4274_v7  ;;  %v4294_v21 = vmax.f32 %v1139_v53, %v1140_v8  ;;  %v1181_v22 = vmax.f32 %v4235_v31, %v529_v34  ;;  %v1194_v45 = vmax.f32 %v4238_v32, %v530_v35  ;;  %v559_v29 = vld [vmem:[%s4116_s6 + $0x348] sm:$0xff]  ;;  %v557_v34 = vld [vmem:[%s4116_s6 + $0x338] sm:$0xff] }
 0x102   : > { %5299 = vst [vmem:[#allocation40_spill] sm:$0xff] %v4280_v13  ;;  %v1207_v46 = vmax.f32 %v4241_v33, %v531_v36  ;;  %v1144_v23 = vmax.f32 %v1143_v14, %v542_v1  ;;  %v1157_v24 = vmax.f32 %v1156_v15, %v543_v2  ;;  %v1169_v25 = vmax.f32 %v1168_v16, %v536_v47  ;;  %v560_v35 = vld [vmem:[%s4116_s6 + $0x350] sm:$0xff]  ;;  %v561_v36 = vld [vmem:[%s4116_s6 + $0x358] sm:$0xff]  ;;  %v567_v43 = vld [vmem:[%s4116_s6 + $0x388] sm:$0xff] }
 0x103   : > { %5300 = vst [vmem:[#allocation41_spill] sm:$0xff] %v4294_v21  ;;  %v1220_v26 = vmax.f32 %v4247_v41, %v4250_v42  ;;  %v1182_v30 = vmax.f32 %v1181_v22, %v537_v56  ;;  %v1195_v31 = vmax.f32 %v1194_v45, %v538_v57  ;;  %v1233_v33 = vmax.f32 %v525_v54, %v533_v55  ;;  %v562_v41 = vld [vmem:[%s4116_s6 + $0x360] sm:$0xff]  ;;  %v563_v50 = vld [vmem:[%s4116_s6 + $0x368] sm:$0xff]  ;;  %v564_v53 = vld [vmem:[%s4116_s6 + $0x370] sm:$0xff] }
 0x104   : > { %v1208_v32 = vmax.f32 %v1207_v46, %v539_v58  ;;  %v1145_v37 = vmax.f32 %v1144_v23, %v550_v18  ;;  %v1158_v38 = vmax.f32 %v1157_v24, %v551_v19  ;;  %v1170_v39 = vmax.f32 %v1169_v25, %v544_v3  ;;  %v566_v42 = vld [vmem:[%s4116_s6 + $0x380] sm:$0xff]  ;;  %v565_v54 = vld [vmem:[%s4116_s6 + $0x378] sm:$0xff]  ;;  %v575_v1 = vld [vmem:[%s4116_s6 + $0x3c8] sm:$0xff] }
 0x105   : > { %v1221_v40 = vmax.f32 %v1220_v26, %v540_v63  ;;  %v1183_v44 = vmax.f32 %v1182_v30, %v545_v10  ;;  %v1196_v47 = vmax.f32 %v1195_v31, %v546_v11  ;;  %v1234_v49 = vmax.f32 %v1233_v33, %v541_v9  ;;  %v574_v63 = vld [vmem:[%s4116_s6 + $0x3c0] sm:$0xff]  ;;  %v569_v10 = vld [vmem:[%s4116_s6 + $0x398] sm:$0xff]  ;;  %v572_v18 = vld [vmem:[%s4116_s6 + $0x3b0] sm:$0xff] }
 0x106   : > { %v1209_v48 = vmax.f32 %v1208_v32, %v547_v12  ;;  %v1146_v55 = vmax.f32 %v1145_v37, %v558_v28  ;;  %v1159_v56 = vmax.f32 %v1158_v38, %v559_v29  ;;  %v1171_v57 = vmax.f32 %v1170_v39, %v552_v20  ;;  %v570_v11 = vld [vmem:[%s4116_s6 + $0x3a0] sm:$0xff]  ;;  %v571_v12 = vld [vmem:[%s4116_s6 + $0x3a8] sm:$0xff]  ;;  %v573_v19 = vld [vmem:[%s4116_s6 + $0x3b8] sm:$0xff] }
 0x107   : > { %v1222_v58 = vmax.f32 %v1221_v40, %v548_v17  ;;  %v1184_v2 = vmax.f32 %v1183_v44, %v553_v52  ;;  %v1197_v3 = vmax.f32 %v1196_v47, %v554_v0  ;;  %v1235_v9 = vmax.f32 %v1234_v49, %v549_v51  ;;  %v576_v20 = vld [vmem:[%s4116_s6 + $0x3d0] sm:$0xff]  ;;  %v577_v0 = vld [vmem:[%s4116_s6 + $0x3d8] sm:$0xff]  ;;  %v578_v51 = vld [vmem:[%s4116_s6 + $0x3e0] sm:$0xff] }
 0x108   : > { %v1210_v8 = vmax.f32 %v1209_v48, %v555_v4  ;;  %v1147_v14 = vmax.f32 %v1146_v55, %v566_v42  ;;  %v1160_v15 = vmax.f32 %v1159_v56, %v567_v43  ;;  %v1172_v16 = vmax.f32 %v1171_v57, %v560_v35  ;;  %v579_v4 = vld [vmem:[%s4116_s6 + $0x3e8] sm:$0xff]  ;;  %v580_v28 = vld [vmem:[%s4116_s6 + $0x3f0] sm:$0xff]  ;;  %v581_v32 = vld [vmem:[%s4116_s6 + $0x3f8] sm:$0xff] }
 0x109   : > { %v1223_v17 = vmax.f32 %v1222_v58, %v556_v27  ;;  %v1185_v22 = vmax.f32 %v1184_v2, %v561_v36  ;;  %v1198_v45 = vmax.f32 %v1197_v3, %v562_v41  ;;  %v1236_v52 = vmax.f32 %v1235_v9, %v557_v34  ;;  %v695_v21 = vld [vmem:[%s4116_s6 + $0x788] sm:$0xff] }
 0x10a   : > { %v1211_v46 = vmax.f32 %v1210_v8, %v563_v50  ;;  %v1148_v23 = vmax.f32 %v1147_v14, %v574_v63  ;;  %v1161_v24 = vmax.f32 %v1160_v15, %v575_v1  ;;  %v1173_v25 = vmax.f32 %v1172_v16, %v568_v62  ;;  %v582_v14 = vld [vmem:[%s4116_s6 + $0x400] sm:$0xff]  ;;  %v583_v15 = vld [vmem:[%s4116_s6 + $0x408] sm:$0xff] }
 0x10b   : > { %v1224_v26 = vmax.f32 %v1223_v17, %v564_v53  ;;  %v1186_v29 = vmax.f32 %v1185_v22, %v569_v10  ;;  %v1199_v30 = vmax.f32 %v1198_v45, %v570_v11  ;;  %v1237_v27 = vmax.f32 %v1236_v52, %v565_v54  ;;  %v590_v22 = vld [vmem:[%s4116_s6 + $0x440] sm:$0xff]  ;;  %v591_v45 = vld [vmem:[%s4116_s6 + $0x448] sm:$0xff] }
 0x10c   : > { %v1212_v31 = vmax.f32 %v1211_v46, %v571_v12  ;;  %v1149_v33 = vrot.slane %v1148_v23, 4  ;;  %v1162_v35 = vrot.slane %v1161_v24, 4  ;;  %v1174_v36 = vmax.f32 %v1173_v25, %v576_v20  ;;  %v4334_v20 = vld [vmem:[%s4116_s6 + $0x410] sm:$0xff]  ;;  %v4348_v25 = vld [vmem:[%s4116_s6 + $0x428] sm:$0xff] }
 0x10d   : > { %v1225_v37 = vmax.f32 %v1224_v26, %v572_v18  ;;  %v1187_v38 = vmax.f32 %v1186_v29, %v577_v0  ;;  %v1200_v39 = vmax.f32 %v1199_v30, %v578_v51  ;;  %v1238_v40 = vmax.f32 %v1237_v27, %v573_v19  ;;  %v4339_v46 = vld [vmem:[%s4116_s6 + $0x450] sm:$0xff]  ;;  %v593_v26 = vld [vmem:[%s4116_s6 + $0x458] sm:$0xff]  ;;  %v595_v29 = vld [vmem:[%s4116_s6 + $0x468] sm:$0xff] }
 0x10e   : > { %v1213_v34 = vmax.f32 %v1212_v31, %v579_v4  ;;  %v1150_v41 = vmax.f32 %v1148_v23, %v1149_v33  ;;  %v1163_v42 = vmax.f32 %v1161_v24, %v1162_v35  ;;  %v1175_v43 = vrot.slane %v1174_v36, 4  ;;  %v4342_v23 = vld [vmem:[%s4116_s6 + $0x418] sm:$0xff]  ;;  %v4345_v24 = vld [vmem:[%s4116_s6 + $0x420] sm:$0xff]  ;;  %v4358_v33 = vld [vmem:[%s4116_s6 + $0x430] sm:$0xff] }
 0x10f   : > { %v1226_v44 = vmax.f32 %v1225_v37, %v580_v28  ;;  %v1188_v47 = vrot.slane %v1187_v38, 4  ;;  %v1201_v48 = vrot.slane %v1200_v39, 4  ;;  %v1239_v50 = vmax.f32 %v1238_v40, %v581_v32  ;;  %v594_v28 = vld [vmem:[%s4116_s6 + $0x460] sm:$0xff]  ;;  %v4361_v35 = vld [vmem:[%s4116_s6 + $0x470] sm:$0xff]  ;;  %v599_v37 = vld [vmem:[%s4116_s6 + $0x488] sm:$0xff] }
 0x110   : > { %v1214_v49 = vrot.slane %v1213_v34, 4  ;;  %v1151_v53 = vrot.slane %v1150_v41, 2  ;;  %v1164_v54 = vrot.slane %v1163_v42, 2  ;;  %v1176_v55 = vmax.f32 %v1174_v36, %v1175_v43  ;;  %v598_v36 = vld [vmem:[%s4116_s6 + $0x480] sm:$0xff]  ;;  %v597_v43 = vld [vmem:[%s4116_s6 + $0x478] sm:$0xff] }
 0x111   : > { %v1227_v56 = vrot.slane %v1226_v44, 4  ;;  %v1189_v57 = vmax.f32 %v1187_v38, %v1188_v47  ;;  %v1202_v58 = vmax.f32 %v1200_v39, %v1201_v48  ;;  %v1240_v63 = vrot.slane %v1239_v50, 4  ;;  %v600_v38 = vld [vmem:[%s4116_s6 + $0x490] sm:$0xff]  ;;  %v602_v47 = vld [vmem:[%s4116_s6 + $0x4a0] sm:$0xff]  ;;  %v603_v48 = vld [vmem:[%s4116_s6 + $0x4a8] sm:$0xff] }
 0x112   : > { %v1215_v62 = vmax.f32 %v1213_v34, %v1214_v49  ;;  %v1152_v1 = vmax.f32 %v1150_v41, %v1151_v53  ;;  %v1165_v2 = vmax.f32 %v1163_v42, %v1164_v54  ;;  %v1177_v3 = vrot.slane %v1176_v55, 2  ;;  %v589_v42 = vld [vmem:[%s4116_s6 + $0x438] sm:$0xff] }
 0x113   : > { %v1228_v8 = vmax.f32 %v1226_v44, %v1227_v56  ;;  %v1190_v9 = vrot.slane %v1189_v57, 2  ;;  %v1203_v10 = vrot.slane %v1202_v58, 2  ;;  %v1241_v12 = vmax.f32 %v1239_v50, %v1240_v63  ;;  %v601_v44 = vld [vmem:[%s4116_s6 + $0x498] sm:$0xff]  ;;  %v606_v56 = vld [vmem:[%s4116_s6 + $0x4c0] sm:$0xff] }
 0x114   : > { %v1216_v11 = vrot.slane %v1215_v62, 2  ;;  %v1153_v16 = vrot.slane %v1152_v1, 1  ;;  %v1166_v17 = vrot.slane %v1165_v2, 1  ;;  %v1178_v18 = vmax.f32 %v1176_v55, %v1177_v3  ;;  %v604_v55 = vld [vmem:[%s4116_s6 + $0x4b0] sm:$0xff]  ;;  %v605_v3 = vld [vmem:[%s4116_s6 + $0x4b8] sm:$0xff] }
 0x115   : > { %v1229_v19 = vrot.slane %v1228_v8, 2  ;;  %v1191_v52 = vmax.f32 %v1189_v57, %v1190_v9  ;;  %v1204_v0 = vmax.f32 %v1202_v58, %v1203_v10  ;;  %v1242_v4 = vrot.slane %v1241_v12, 2  ;;  %v607_v57 = vld [vmem:[%s4116_s6 + $0x4c8] sm:$0xff]  ;;  %v608_v58 = vld [vmem:[%s4116_s6 + $0x4d0] sm:$0xff]  ;;  %v610_v9 = vld [vmem:[%s4116_s6 + $0x4e0] sm:$0xff] }
 0x116   : > { %v1217_v51 = vmax.f32 %v1215_v62, %v1216_v11  ;;  %v4353_v30 = vmax.f32 %v1152_v1, %v1153_v16  ;;  %v4355_v31 = vmax.f32 %v1165_v2, %v1166_v17  ;;  %v1179_v27 = vrot.slane %v1178_v18, 1  ;;  %v611_v10 = vld [vmem:[%s4116_s6 + $0x4e8] sm:$0xff]  ;;  %v612_v16 = vld [vmem:[%s4116_s6 + $0x4f0] sm:$0xff]  ;;  %v614_v17 = vld [vmem:[%s4116_s6 + $0x500] sm:$0xff] }
 0x117   : > { %v1230_v32 = vmax.f32 %v1228_v8, %v1229_v19  ;;  %v1192_v39 = vrot.slane %v1191_v52, 1  ;;  %v1205_v34 = vrot.slane %v1204_v0, 1  ;;  %v1243_v41 = vmax.f32 %v1241_v12, %v1242_v4  ;;  %v609_v8 = vld [vmem:[%s4116_s6 + $0x4d8] sm:$0xff]  ;;  %v616_v19 = vld [vmem:[%s4116_s6 + $0x510] sm:$0xff] }
 0x118   : > { %v1218_v40 = vrot.slane %v1217_v51, 1  ;;  %v4371_v49 = vmax.f32 %v1178_v18, %v1179_v27  ;;  %v1246_v53 = vmax.f32 %v582_v14, %v590_v22  ;;  %v1259_v54 = vmax.f32 %v583_v15, %v591_v45  ;;  %v615_v18 = vld [vmem:[%s4116_s6 + $0x508] sm:$0xff]  ;;  %v617_v4 = vld [vmem:[%s4116_s6 + $0x518] sm:$0xff] }
 0x119   : > { %v1231_v50 = vrot.slane %v1230_v32, 1  ;;  %v4377_v62 = vmax.f32 %v1191_v52, %v1192_v39  ;;  %v4379_v63 = vmax.f32 %v1204_v0, %v1205_v34  ;;  %v1244_v2 = vrot.slane %v1243_v41, 1  ;;  %v621_v34 = vld [vmem:[%s4116_s6 + $0x538] sm:$0xff] }
 0x11a   : > { %v4381_v1 = vmax.f32 %v1217_v51, %v1218_v40  ;;  %v1247_v12 = vmax.f32 %v1246_v53, %v598_v36  ;;  %v1260_v14 = vmax.f32 %v1259_v54, %v599_v37  ;;  %v1272_v15 = vmax.f32 %v4334_v20, %v4339_v46  ;;  %v613_v51 = vld [vmem:[%s4116_s6 + $0x4f8] sm:$0xff]  ;;  %v618_v20 = vld [vmem:[%s4116_s6 + $0x520] sm:$0xff]  ;;  %v619_v46 = vld [vmem:[%s4116_s6 + $0x528] sm:$0xff] }
 0x11b   : > { %5301 = vst [vmem:[#allocation42_spill] sm:$0xff] %v4379_v63  ;;  %v4387_v11 = vmax.f32 %v1230_v32, %v1231_v50  ;;  %v4395_v22 = vmax.f32 %v1243_v41, %v1244_v2  ;;  %v1285_v45 = vmax.f32 %v4342_v23, %v593_v26  ;;  %v1298_v52 = vmax.f32 %v4345_v24, %v594_v28  ;;  %v620_v23 = vld [vmem:[%s4116_s6 + $0x530] sm:$0xff]  ;;  %v622_v24 = vld [vmem:[%s4116_s6 + $0x540] sm:$0xff]  ;;  %v623_v26 = vld [vmem:[%s4116_s6 + $0x548] sm:$0xff] }
 0x11c   : > { %5302 = vst [vmem:[#allocation43_spill] sm:$0xff] %v4381_v1  ;;  %v1311_v0 = vmax.f32 %v4348_v25, %v595_v29  ;;  %v1248_v27 = vmax.f32 %v1247_v12, %v606_v56  ;;  %v1261_v32 = vmax.f32 %v1260_v14, %v607_v57  ;;  %v1273_v36 = vmax.f32 %v1272_v15, %v600_v38  ;;  %v624_v40 = vld [vmem:[%s4116_s6 + $0x550] sm:$0xff]  ;;  %v625_v41 = vld [vmem:[%s4116_s6 + $0x558] sm:$0xff]  ;;  %v630_v54 = vld [vmem:[%s4116_s6 + $0x580] sm:$0xff] }
 0x11d   : > { %5303 = vst [vmem:[#allocation44_spill] sm:$0xff] %v4387_v11  ;;  %5304 = vst [vmem:[#allocation45_spill] sm:$0xff] %v4395_v22  ;;  %v1324_v37 = vmax.f32 %v4358_v33, %v4361_v35  ;;  %v1286_v25 = vmax.f32 %v1285_v45, %v601_v44  ;;  %v1299_v28 = vmax.f32 %v1298_v52, %v602_v47  ;;  %v626_v35 = vld [vmem:[%s4116_s6 + $0x560] sm:$0xff]  ;;  %v631_v56 = vld [vmem:[%s4116_s6 + $0x588] sm:$0xff] }
 0x11e   : > { %v1312_v29 = vmax.f32 %v1311_v0, %v603_v48  ;;  %v1337_v39 = vmax.f32 %v589_v42, %v597_v43  ;;  %v1249_v38 = vmax.f32 %v1248_v27, %v614_v17  ;;  %v1262_v50 = vmax.f32 %v1261_v32, %v615_v18  ;;  %v627_v43 = vld [vmem:[%s4116_s6 + $0x568] sm:$0xff]  ;;  %v628_v57 = vld [vmem:[%s4116_s6 + $0x570] sm:$0xff]  ;;  %v629_v2 = vld [vmem:[%s4116_s6 + $0x578] sm:$0xff] }
 0x11f   : > { %v1274_v53 = vmax.f32 %v1273_v36, %v608_v58  ;;  %v1325_v33 = vmax.f32 %v1324_v37, %v604_v55  ;;  %v1287_v44 = vmax.f32 %v1286_v25, %v609_v8  ;;  %v1300_v47 = vmax.f32 %v1299_v28, %v610_v9  ;;  %v632_v15 = vld [vmem:[%s4116_s6 + $0x590] sm:$0xff]  ;;  %v638_v17 = vld [vmem:[%s4116_s6 + $0x5c0] sm:$0xff]  ;;  %v639_v18 = vld [vmem:[%s4116_s6 + $0x5c8] sm:$0xff] }
 0x120   : > { %v1313_v48 = vmax.f32 %v1312_v29, %v611_v10  ;;  %v1338_v42 = vmax.f32 %v1337_v39, %v605_v3  ;;  %v1250_v12 = vmax.f32 %v1249_v38, %v622_v24  ;;  %v1263_v14 = vmax.f32 %v1262_v50, %v623_v26  ;;  %v633_v45 = vld [vmem:[%s4116_s6 + $0x598] sm:$0xff]  ;;  %v634_v52 = vld [vmem:[%s4116_s6 + $0x5a0] sm:$0xff]  ;;  %v635_v0 = vld [vmem:[%s4116_s6 + $0x5a8] sm:$0xff] }
 0x121   : > { %v1275_v58 = vmax.f32 %v1274_v53, %v616_v19  ;;  %v1326_v55 = vmax.f32 %v1325_v33, %v612_v16  ;;  %v1288_v8 = vmax.f32 %v1287_v44, %v617_v4  ;;  %v1301_v9 = vmax.f32 %v1300_v47, %v618_v20  ;;  %v636_v36 = vld [vmem:[%s4116_s6 + $0x5b0] sm:$0xff]  ;;  %v637_v37 = vld [vmem:[%s4116_s6 + $0x5b8] sm:$0xff]  ;;  %v643_v28 = vld [vmem:[%s4116_s6 + $0x5e8] sm:$0xff] }
 0x122   : > { %v1314_v10 = vmax.f32 %v1313_v48, %v619_v46  ;;  %v1339_v3 = vmax.f32 %v1338_v42, %v613_v51  ;;  %v1251_v27 = vmax.f32 %v1250_v12, %v630_v54  ;;  %v1264_v32 = vmax.f32 %v1263_v14, %v631_v56  ;;  %v640_v24 = vld [vmem:[%s4116_s6 + $0x5d0] sm:$0xff]  ;;  %v641_v25 = vld [vmem:[%s4116_s6 + $0x5d8] sm:$0xff]  ;;  %v642_v51 = vld [vmem:[%s4116_s6 + $0x5e0] sm:$0xff] }
 0x123   : > { %v1276_v19 = vmax.f32 %v1275_v58, %v624_v40  ;;  %v1327_v16 = vmax.f32 %v1326_v55, %v620_v23  ;;  %v1289_v26 = vmax.f32 %v1288_v8, %v625_v41  ;;  %v1302_v4 = vmax.f32 %v1301_v9, %v626_v35  ;;  %v644_v53 = vld [vmem:[%s4116_s6 + $0x5f0] sm:$0xff]  ;;  %v645_v56 = vld [vmem:[%s4116_s6 + $0x5f8] sm:$0xff] }
 0x124   : > { %v1315_v20 = vmax.f32 %v1314_v10, %v627_v43  ;;  %v1340_v46 = vmax.f32 %v1339_v3, %v621_v34  ;;  %v1252_v29 = vmax.f32 %v1251_v27, %v638_v17  ;;  %v1265_v39 = vmax.f32 %v1264_v32, %v639_v18 }
 0x125   : > { %v1277_v38 = vmax.f32 %v1276_v19, %v632_v15  ;;  %v1328_v50 = vmax.f32 %v1327_v16, %v628_v57  ;;  %v1290_v33 = vmax.f32 %v1289_v26, %v633_v45  ;;  %v1303_v40 = vmax.f32 %v1302_v4, %v634_v52  ;;  %v646_v4 = vld [vmem:[%s4116_s6 + $0x600] sm:$0xff] }
 0x126   : > { %v1316_v54 = vmax.f32 %v1315_v20, %v635_v0  ;;  %v1341_v23 = vmax.f32 %v1340_v46, %v629_v2  ;;  %v1253_v44 = vrot.slane %v1252_v29, 4  ;;  %v1266_v47 = vrot.slane %v1265_v39, 4  ;;  %v647_v20 = vld [vmem:[%s4116_s6 + $0x608] sm:$0xff] }
 0x127   : > { %v1278_v41 = vmax.f32 %v1277_v38, %v640_v24  ;;  %v1329_v48 = vmax.f32 %v1328_v50, %v636_v36  ;;  %v1291_v35 = vmax.f32 %v1290_v33, %v641_v25  ;;  %v1304_v42 = vmax.f32 %v1303_v40, %v642_v51  ;;  %v655_v38 = vld [vmem:[%s4116_s6 + $0x648] sm:$0xff]  ;;  %v4440_v50 = vld [vmem:[%s4116_s6 + $0x650] sm:$0xff] }
 0x128   : > { %v1317_v34 = vmax.f32 %v1316_v54, %v643_v28  ;;  %v1342_v43 = vmax.f32 %v1341_v23, %v637_v37  ;;  %v1254_v12 = vmax.f32 %v1252_v29, %v1253_v44  ;;  %v1267_v14 = vmax.f32 %v1265_v39, %v1266_v47  ;;  %v4435_v29 = vld [vmem:[%s4116_s6 + $0x610] sm:$0xff]  ;;  %v654_v39 = vld [vmem:[%s4116_s6 + $0x640] sm:$0xff]  ;;  %v4443_v23 = vld [vmem:[%s4116_s6 + $0x618] sm:$0xff] }
 0x129   : > { %v1279_v58 = vrot.slane %v1278_v41, 4  ;;  %v1330_v55 = vmax.f32 %v1329_v48, %v644_v53  ;;  %v1292_v15 = vrot.slane %v1291_v35, 4  ;;  %v1305_v57 = vrot.slane %v1304_v42, 4  ;;  %v4449_v44 = vld [vmem:[%s4116_s6 + $0x628] sm:$0xff]  ;;  %v657_v47 = vld [vmem:[%s4116_s6 + $0x658] sm:$0xff] }
 0x12a   : > { %v1318_v17 = vrot.slane %v1317_v34, 4  ;;  %v1343_v18 = vmax.f32 %v1342_v43, %v645_v56  ;;  %v1255_v8 = vrot.slane %v1254_v12, 2  ;;  %v1268_v2 = vrot.slane %v1267_v14, 2  ;;  %v4446_v56 = vld [vmem:[%s4116_s6 + $0x620] sm:$0xff]  ;;  %v659_v48 = vld [vmem:[%s4116_s6 + $0x668] sm:$0xff] }
 0x12b   : > { %v1280_v9 = vmax.f32 %v1278_v41, %v1279_v58  ;;  %v1331_v10 = vrot.slane %v1330_v55, 4  ;;  %v1293_v3 = vmax.f32 %v1291_v35, %v1292_v15  ;;  %v1306_v45 = vmax.f32 %v1304_v42, %v1305_v57  ;;  %v658_v41 = vld [vmem:[%s4116_s6 + $0x660] sm:$0xff]  ;;  %v664_v15 = vld [vmem:[%s4116_s6 + $0x690] sm:$0xff] }
 0x12c   : > { %v1319_v52 = vmax.f32 %v1317_v34, %v1318_v17  ;;  %v1344_v0 = vrot.slane %v1343_v18, 4  ;;  %v1256_v27 = vmax.f32 %v1254_v12, %v1255_v8  ;;  %v1269_v32 = vmax.f32 %v1267_v14, %v1268_v2  ;;  %v4459_v12 = vld [vmem:[%s4116_s6 + $0x630] sm:$0xff]  ;;  %v662_v58 = vld [vmem:[%s4116_s6 + $0x680] sm:$0xff]  ;;  %v653_v2 = vld [vmem:[%s4116_s6 + $0x638] sm:$0xff] }
 0x12d   : > { %v1281_v19 = vrot.slane %v1280_v9, 2  ;;  %v1332_v16 = vmax.f32 %v1330_v55, %v1331_v10  ;;  %v1294_v36 = vrot.slane %v1293_v3, 2  ;;  %v1307_v37 = vrot.slane %v1306_v45, 2  ;;  %v4462_v14 = vld [vmem:[%s4116_s6 + $0x670] sm:$0xff]  ;;  %v663_v55 = vld [vmem:[%s4116_s6 + $0x688] sm:$0xff]  ;;  %v665_v10 = vld [vmem:[%s4116_s6 + $0x698] sm:$0xff] }
 0x12e   : > { %v1320_v24 = vrot.slane %v1319_v52, 2  ;;  %v1345_v26 = vmax.f32 %v1343_v18, %v1344_v0  ;;  %v1257_v46 = vrot.slane %v1256_v27, 1  ;;  %v1270_v25 = vrot.slane %v1269_v32, 1 }
 0x12f   : > { %v1282_v51 = vmax.f32 %v1280_v9, %v1281_v19  ;;  %v1333_v28 = vrot.slane %v1332_v16, 2  ;;  %v1295_v53 = vmax.f32 %v1293_v3, %v1294_v36  ;;  %v1308_v33 = vmax.f32 %v1306_v45, %v1307_v37  ;;  %v661_v9 = vld [vmem:[%s4116_s6 + $0x678] sm:$0xff]  ;;  %v666_v3 = vld [vmem:[%s4116_s6 + $0x6a0] sm:$0xff]  ;;  %v667_v45 = vld [vmem:[%s4116_s6 + $0x6a8] sm:$0xff] }
 0x130   : > { %v1321_v40 = vmax.f32 %v1319_v52, %v1320_v24  ;;  %v1346_v54 = vrot.slane %v1345_v26, 2  ;;  %v4454_v35 = vmax.f32 %v1256_v27, %v1257_v46  ;;  %v4456_v42 = vmax.f32 %v1269_v32, %v1270_v25  ;;  %v668_v19 = vld [vmem:[%s4116_s6 + $0x6b0] sm:$0xff]  ;;  %v671_v36 = vld [vmem:[%s4116_s6 + $0x6c8] sm:$0xff] }
 0x131   : > { %v1283_v34 = vrot.slane %v1282_v51, 1  ;;  %v1334_v43 = vmax.f32 %v1332_v16, %v1333_v28  ;;  %v1296_v57 = vrot.slane %v1295_v53, 1  ;;  %v1309_v17 = vrot.slane %v1308_v33, 1  ;;  %v670_v16 = vld [vmem:[%s4116_s6 + $0x6c0] sm:$0xff]  ;;  %v672_v37 = vld [vmem:[%s4116_s6 + $0x6d0] sm:$0xff]  ;;  %v673_v28 = vld [vmem:[%s4116_s6 + $0x6d8] sm:$0xff] }
 0x132   : > { %v1322_v18 = vrot.slane %v1321_v40, 1  ;;  %v1347_v8 = vmax.f32 %v1345_v26, %v1346_v54  ;;  %v1350_v27 = vmax.f32 %v646_v4, %v654_v39  ;;  %v1363_v32 = vmax.f32 %v647_v20, %v655_v38  ;;  %v674_v4 = vld [vmem:[%s4116_s6 + $0x6e0] sm:$0xff]  ;;  %v675_v20 = vld [vmem:[%s4116_s6 + $0x6e8] sm:$0xff] }
 0x133   : > { %v4472_v52 = vmax.f32 %v1282_v51, %v1283_v34  ;;  %v1335_v0 = vrot.slane %v1334_v43, 1  ;;  %v4478_v24 = vmax.f32 %v1295_v53, %v1296_v57  ;;  %v4480_v26 = vmax.f32 %v1308_v33, %v1309_v17  ;;  %v669_v51 = vld [vmem:[%s4116_s6 + $0x6b8] sm:$0xff]  ;;  %v676_v33 = vld [vmem:[%s4116_s6 + $0x6f0] sm:$0xff]  ;;  %v679_v34 = vld [vmem:[%s4116_s6 + $0x708] sm:$0xff] }
 0x134   : > { %v4482_v46 = vmax.f32 %v1321_v40, %v1322_v18  ;;  %v1348_v25 = vrot.slane %v1347_v8, 1  ;;  %v1351_v38 = vmax.f32 %v1350_v27, %v662_v58  ;;  %v1364_v54 = vmax.f32 %v1363_v32, %v663_v55  ;;  %v678_v40 = vld [vmem:[%s4116_s6 + $0x700] sm:$0xff]  ;;  %v680_v57 = vld [vmem:[%s4116_s6 + $0x710] sm:$0xff]  ;;  %v677_v58 = vld [vmem:[%s4116_s6 + $0x6f8] sm:$0xff] }
 0x135   : > { %5305 = vst [vmem:[#allocation46_spill] sm:$0xff] %v4480_v26  ;;  %v4488_v39 = vmax.f32 %v1334_v43, %v1335_v0  ;;  %v1376_v53 = vmax.f32 %v4435_v29, %v4440_v50  ;;  %v1389_v18 = vmax.f32 %v4443_v23, %v657_v47  ;;  %v1402_v22 = vmax.f32 %v4446_v56, %v658_v41  ;;  %v681_v55 = vld [vmem:[%s4116_s6 + $0x718] sm:$0xff]  ;;  %v682_v29 = vld [vmem:[%s4116_s6 + $0x720] sm:$0xff]  ;;  %v683_v50 = vld [vmem:[%s4116_s6 + $0x728] sm:$0xff] }
 0x136   : > { %5306 = vst [vmem:[#allocation47_spill] sm:$0xff] %v4482_v46  ;;  %v4496_v17 = vmax.f32 %v1347_v8, %v1348_v25  ;;  %v1415_v43 = vmax.f32 %v4449_v44, %v659_v48  ;;  %v1352_v0 = vmax.f32 %v1351_v38, %v670_v16  ;;  %v1365_v27 = vmax.f32 %v1364_v54, %v671_v36  ;;  %v684_v23 = vld [vmem:[%s4116_s6 + $0x730] sm:$0xff]  ;;  %v686_v56 = vld [vmem:[%s4116_s6 + $0x740] sm:$0xff]  ;;  %v687_v47 = vld [vmem:[%s4116_s6 + $0x748] sm:$0xff] }
 0x137   : > { %5307 = vst [vmem:[#allocation48_spill] sm:$0xff] %v4488_v39  ;;  %v1377_v32 = vmax.f32 %v1376_v53, %v664_v15  ;;  %v1428_v8 = vmax.f32 %v4459_v12, %v4462_v14  ;;  %v1390_v44 = vmax.f32 %v1389_v18, %v665_v10  ;;  %v1403_v41 = vmax.f32 %v1402_v22, %v666_v3  ;;  %v688_v16 = vld [vmem:[%s4116_s6 + $0x750] sm:$0xff]  ;;  %v689_v36 = vld [vmem:[%s4116_s6 + $0x758] sm:$0xff]  ;;  %v690_v14 = vld [vmem:[%s4116_s6 + $0x760] sm:$0xff] }
 0x138   : > { %5308 = vst [vmem:[#allocation49_spill] sm:$0xff] %v4496_v17  ;;  %v1416_v48 = vmax.f32 %v1415_v43, %v667_v45  ;;  %v1441_v25 = vmax.f32 %v653_v2, %v661_v9  ;;  %v685_v17 = vld [vmem:[%s4116_s6 + $0x738] sm:$0xff]  ;;  %v1353_v15 = vmax.f32 %v1352_v0, %v678_v40  ;;  %v1366_v38 = vmax.f32 %v1365_v27, %v679_v34  ;;  %v694_v53 = vld [vmem:[%s4116_s6 + $0x780] sm:$0xff]  ;;  %v691_v9 = vld [vmem:[%s4116_s6 + $0x768] sm:$0xff] }
 0x139   : > { %v1378_v54 = vmax.f32 %v1377_v32, %v672_v37  ;;  %v1429_v12 = vmax.f32 %v1428_v8, %v668_v19  ;;  %v1391_v10 = vmax.f32 %v1390_v44, %v673_v28  ;;  %v1404_v22 = vmax.f32 %v1403_v41, %v674_v4  ;;  %v692_v45 = vld [vmem:[%s4116_s6 + $0x770] sm:$0xff]  ;;  %v693_v18 = vld [vmem:[%s4116_s6 + $0x778] sm:$0xff]  ;;  %v702_v0 = vld [vmem:[%s4116_s6 + $0x7c0] sm:$0xff] }
 0x13a   : > { %v1417_v3 = vmax.f32 %v1416_v48, %v675_v20  ;;  %v1442_v2 = vmax.f32 %v1441_v25, %v669_v51  ;;  %v1354_v40 = vmax.f32 %v1353_v15, %v686_v56  ;;  %v1367_v34 = vmax.f32 %v1366_v38, %v687_v47  ;;  %v696_v43 = vld [vmem:[%s4116_s6 + $0x790] sm:$0xff]  ;;  %v703_v27 = vld [vmem:[%s4116_s6 + $0x7c8] sm:$0xff]  ;;  %v697_v32 = vld [vmem:[%s4116_s6 + $0x798] sm:$0xff] }
 0x13b   : > { %v1379_v37 = vmax.f32 %v1378_v54, %v680_v57  ;;  %v1430_v19 = vmax.f32 %v1429_v12, %v676_v33  ;;  %v1392_v28 = vmax.f32 %v1391_v10, %v681_v55  ;;  %v1405_v4 = vmax.f32 %v1404_v22, %v682_v29  ;;  %v698_v8 = vld [vmem:[%s4116_s6 + $0x7a0] sm:$0xff]  ;;  %v699_v44 = vld [vmem:[%s4116_s6 + $0x7a8] sm:$0xff]  ;;  %v700_v41 = vld [vmem:[%s4116_s6 + $0x7b0] sm:$0xff] }
 0x13c   : > { %v1418_v20 = vmax.f32 %v1417_v3, %v683_v50  ;;  %v1443_v51 = vmax.f32 %v1442_v2, %v677_v58  ;;  %v1355_v56 = vmax.f32 %v1354_v40, %v694_v53  ;;  %v1368_v47 = vmax.f32 %v1367_v34, %v695_v21  ;;  %v701_v48 = vld [vmem:[%s4116_s6 + $0x7b8] sm:$0xff]  ;;  %v704_v25 = vld [vmem:[%s4116_s6 + $0x7d0] sm:$0xff]  ;;  %v706_v58 = vld [vmem:[%s4116_s6 + $0x7e0] sm:$0xff] }
 0x13d   : > { %v1380_v57 = vmax.f32 %v1379_v37, %v688_v16  ;;  %v1431_v33 = vmax.f32 %v1430_v19, %v684_v23  ;;  %v1393_v15 = vmax.f32 %v1392_v28, %v689_v36  ;;  %v1406_v55 = vmax.f32 %v1405_v4, %v690_v14  ;;  %v705_v38 = vld [vmem:[%s4116_s6 + $0x7d8] sm:$0xff]  ;;  %v707_v54 = vld [vmem:[%s4116_s6 + $0x7e8] sm:$0xff]  ;;  %v708_v53 = vld [vmem:[%s4116_s6 + $0x7f0] sm:$0xff] }
 0x13e   : > { %v1419_v29 = vmax.f32 %v1418_v20, %v691_v9  ;;  %v1444_v50 = vmax.f32 %v1443_v51, %v685_v17  ;;  %v1356_v12 = vmax.f32 %v1355_v56, %v702_v0  ;;  %v1369_v10 = vmax.f32 %v1368_v47, %v703_v27  ;;  %v709_v40 = vld [vmem:[%s4116_s6 + $0x7f8] sm:$0xff] }
 0x13f   : > { %v1381_v22 = vmax.f32 %v1380_v57, %v696_v43  ;;  %v1432_v3 = vmax.f32 %v1431_v33, %v692_v45  ;;  %v1394_v21 = vmax.f32 %v1393_v15, %v697_v32  ;;  %v1407_v16 = vmax.f32 %v1406_v55, %v698_v8 }
 0x140   : > { %v1420_v2 = vmax.f32 %v1419_v29, %v699_v44  ;;  %v1445_v23 = vmax.f32 %v1444_v50, %v693_v18  ;;  %v1357_v34 = vrot.slane %v1356_v12, 4  ;;  %v1370_v37 = vrot.slane %v1369_v10, 4 }
 0x141   : > { %v1382_v36 = vmax.f32 %v1381_v22, %v704_v25  ;;  %v1433_v19 = vmax.f32 %v1432_v3, %v700_v41  ;;  %v1395_v14 = vmax.f32 %v1394_v21, %v705_v38  ;;  %v1408_v9 = vmax.f32 %v1407_v16, %v706_v58  ;;  %v4536_v21 = vld [vmem:[%s4116_s6 + $0x810] sm:$0xff]  ;;  %v718_v16 = vld [vmem:[%s4116_s6 + $0x840] sm:$0xff] }
 0x142   : > { %v1421_v17 = vmax.f32 %v1420_v2, %v707_v54  ;;  %v1446_v28 = vmax.f32 %v1445_v23, %v701_v48  ;;  %v1358_v4 = vmax.f32 %v1356_v12, %v1357_v34  ;;  %v1371_v20 = vmax.f32 %v1369_v10, %v1370_v37  ;;  %v710_v54 = vld [vmem:[%s4116_s6 + $0x800] sm:$0xff]  ;;  %v711_v12 = vld [vmem:[%s4116_s6 + $0x808] sm:$0xff]  ;;  %v4541_v23 = vld [vmem:[%s4116_s6 + $0x850] sm:$0xff] }
 0x143   : > { %v1383_v0 = vrot.slane %v1382_v36, 4  ;;  %v1434_v27 = vmax.f32 %v1433_v19, %v708_v53  ;;  %v1396_v43 = vrot.slane %v1395_v14, 4  ;;  %v1409_v45 = vrot.slane %v1408_v9, 4  ;;  %v719_v2 = vld [vmem:[%s4116_s6 + $0x848] sm:$0xff]  ;;  %v4544_v19 = vld [vmem:[%s4116_s6 + $0x818] sm:$0xff] }
 0x144   : > { %v1422_v51 = vrot.slane %v1421_v17, 4  ;;  %v1447_v32 = vmax.f32 %v1446_v28, %v709_v40  ;;  %v1359_v8 = vrot.slane %v1358_v4, 2  ;;  %v1372_v18 = vrot.slane %v1371_v20, 2  ;;  %v722_v28 = vld [vmem:[%s4116_s6 + $0x860] sm:$0xff] }
 0x145   : > { %v1384_v44 = vmax.f32 %v1382_v36, %v1383_v0  ;;  %v1435_v56 = vrot.slane %v1434_v27, 4  ;;  %v1397_v47 = vmax.f32 %v1395_v14, %v1396_v43  ;;  %v1410_v57 = vmax.f32 %v1408_v9, %v1409_v45  ;;  %v4547_v14 = vld [vmem:[%s4116_s6 + $0x820] sm:$0xff]  ;;  %v4550_v9 = vld [vmem:[%s4116_s6 + $0x828] sm:$0xff]  ;;  %v4560_v45 = vld [vmem:[%s4116_s6 + $0x830] sm:$0xff] }
 0x146   : > { %v1423_v33 = vmax.f32 %v1421_v17, %v1422_v51  ;;  %v1448_v41 = vrot.slane %v1447_v32, 4  ;;  %v1360_v48 = vmax.f32 %v1358_v4, %v1359_v8  ;;  %v1373_v25 = vmax.f32 %v1371_v20, %v1372_v18  ;;  %v721_v17 = vld [vmem:[%s4116_s6 + $0x858] sm:$0xff]  ;;  %v723_v4 = vld [vmem:[%s4116_s6 + $0x868] sm:$0xff]  ;;  %v4563_v51 = vld [vmem:[%s4116_s6 + $0x870] sm:$0xff] }
 0x147   : > { %v1385_v15 = vrot.slane %v1384_v44, 2  ;;  %v1436_v55 = vmax.f32 %v1434_v27, %v1435_v56  ;;  %v1398_v29 = vrot.slane %v1397_v47, 2  ;;  %v1411_v50 = vrot.slane %v1410_v57, 2  ;;  %v727_v8 = vld [vmem:[%s4116_s6 + $0x888] sm:$0xff]  ;;  %v728_v18 = vld [vmem:[%s4116_s6 + $0x890] sm:$0xff] }
 0x148   : > { %v1424_v38 = vrot.slane %v1423_v33, 2  ;;  %v1449_v58 = vmax.f32 %v1447_v32, %v1448_v41  ;;  %v1361_v10 = vrot.slane %v1360_v48, 1  ;;  %v1374_v22 = vrot.slane %v1373_v25, 1  ;;  %v726_v32 = vld [vmem:[%s4116_s6 + $0x880] sm:$0xff]  ;;  %v725_v41 = vld [vmem:[%s4116_s6 + $0x878] sm:$0xff] }
 0x149   : > { %v1386_v3 = vmax.f32 %v1384_v44, %v1385_v15  ;;  %v1437_v53 = vrot.slane %v1436_v55, 2  ;;  %v1399_v40 = vmax.f32 %v1397_v47, %v1398_v29  ;;  %v1412_v34 = vmax.f32 %v1410_v57, %v1411_v50  ;;  %v731_v15 = vld [vmem:[%s4116_s6 + $0x8a8] sm:$0xff] }
 0x14a   : > { %v1425_v37 = vmax.f32 %v1423_v33, %v1424_v38  ;;  %v1450_v36 = vrot.slane %v1449_v58, 2  ;;  %v4555_v20 = vmax.f32 %v1360_v48, %v1361_v10  ;;  %v4557_v0 = vmax.f32 %v1373_v25, %v1374_v22  ;;  %v717_v33 = vld [vmem:[%s4116_s6 + $0x838] sm:$0xff]  ;;  %v730_v25 = vld [vmem:[%s4116_s6 + $0x8a0] sm:$0xff]  ;;  %v732_v10 = vld [vmem:[%s4116_s6 + $0x8b0] sm:$0xff] }
 0x14b   : > { %v1387_v27 = vrot.slane %v1386_v3, 1  ;;  %v1438_v43 = vmax.f32 %v1436_v55, %v1437_v53  ;;  %v1400_v44 = vrot.slane %v1399_v40, 1  ;;  %v1413_v56 = vrot.slane %v1412_v34, 1  ;;  %v729_v48 = vld [vmem:[%s4116_s6 + $0x898] sm:$0xff]  ;;  %v734_v22 = vld [vmem:[%s4116_s6 + $0x8c0] sm:$0xff]  ;;  %v735_v53 = vld [vmem:[%s4116_s6 + $0x8c8] sm:$0xff] }
 0x14c   : > { %v1426_v47 = vrot.slane %v1425_v37, 1  ;;  %v1451_v57 = vmax.f32 %v1449_v58, %v1450_v36  ;;  %v1454_v50 = vmax.f32 %v710_v54, %v718_v16  ;;  %v1467_v38 = vmax.f32 %v711_v12, %v719_v2  ;;  %v736_v58 = vld [vmem:[%s4116_s6 + $0x8d0] sm:$0xff]  ;;  %v738_v54 = vld [vmem:[%s4116_s6 + $0x8e0] sm:$0xff]  ;;  %v739_v12 = vld [vmem:[%s4116_s6 + $0x8e8] sm:$0xff] }
 0x14d   : > { %v4573_v55 = vmax.f32 %v1386_v3, %v1387_v27  ;;  %v1439_v29 = vrot.slane %v1438_v43, 1  ;;  %v4579_v36 = vmax.f32 %v1399_v40, %v1400_v44  ;;  %v4581_v39 = vmax.f32 %v1412_v34, %v1413_v56  ;;  %v733_v3 = vld [vmem:[%s4116_s6 + $0x8b8] sm:$0xff]  ;;  %v740_v34 = vld [vmem:[%s4116_s6 + $0x8f0] sm:$0xff]  ;;  %v743_v44 = vld [vmem:[%s4116_s6 + $0x908] sm:$0xff] }
 0x14e   : > { %v4583_v46 = vmax.f32 %v1425_v37, %v1426_v47  ;;  %v1452_v11 = vrot.slane %v1451_v57, 1  ;;  %v737_v27 = vld [vmem:[%s4116_s6 + $0x8d8] sm:$0xff]  ;;  %v1455_v2 = vmax.f32 %v1454_v50, %v726_v32  ;;  %v1468_v13 = vmax.f32 %v1467_v38, %v727_v8  ;;  %v742_v37 = vld [vmem:[%s4116_s6 + $0x900] sm:$0xff]  ;;  %v744_v56 = vld [vmem:[%s4116_s6 + $0x910] sm:$0xff] }
 0x14f   : > { %5309 = vst [vmem:[#allocation50_spill] sm:$0xff] %v4579_v36  ;;  %5310 = vst [vmem:[#allocation51_spill] sm:$0xff] %v4581_v39  ;;  %v4589_v16 = vmax.f32 %v1438_v43, %v1439_v29  ;;  %v1480_v40 = vmax.f32 %v4536_v21, %v4541_v23  ;;  %v1506_v1 = vmax.f32 %v4547_v14, %v722_v28  ;;  %v741_v32 = vld [vmem:[%s4116_s6 + $0x8f8] sm:$0xff]  ;;  %v746_v21 = vld [vmem:[%s4116_s6 + $0x920] sm:$0xff] }
 0x150   : > { %5311 = vst [vmem:[#allocation52_spill] sm:$0xff] %v4583_v46  ;;  %v4597_v47 = vmax.f32 %v1451_v57, %v1452_v11  ;;  %v1493_v46 = vmax.f32 %v4544_v19, %v721_v17  ;;  %v1519_v43 = vmax.f32 %v4550_v9, %v723_v4  ;;  %v745_v8 = vld [vmem:[%s4116_s6 + $0x918] sm:$0xff]  ;;  %v747_v23 = vld [vmem:[%s4116_s6 + $0x928] sm:$0xff]  ;;  %v1456_v29 = vmax.f32 %v1455_v2, %v734_v22  ;;  %v748_v19 = vld [vmem:[%s4116_s6 + $0x930] sm:$0xff] }
 0x151   : > { %5312 = vst [vmem:[#allocation53_spill] sm:$0xff] %v4589_v16  ;;  %v1469_v50 = vmax.f32 %v1468_v13, %v735_v53  ;;  %v1481_v38 = vmax.f32 %v1480_v40, %v728_v18  ;;  %v1532_v11 = vmax.f32 %v4560_v45, %v4563_v51  ;;  %v750_v14 = vld [vmem:[%s4116_s6 + $0x940] sm:$0xff]  ;;  %v751_v17 = vld [vmem:[%s4116_s6 + $0x948] sm:$0xff]  ;;  %v1507_v28 = vmax.f32 %v1506_v1, %v730_v25  ;;  %v752_v22 = vld [vmem:[%s4116_s6 + $0x950] sm:$0xff] }
 0x152   : > { %5313 = vst [vmem:[#allocation54_spill] sm:$0xff] %v4597_v47  ;;  %v1494_v9 = vmax.f32 %v1493_v46, %v729_v48  ;;  %v1520_v4 = vmax.f32 %v1519_v43, %v731_v15  ;;  %v1545_v57 = vmax.f32 %v717_v33, %v725_v41  ;;  %v749_v47 = vld [vmem:[%s4116_s6 + $0x938] sm:$0xff]  ;;  %v1457_v18 = vmax.f32 %v1456_v29, %v742_v37  ;;  %v754_v51 = vld [vmem:[%s4116_s6 + $0x960] sm:$0xff]  ;;  %v759_v16 = vld [vmem:[%s4116_s6 + $0x988] sm:$0xff] }
 0x153   : > { %v753_v13 = vld [vmem:[%s4116_s6 + $0x958] sm:$0xff]  ;;  %v1470_v53 = vmax.f32 %v1469_v50, %v743_v44  ;;  %v1482_v2 = vmax.f32 %v1481_v38, %v736_v58  ;;  %v1533_v45 = vmax.f32 %v1532_v11, %v732_v10  ;;  %v758_v40 = vld [vmem:[%s4116_s6 + $0x980] sm:$0xff]  ;;  %v1508_v1 = vmax.f32 %v1507_v28, %v738_v54  ;;  %v755_v41 = vld [vmem:[%s4116_s6 + $0x968] sm:$0xff] }
 0x154   : > { %v1495_v46 = vmax.f32 %v1494_v9, %v737_v27  ;;  %v1521_v48 = vmax.f32 %v1520_v4, %v739_v12  ;;  %v1546_v33 = vmax.f32 %v1545_v57, %v733_v3  ;;  %v756_v25 = vld [vmem:[%s4116_s6 + $0x970] sm:$0xff]  ;;  %v757_v15 = vld [vmem:[%s4116_s6 + $0x978] sm:$0xff]  ;;  %v1458_v37 = vmax.f32 %v1457_v18, %v750_v14  ;;  %v766_v29 = vld [vmem:[%s4116_s6 + $0x9c0] sm:$0xff] }
 0x155   : > { %v1471_v44 = vmax.f32 %v1470_v53, %v751_v17  ;;  %v1483_v58 = vmax.f32 %v1482_v2, %v744_v56  ;;  %v1534_v10 = vmax.f32 %v1533_v45, %v740_v34  ;;  %v760_v43 = vld [vmem:[%s4116_s6 + $0x990] sm:$0xff]  ;;  %v767_v50 = vld [vmem:[%s4116_s6 + $0x9c8] sm:$0xff]  ;;  %v1509_v54 = vmax.f32 %v1508_v1, %v746_v21  ;;  %v761_v38 = vld [vmem:[%s4116_s6 + $0x998] sm:$0xff] }
 0x156   : > { %v1496_v27 = vmax.f32 %v1495_v46, %v745_v8  ;;  %v1522_v12 = vmax.f32 %v1521_v48, %v747_v23  ;;  %v1547_v3 = vmax.f32 %v1546_v33, %v741_v32  ;;  %v762_v11 = vld [vmem:[%s4116_s6 + $0x9a0] sm:$0xff]  ;;  %v763_v9 = vld [vmem:[%s4116_s6 + $0x9a8] sm:$0xff]  ;;  %v1459_v14 = vmax.f32 %v1458_v37, %v758_v40  ;;  %v764_v28 = vld [vmem:[%s4116_s6 + $0x9b0] sm:$0xff] }
 0x157   : > { %v1472_v17 = vmax.f32 %v1471_v44, %v759_v16  ;;  %v1484_v56 = vmax.f32 %v1483_v58, %v752_v22  ;;  %v1535_v34 = vmax.f32 %v1534_v10, %v748_v19  ;;  %v765_v4 = vld [vmem:[%s4116_s6 + $0x9b8] sm:$0xff]  ;;  %v768_v57 = vld [vmem:[%s4116_s6 + $0x9d0] sm:$0xff]  ;;  %v1510_v8 = vmax.f32 %v1509_v54, %v754_v51  ;;  %v770_v32 = vld [vmem:[%s4116_s6 + $0x9e0] sm:$0xff] }
 0x158   : > { %v1497_v18 = vmax.f32 %v1496_v27, %v753_v13  ;;  %v1523_v21 = vmax.f32 %v1522_v12, %v755_v41  ;;  %v1548_v23 = vmax.f32 %v1547_v3, %v749_v47  ;;  %v769_v53 = vld [vmem:[%s4116_s6 + $0x9d8] sm:$0xff]  ;;  %v771_v2 = vld [vmem:[%s4116_s6 + $0x9e8] sm:$0xff]  ;;  %v1460_v45 = vmax.f32 %v1459_v14, %v766_v29  ;;  %v772_v40 = vld [vmem:[%s4116_s6 + $0x9f0] sm:$0xff] }
 0x159   : > { %v1473_v46 = vmax.f32 %v1472_v17, %v767_v50  ;;  %v1485_v1 = vmax.f32 %v1484_v56, %v760_v43  ;;  %v1536_v48 = vmax.f32 %v1535_v34, %v756_v25  ;;  %v1511_v22 = vmax.f32 %v1510_v8, %v762_v11  ;;  %v773_v37 = vld [vmem:[%s4116_s6 + $0x9f8] sm:$0xff] }
 0x15a   : > { %v1498_v16 = vmax.f32 %v1497_v18, %v761_v38  ;;  %v1524_v33 = vmax.f32 %v1523_v21, %v763_v9  ;;  %v1549_v19 = vmax.f32 %v1548_v23, %v757_v15  ;;  %v1461_v44 = vrot.slane %v1460_v45, 4 }
 0x15b   : > { %v1474_v58 = vrot.slane %v1473_v46, 4  ;;  %v1486_v13 = vmax.f32 %v1485_v1, %v768_v57  ;;  %v1537_v10 = vmax.f32 %v1536_v48, %v764_v28  ;;  %v1512_v41 = vmax.f32 %v1511_v22, %v770_v32  ;;  %v782_v22 = vld [vmem:[%s4116_s6 + $0xa40] sm:$0xff] }
 0x15c   : > { %v1499_v51 = vmax.f32 %v1498_v16, %v769_v53  ;;  %v1525_v47 = vmax.f32 %v1524_v33, %v771_v2  ;;  %v1550_v27 = vmax.f32 %v1549_v19, %v765_v4  ;;  %v1462_v54 = vmax.f32 %v1460_v45, %v1461_v44  ;;  %v774_v2 = vld [vmem:[%s4116_s6 + $0xa00] sm:$0xff]  ;;  %v775_v45 = vld [vmem:[%s4116_s6 + $0xa08] sm:$0xff]  ;;  %v4637_v16 = vld [vmem:[%s4116_s6 + $0xa10] sm:$0xff] }
 0x15d   : > { %v1475_v12 = vmax.f32 %v1473_v46, %v1474_v58  ;;  %v1487_v29 = vrot.slane %v1486_v13, 4  ;;  %v1538_v50 = vmax.f32 %v1537_v10, %v772_v40  ;;  %v1513_v25 = vrot.slane %v1512_v41, 4  ;;  %v783_v33 = vld [vmem:[%s4116_s6 + $0xa48] sm:$0xff]  ;;  %v4642_v19 = vld [vmem:[%s4116_s6 + $0xa50] sm:$0xff]  ;;  %v4645_v10 = vld [vmem:[%s4116_s6 + $0xa18] sm:$0xff] }
 0x15e   : > { %v1500_v43 = vrot.slane %v1499_v51, 4  ;;  %v1526_v3 = vrot.slane %v1525_v47, 4  ;;  %v1551_v38 = vmax.f32 %v1550_v27, %v773_v37  ;;  %v1463_v11 = vrot.slane %v1462_v54, 2  ;;  %v786_v27 = vld [vmem:[%s4116_s6 + $0xa60] sm:$0xff] }
 0x15f   : > { %v1476_v15 = vrot.slane %v1475_v12, 2  ;;  %v1488_v9 = vmax.f32 %v1486_v13, %v1487_v29  ;;  %v1539_v14 = vrot.slane %v1538_v50, 4  ;;  %v1514_v56 = vmax.f32 %v1512_v41, %v1513_v25  ;;  %v4651_v41 = vld [vmem:[%s4116_s6 + $0xa28] sm:$0xff]  ;;  %v4661_v25 = vld [vmem:[%s4116_s6 + $0xa30] sm:$0xff] }
 0x160   : > { %v1501_v17 = vmax.f32 %v1499_v51, %v1500_v43  ;;  %v1527_v34 = vmax.f32 %v1525_v47, %v1526_v3  ;;  %v1552_v28 = vrot.slane %v1551_v38, 4  ;;  %v1464_v4 = vmax.f32 %v1462_v54, %v1463_v11  ;;  %v4648_v51 = vld [vmem:[%s4116_s6 + $0xa20] sm:$0xff]  ;;  %v785_v47 = vld [vmem:[%s4116_s6 + $0xa58] sm:$0xff]  ;;  %v787_v54 = vld [vmem:[%s4116_s6 + $0xa68] sm:$0xff] }
 0x161   : > { %v1477_v57 = vmax.f32 %v1475_v12, %v1476_v15  ;;  %v1489_v18 = vrot.slane %v1488_v9, 2  ;;  %v1540_v8 = vmax.f32 %v1538_v50, %v1539_v14  ;;  %v1515_v23 = vrot.slane %v1514_v56, 2  ;;  %v4664_v3 = vld [vmem:[%s4116_s6 + $0xa70] sm:$0xff]  ;;  %v791_v11 = vld [vmem:[%s4116_s6 + $0xa88] sm:$0xff] }
 0x162   : > { %v1502_v21 = vrot.slane %v1501_v17, 2  ;;  %v1528_v53 = vrot.slane %v1527_v34, 2  ;;  %v1553_v32 = vmax.f32 %v1551_v38, %v1552_v28  ;;  %v1465_v46 = vrot.slane %v1464_v4, 1  ;;  %v790_v38 = vld [vmem:[%s4116_s6 + $0xa80] sm:$0xff]  ;;  %v792_v15 = vld [vmem:[%s4116_s6 + $0xa90] sm:$0xff]  ;;  %v789_v28 = vld [vmem:[%s4116_s6 + $0xa78] sm:$0xff] }
 0x163   : > { %v1478_v1 = vrot.slane %v1477_v57, 1  ;;  %v1490_v48 = vmax.f32 %v1488_v9, %v1489_v18  ;;  %v1541_v40 = vrot.slane %v1540_v8, 2  ;;  %v1516_v44 = vmax.f32 %v1514_v56, %v1515_v23  ;;  %v795_v18 = vld [vmem:[%s4116_s6 + $0xaa8] sm:$0xff] }
 0x164   : > { %v1503_v37 = vmax.f32 %v1501_v17, %v1502_v21  ;;  %v1529_v58 = vmax.f32 %v1527_v34, %v1528_v53  ;;  %v1554_v13 = vrot.slane %v1553_v32, 2  ;;  %v4656_v12 = vmax.f32 %v1464_v4, %v1465_v46  ;;  %v781_v34 = vld [vmem:[%s4116_s6 + $0xa38] sm:$0xff]  ;;  %v796_v46 = vld [vmem:[%s4116_s6 + $0xab0] sm:$0xff] }
 0x165   : > { %v4658_v29 = vmax.f32 %v1477_v57, %v1478_v1  ;;  %v1491_v50 = vrot.slane %v1490_v48, 1  ;;  %v1542_v43 = vmax.f32 %v1540_v8, %v1541_v40  ;;  %v1517_v14 = vrot.slane %v1516_v44, 1  ;;  %v793_v4 = vld [vmem:[%s4116_s6 + $0xa98] sm:$0xff]  ;;  %v794_v57 = vld [vmem:[%s4116_s6 + $0xaa0] sm:$0xff]  ;;  %v799_v40 = vld [vmem:[%s4116_s6 + $0xac8] sm:$0xff] }
 0x166   : > { %v1504_v9 = vrot.slane %v1503_v37, 1  ;;  %v1530_v17 = vrot.slane %v1529_v58, 1  ;;  %v1555_v56 = vmax.f32 %v1553_v32, %v1554_v13  ;;  %v1558_v23 = vmax.f32 %v774_v2, %v782_v22  ;;  %v798_v1 = vld [vmem:[%s4116_s6 + $0xac0] sm:$0xff]  ;;  %v800_v32 = vld [vmem:[%s4116_s6 + $0xad0] sm:$0xff] }
 0x167   : > { %v4674_v8 = vmax.f32 %v1490_v48, %v1491_v50  ;;  %v1543_v21 = vrot.slane %v1542_v43, 1  ;;  %v1571_v53 = vmax.f32 %v775_v45, %v783_v33  ;;  %v4682_v7 = vmax.f32 %v1516_v44, %v1517_v14  ;;  %v797_v48 = vld [vmem:[%s4116_s6 + $0xab8] sm:$0xff]  ;;  %v802_v2 = vld [vmem:[%s4116_s6 + $0xae0] sm:$0xff]  ;;  %v803_v45 = vld [vmem:[%s4116_s6 + $0xae8] sm:$0xff] }
 0x168   : > { %v4680_v13 = vmax.f32 %v1503_v37, %v1504_v9  ;;  %v4684_v39 = vmax.f32 %v1529_v58, %v1530_v17  ;;  %v1556_v26 = vrot.slane %v1555_v56, 1  ;;  %v801_v50 = vld [vmem:[%s4116_s6 + $0xad8] sm:$0xff]  ;;  %v1559_v33 = vmax.f32 %v1558_v23, %v790_v38  ;;  %v804_v44 = vld [vmem:[%s4116_s6 + $0xaf0] sm:$0xff]  ;;  %v806_v58 = vld [vmem:[%s4116_s6 + $0xb00] sm:$0xff] }
 0x169   : > { %5315 = vst [vmem:[#allocation56_spill] sm:$0xff] %v4682_v7  ;;  %v4690_v22 = vmax.f32 %v1542_v43, %v1543_v21  ;;  %v1572_v63 = vmax.f32 %v1571_v53, %v791_v11  ;;  %v1584_v37 = vmax.f32 %v4637_v16, %v4642_v19  ;;  %v807_v9 = vld [vmem:[%s4116_s6 + $0xb08] sm:$0xff]  ;;  %v808_v14 = vld [vmem:[%s4116_s6 + $0xb10] sm:$0xff]  ;;  %v1610_v7 = vmax.f32 %v4648_v51, %v786_v27  ;;  %v805_v38 = vld [vmem:[%s4116_s6 + $0xaf8] sm:$0xff] }
 0x16a   : > { %5314 = vst [vmem:[#allocation55_spill] sm:$0xff] %v4680_v13  ;;  %5316 = vst [vmem:[#allocation57_spill] sm:$0xff] %v4684_v39  ;;  %v4698_v17 = vmax.f32 %v1555_v56, %v1556_v26  ;;  %v1597_v39 = vmax.f32 %v4645_v10, %v785_v47  ;;  %v1623_v43 = vmax.f32 %v4651_v41, %v787_v54  ;;  %v809_v11 = vld [vmem:[%s4116_s6 + $0xb18] sm:$0xff]  ;;  %v810_v16 = vld [vmem:[%s4116_s6 + $0xb20] sm:$0xff] }
 0x16b   : > { %5317 = vst [vmem:[#allocation58_spill] sm:$0xff] %v4690_v22  ;;  %v811_v19 = vld [vmem:[%s4116_s6 + $0xb28] sm:$0xff]  ;;  %v1560_v21 = vmax.f32 %v1559_v33, %v798_v1  ;;  %v1573_v23 = vmax.f32 %v1572_v63, %v799_v40  ;;  %v1585_v53 = vmax.f32 %v1584_v37, %v792_v15  ;;  %v1636_v26 = vmax.f32 %v4661_v25, %v4664_v3  ;;  %v812_v10 = vld [vmem:[%s4116_s6 + $0xb30] sm:$0xff]  ;;  %v814_v51 = vld [vmem:[%s4116_s6 + $0xb40] sm:$0xff] }
 0x16c   : > { %5318 = vst [vmem:[#allocation59_spill] sm:$0xff] %v4698_v17  ;;  %v815_v47 = vld [vmem:[%s4116_s6 + $0xb48] sm:$0xff]  ;;  %v1598_v41 = vmax.f32 %v1597_v39, %v793_v4  ;;  %v1611_v27 = vmax.f32 %v1610_v7, %v794_v57  ;;  %v1624_v54 = vmax.f32 %v1623_v43, %v795_v18  ;;  %v1649_v56 = vmax.f32 %v781_v34, %v789_v28  ;;  %v813_v17 = vld [vmem:[%s4116_s6 + $0xb38] sm:$0xff]  ;;  %v816_v1 = vld [vmem:[%s4116_s6 + $0xb50] sm:$0xff] }
 0x16d   : > { %v817_v63 = vld [vmem:[%s4116_s6 + $0xb58] sm:$0xff]  ;;  %v1561_v15 = vmax.f32 %v1560_v21, %v806_v58  ;;  %v1574_v40 = vmax.f32 %v1573_v23, %v807_v9  ;;  %v1586_v33 = vmax.f32 %v1585_v53, %v800_v32  ;;  %v1637_v25 = vmax.f32 %v1636_v26, %v796_v46  ;;  %v818_v3 = vld [vmem:[%s4116_s6 + $0xb60] sm:$0xff]  ;;  %v823_v22 = vld [vmem:[%s4116_s6 + $0xb88] sm:$0xff] }
 0x16e   : > { %v822_v37 = vld [vmem:[%s4116_s6 + $0xb80] sm:$0xff]  ;;  %v1599_v39 = vmax.f32 %v1598_v41, %v801_v50  ;;  %v1612_v7 = vmax.f32 %v1611_v27, %v802_v2  ;;  %v1625_v4 = vmax.f32 %v1624_v54, %v803_v45  ;;  %v1650_v34 = vmax.f32 %v1649_v56, %v797_v48  ;;  %v819_v28 = vld [vmem:[%s4116_s6 + $0xb68] sm:$0xff]  ;;  %v820_v57 = vld [vmem:[%s4116_s6 + $0xb70] sm:$0xff] }
 0x16f   : > { %v821_v18 = vld [vmem:[%s4116_s6 + $0xb78] sm:$0xff]  ;;  %v1562_v58 = vmax.f32 %v1561_v15, %v814_v51  ;;  %v1575_v9 = vmax.f32 %v1574_v40, %v815_v47  ;;  %v1587_v32 = vmax.f32 %v1586_v33, %v808_v14  ;;  %v1638_v46 = vmax.f32 %v1637_v25, %v804_v44  ;;  %v824_v43 = vld [vmem:[%s4116_s6 + $0xb90] sm:$0xff]  ;;  %v830_v21 = vld [vmem:[%s4116_s6 + $0xbc0] sm:$0xff] }
 0x170   : > { %v831_v23 = vld [vmem:[%s4116_s6 + $0xbc8] sm:$0xff]  ;;  %v1600_v50 = vmax.f32 %v1599_v39, %v809_v11  ;;  %v1613_v2 = vmax.f32 %v1612_v7, %v810_v16  ;;  %v1626_v45 = vmax.f32 %v1625_v4, %v811_v19  ;;  %v1651_v48 = vmax.f32 %v1650_v34, %v805_v38  ;;  %v825_v53 = vld [vmem:[%s4116_s6 + $0xb98] sm:$0xff]  ;;  %v826_v26 = vld [vmem:[%s4116_s6 + $0xba0] sm:$0xff] }
 0x171   : > { %v827_v41 = vld [vmem:[%s4116_s6 + $0xba8] sm:$0xff]  ;;  %v1563_v51 = vmax.f32 %v1562_v58, %v822_v37  ;;  %v1576_v47 = vmax.f32 %v1575_v9, %v823_v22  ;;  %v1588_v14 = vmax.f32 %v1587_v32, %v816_v1  ;;  %v1639_v44 = vmax.f32 %v1638_v46, %v812_v10  ;;  %v828_v27 = vld [vmem:[%s4116_s6 + $0xbb0] sm:$0xff]  ;;  %v829_v54 = vld [vmem:[%s4116_s6 + $0xbb8] sm:$0xff] }
 0x172   : > { %v832_v56 = vld [vmem:[%s4116_s6 + $0xbd0] sm:$0xff]  ;;  %v1601_v15 = vmax.f32 %v1600_v50, %v817_v63  ;;  %v1614_v11 = vmax.f32 %v1613_v2, %v818_v3  ;;  %v1627_v16 = vmax.f32 %v1626_v45, %v819_v28  ;;  %v1652_v19 = vmax.f32 %v1651_v48, %v813_v17  ;;  %v833_v40 = vld [vmem:[%s4116_s6 + $0xbd8] sm:$0xff]  ;;  %v834_v38 = vld [vmem:[%s4116_s6 + $0xbe0] sm:$0xff] }
 0x173   : > { %v835_v33 = vld [vmem:[%s4116_s6 + $0xbe8] sm:$0xff]  ;;  %v1564_v25 = vmax.f32 %v1563_v51, %v830_v21  ;;  %v1577_v39 = vmax.f32 %v1576_v47, %v831_v23  ;;  %v1589_v7 = vmax.f32 %v1588_v14, %v824_v43  ;;  %v1640_v4 = vmax.f32 %v1639_v44, %v820_v57  ;;  %v836_v37 = vld [vmem:[%s4116_s6 + $0xbf0] sm:$0xff]  ;;  %v837_v58 = vld [vmem:[%s4116_s6 + $0xbf8] sm:$0xff] }
 0x174   : > { %v1602_v22 = vmax.f32 %v1601_v15, %v825_v53  ;;  %v1615_v1 = vmax.f32 %v1614_v11, %v826_v26  ;;  %v1628_v34 = vmax.f32 %v1627_v16, %v827_v41  ;;  %v1653_v10 = vmax.f32 %v1652_v19, %v821_v18 }
 0x175   : > { %v1565_v9 = vrot.slane %v1564_v25, 4  ;;  %v1578_v32 = vrot.slane %v1577_v39, 4  ;;  %v1590_v63 = vmax.f32 %v1589_v7, %v832_v56  ;;  %v1641_v46 = vmax.f32 %v1640_v4, %v828_v27 }
 0x176   : > { %v1603_v3 = vmax.f32 %v1602_v22, %v833_v40  ;;  %v1616_v28 = vmax.f32 %v1615_v1, %v834_v38  ;;  %v1629_v17 = vmax.f32 %v1628_v34, %v835_v33  ;;  %v1654_v50 = vmax.f32 %v1653_v10, %v829_v54  ;;  %v838_v33 = vld [vmem:[%s4116_s6 + $0xc00] sm:$0xff]  ;;  %v4738_v22 = vld [vmem:[%s4116_s6 + $0xc10] sm:$0xff]  ;;  %v847_v34 = vld [vmem:[%s4116_s6 + $0xc48] sm:$0xff] }
 0x177   : > { %v1566_v2 = vmax.f32 %v1564_v25, %v1565_v9  ;;  %v1579_v45 = vmax.f32 %v1577_v39, %v1578_v32  ;;  %v1591_v21 = vrot.slane %v1590_v63, 4  ;;  %v1642_v23 = vmax.f32 %v1641_v46, %v836_v37  ;;  %v839_v25 = vld [vmem:[%s4116_s6 + $0xc08] sm:$0xff]  ;;  %v846_v1 = vld [vmem:[%s4116_s6 + $0xc40] sm:$0xff]  ;;  %v4743_v10 = vld [vmem:[%s4116_s6 + $0xc50] sm:$0xff] }
 0x178   : > { %v1604_v43 = vrot.slane %v1603_v3, 4  ;;  %v1617_v57 = vrot.slane %v1616_v28, 4  ;;  %v1630_v48 = vrot.slane %v1629_v17, 4  ;;  %v1655_v53 = vmax.f32 %v1654_v50, %v837_v58  ;;  %v4746_v46 = vld [vmem:[%s4116_s6 + $0xc18] sm:$0xff]  ;;  %v850_v50 = vld [vmem:[%s4116_s6 + $0xc60] sm:$0xff] }
 0x179   : > { %v1567_v26 = vrot.slane %v1566_v2, 2  ;;  %v1580_v18 = vrot.slane %v1579_v45, 2  ;;  %v1592_v41 = vmax.f32 %v1590_v63, %v1591_v21  ;;  %v1643_v51 = vrot.slane %v1642_v23, 4 }
 0x17a   : > { %v1605_v47 = vmax.f32 %v1603_v3, %v1604_v43  ;;  %v1618_v14 = vmax.f32 %v1616_v28, %v1617_v57  ;;  %v1631_v44 = vmax.f32 %v1629_v17, %v1630_v48  ;;  %v1656_v27 = vrot.slane %v1655_v53, 4  ;;  %v4749_v3 = vld [vmem:[%s4116_s6 + $0xc20] sm:$0xff]  ;;  %v4752_v28 = vld [vmem:[%s4116_s6 + $0xc28] sm:$0xff]  ;;  %v849_v17 = vld [vmem:[%s4116_s6 + $0xc58] sm:$0xff] }
 0x17b   : > { %v1568_v54 = vmax.f32 %v1566_v2, %v1567_v26  ;;  %v1581_v56 = vmax.f32 %v1579_v45, %v1580_v18  ;;  %v1593_v15 = vrot.slane %v1592_v41, 2  ;;  %v1644_v11 = vmax.f32 %v1642_v23, %v1643_v51  ;;  %v851_v2 = vld [vmem:[%s4116_s6 + $0xc68] sm:$0xff]  ;;  %v4762_v57 = vld [vmem:[%s4116_s6 + $0xc30] sm:$0xff] }
 0x17c   : > { %v1606_v16 = vrot.slane %v1605_v47, 2  ;;  %v1619_v19 = vrot.slane %v1618_v14, 2  ;;  %v1632_v40 = vrot.slane %v1631_v44, 2  ;;  %v1657_v38 = vmax.f32 %v1655_v53, %v1656_v27  ;;  %v4765_v48 = vld [vmem:[%s4116_s6 + $0xc70] sm:$0xff]  ;;  %v854_v53 = vld [vmem:[%s4116_s6 + $0xc80] sm:$0xff]  ;;  %v855_v26 = vld [vmem:[%s4116_s6 + $0xc88] sm:$0xff] }
 0x17d   : > { %v1569_v39 = vrot.slane %v1568_v54, 1  ;;  %v1582_v7 = vrot.slane %v1581_v56, 1  ;;  %v1594_v4 = vmax.f32 %v1592_v41, %v1593_v15  ;;  %v1645_v37 = vrot.slane %v1644_v11, 2  ;;  %v856_v18 = vld [vmem:[%s4116_s6 + $0xc90] sm:$0xff]  ;;  %v853_v27 = vld [vmem:[%s4116_s6 + $0xc78] sm:$0xff]  ;;  %v859_v15 = vld [vmem:[%s4116_s6 + $0xca8] sm:$0xff] }
 0x17e   : > { %v1607_v58 = vmax.f32 %v1605_v47, %v1606_v16  ;;  %v1620_v9 = vmax.f32 %v1618_v14, %v1619_v19  ;;  %v1633_v32 = vmax.f32 %v1631_v44, %v1632_v40  ;;  %v1658_v63 = vrot.slane %v1657_v38, 2  ;;  %v845_v44 = vld [vmem:[%s4116_s6 + $0xc38] sm:$0xff] }
 0x17f   : > { %v4757_v45 = vmax.f32 %v1568_v54, %v1569_v39  ;;  %v4759_v21 = vmax.f32 %v1581_v56, %v1582_v7  ;;  %v1595_v23 = vrot.slane %v1594_v4, 1  ;;  %v1646_v43 = vmax.f32 %v1644_v11, %v1645_v37  ;;  %v857_v54 = vld [vmem:[%s4116_s6 + $0xc98] sm:$0xff]  ;;  %v858_v56 = vld [vmem:[%s4116_s6 + $0xca0] sm:$0xff]  ;;  %v860_v39 = vld [vmem:[%s4116_s6 + $0xcb0] sm:$0xff] }
 0x180   : > { %v1608_v41 = vrot.slane %v1607_v58, 1  ;;  %v1621_v51 = vrot.slane %v1620_v9, 1  ;;  %v1634_v47 = vrot.slane %v1633_v32, 1  ;;  %v1659_v14 = vmax.f32 %v1657_v38, %v1658_v63  ;;  %v862_v7 = vld [vmem:[%s4116_s6 + $0xcc0] sm:$0xff]  ;;  %v863_v37 = vld [vmem:[%s4116_s6 + $0xcc8] sm:$0xff]  ;;  %v864_v38 = vld [vmem:[%s4116_s6 + $0xcd0] sm:$0xff] }
 0x181   : > { %5319 = vst [vmem:[#allocation60_spill] sm:$0xff] %v4759_v21  ;;  %v4775_v11 = vmax.f32 %v1594_v4, %v1595_v23  ;;  %v1647_v16 = vrot.slane %v1646_v43, 1  ;;  %v1662_v19 = vmax.f32 %v838_v33, %v846_v1  ;;  %v1675_v40 = vmax.f32 %v839_v25, %v847_v34  ;;  %v861_v4 = vld [vmem:[%s4116_s6 + $0xcb8] sm:$0xff]  ;;  %v866_v33 = vld [vmem:[%s4116_s6 + $0xce0] sm:$0xff]  ;;  %v867_v25 = vld [vmem:[%s4116_s6 + $0xce8] sm:$0xff] }
 0x182   : > { %v4781_v63 = vmax.f32 %v1607_v58, %v1608_v41  ;;  %v4783_v6 = vmax.f32 %v1620_v9, %v1621_v51  ;;  %v4785_v13 = vmax.f32 %v1633_v32, %v1634_v47  ;;  %v1660_v21 = vrot.slane %v1659_v14, 1  ;;  %v865_v23 = vld [vmem:[%s4116_s6 + $0xcd8] sm:$0xff]  ;;  %v868_v9 = vld [vmem:[%s4116_s6 + $0xcf0] sm:$0xff]  ;;  %v870_v32 = vld [vmem:[%s4116_s6 + $0xd00] sm:$0xff] }
 0x183   : > { %5320 = vst [vmem:[#allocation61_spill] sm:$0xff] %v4775_v11  ;;  %v4791_v1 = vmax.f32 %v1646_v43, %v1647_v16  ;;  %v1663_v34 = vmax.f32 %v1662_v19, %v854_v53  ;;  %v1676_v11 = vmax.f32 %v1675_v40, %v855_v26  ;;  %v1688_v58 = vmax.f32 %v4738_v22, %v4743_v10  ;;  %v871_v41 = vld [vmem:[%s4116_s6 + $0xd08] sm:$0xff]  ;;  %v872_v51 = vld [vmem:[%s4116_s6 + $0xd10] sm:$0xff]  ;;  %v869_v53 = vld [vmem:[%s4116_s6 + $0xcf8] sm:$0xff] }
 0x184   : > { %5321 = vst [vmem:[#allocation62_spill] sm:$0xff] %v4781_v63  ;;  %5322 = vst [vmem:[#allocation63_spill] sm:$0xff] %v4783_v6  ;;  %v4799_v47 = vmax.f32 %v1659_v14, %v1660_v21  ;;  %v1714_v6 = vmax.f32 %v4749_v3, %v850_v50  ;;  %v1727_v43 = vmax.f32 %v4752_v28, %v851_v2  ;;  %v873_v26 = vld [vmem:[%s4116_s6 + $0xd18] sm:$0xff]  ;;  %v874_v22 = vld [vmem:[%s4116_s6 + $0xd20] sm:$0xff] }
 0x185   : > { %5323 = vst [vmem:[#allocation64_spill] sm:$0xff] %v4785_v13  ;;  %5324 = vst [vmem:[#allocation65_spill] sm:$0xff] %v4791_v1  ;;  %v1701_v13 = vmax.f32 %v4746_v46, %v849_v17  ;;  %v875_v10 = vld [vmem:[%s4116_s6 + $0xd28] sm:$0xff]  ;;  %v1664_v16 = vmax.f32 %v1663_v34, %v862_v7  ;;  %v1677_v19 = vmax.f32 %v1676_v11, %v863_v37  ;;  %v876_v46 = vld [vmem:[%s4116_s6 + $0xd30] sm:$0xff] }
 0x186   : > { %5325 = vst [vmem:[#allocation66_spill] sm:$0xff] %v4799_v47  ;;  %v1689_v40 = vmax.f32 %v1688_v58, %v856_v18  ;;  %v1740_v21 = vmax.f32 %v4762_v57, %v4765_v48  ;;  %v878_v3 = vld [vmem:[%s4116_s6 + $0xd40] sm:$0xff]  ;;  %v879_v17 = vld [vmem:[%s4116_s6 + $0xd48] sm:$0xff]  ;;  %v1715_v50 = vmax.f32 %v1714_v6, %v858_v56  ;;  %v1728_v2 = vmax.f32 %v1727_v43, %v859_v15  ;;  %v877_v47 = vld [vmem:[%s4116_s6 + $0xd38] sm:$0xff] }
 0x187   : > { %v1702_v28 = vmax.f32 %v1701_v13, %v857_v54  ;;  %v1753_v14 = vmax.f32 %v845_v44, %v853_v27  ;;  %v880_v7 = vld [vmem:[%s4116_s6 + $0xd50] sm:$0xff]  ;;  %v881_v11 = vld [vmem:[%s4116_s6 + $0xd58] sm:$0xff]  ;;  %v1665_v18 = vmax.f32 %v1664_v16, %v870_v32  ;;  %v1678_v37 = vmax.f32 %v1677_v19, %v871_v41  ;;  %v882_v48 = vld [vmem:[%s4116_s6 + $0xd60] sm:$0xff] }
 0x188   : > { %v1690_v34 = vmax.f32 %v1689_v40, %v864_v38  ;;  %v1741_v57 = vmax.f32 %v1740_v21, %v860_v39  ;;  %v886_v58 = vld [vmem:[%s4116_s6 + $0xd80] sm:$0xff]  ;;  %v887_v1 = vld [vmem:[%s4116_s6 + $0xd88] sm:$0xff]  ;;  %v1716_v6 = vmax.f32 %v1715_v50, %v866_v33  ;;  %v1729_v54 = vmax.f32 %v1728_v2, %v867_v25  ;;  %v884_v56 = vld [vmem:[%s4116_s6 + $0xd70] sm:$0xff] }
 0x189   : > { %v1703_v13 = vmax.f32 %v1702_v28, %v865_v23  ;;  %v1754_v44 = vmax.f32 %v1753_v14, %v861_v4  ;;  %v883_v27 = vld [vmem:[%s4116_s6 + $0xd68] sm:$0xff]  ;;  %v885_v15 = vld [vmem:[%s4116_s6 + $0xd78] sm:$0xff]  ;;  %v1666_v32 = vmax.f32 %v1665_v18, %v878_v3  ;;  %v1679_v41 = vmax.f32 %v1678_v37, %v879_v17  ;;  %v888_v43 = vld [vmem:[%s4116_s6 + $0xd90] sm:$0xff] }
 0x18a   : > { %v1691_v38 = vmax.f32 %v1690_v34, %v872_v51  ;;  %v1742_v39 = vmax.f32 %v1741_v57, %v868_v9  ;;  %v894_v16 = vld [vmem:[%s4116_s6 + $0xdc0] sm:$0xff]  ;;  %v895_v19 = vld [vmem:[%s4116_s6 + $0xdc8] sm:$0xff]  ;;  %v1717_v33 = vmax.f32 %v1716_v6, %v874_v22  ;;  %v1730_v25 = vmax.f32 %v1729_v54, %v875_v10  ;;  %v889_v40 = vld [vmem:[%s4116_s6 + $0xd98] sm:$0xff] }
 0x18b   : > { %v1704_v23 = vmax.f32 %v1703_v13, %v873_v26  ;;  %v1755_v4 = vmax.f32 %v1754_v44, %v869_v53  ;;  %v890_v21 = vld [vmem:[%s4116_s6 + $0xda0] sm:$0xff]  ;;  %v891_v28 = vld [vmem:[%s4116_s6 + $0xda8] sm:$0xff]  ;;  %v1667_v3 = vmax.f32 %v1666_v32, %v886_v58  ;;  %v1680_v17 = vmax.f32 %v1679_v41, %v887_v1  ;;  %v892_v50 = vld [vmem:[%s4116_s6 + $0xdb0] sm:$0xff] }
 0x18c   : > { %v1692_v51 = vmax.f32 %v1691_v38, %v880_v7  ;;  %v1743_v9 = vmax.f32 %v1742_v39, %v876_v46  ;;  %v893_v2 = vld [vmem:[%s4116_s6 + $0xdb8] sm:$0xff]  ;;  %v896_v14 = vld [vmem:[%s4116_s6 + $0xdd0] sm:$0xff]  ;;  %v1718_v26 = vmax.f32 %v1717_v33, %v882_v48  ;;  %v1731_v22 = vmax.f32 %v1730_v25, %v883_v27  ;;  %v898_v53 = vld [vmem:[%s4116_s6 + $0xde0] sm:$0xff] }
 0x18d   : > { %v1705_v18 = vmax.f32 %v1704_v23, %v881_v11  ;;  %v1756_v10 = vmax.f32 %v1755_v4, %v877_v47  ;;  %v897_v37 = vld [vmem:[%s4116_s6 + $0xdd8] sm:$0xff]  ;;  %v899_v34 = vld [vmem:[%s4116_s6 + $0xde8] sm:$0xff]  ;;  %v1668_v57 = vmax.f32 %v1667_v3, %v894_v16  ;;  %v1681_v13 = vmax.f32 %v1680_v17, %v895_v19  ;;  %v900_v58 = vld [vmem:[%s4116_s6 + $0xdf0] sm:$0xff] }
 0x18e   : > { %v1693_v6 = vmax.f32 %v1692_v51, %v888_v43  ;;  %v1744_v54 = vmax.f32 %v1743_v9, %v884_v56  ;;  %v1719_v7 = vmax.f32 %v1718_v26, %v890_v21  ;;  %v1732_v44 = vmax.f32 %v1731_v22, %v891_v28  ;;  %v901_v32 = vld [vmem:[%s4116_s6 + $0xdf8] sm:$0xff] }
 0x18f   : > { %v1706_v1 = vmax.f32 %v1705_v18, %v889_v40  ;;  %v1757_v46 = vmax.f32 %v1756_v10, %v885_v15  ;;  %v1669_v41 = vrot.slane %v1668_v57, 4  ;;  %v1682_v38 = vrot.slane %v1681_v13, 4 }
 0x190   : > { %v1694_v11 = vmax.f32 %v1693_v6, %v896_v14  ;;  %v1745_v39 = vmax.f32 %v1744_v54, %v892_v50  ;;  %v1720_v27 = vmax.f32 %v1719_v7, %v898_v53  ;;  %v1733_v47 = vmax.f32 %v1732_v44, %v899_v34  ;;  %v902_v34 = vld [vmem:[%s4116_s6 + $0xe00] sm:$0xff]  ;;  %v911_v44 = vld [vmem:[%s4116_s6 + $0xe48] sm:$0xff] }
 0x191   : > { %v1707_v48 = vmax.f32 %v1706_v1, %v897_v37  ;;  %v1758_v23 = vmax.f32 %v1757_v46, %v893_v2  ;;  %v1670_v33 = vmax.f32 %v1668_v57, %v1669_v41  ;;  %v1683_v25 = vmax.f32 %v1681_v13, %v1682_v38  ;;  %v903_v57 = vld [vmem:[%s4116_s6 + $0xe08] sm:$0xff]  ;;  %v4839_v1 = vld [vmem:[%s4116_s6 + $0xe10] sm:$0xff]  ;;  %v910_v7 = vld [vmem:[%s4116_s6 + $0xe40] sm:$0xff] }
 0x192   : > { %v1695_v16 = vrot.slane %v1694_v11, 4  ;;  %v1746_v19 = vmax.f32 %v1745_v39, %v900_v58  ;;  %v1721_v56 = vrot.slane %v1720_v27, 4  ;;  %v1734_v4 = vrot.slane %v1733_v47, 4  ;;  %v4844_v46 = vld [vmem:[%s4116_s6 + $0xe50] sm:$0xff]  ;;  %v4847_v39 = vld [vmem:[%s4116_s6 + $0xe18] sm:$0xff] }
 0x193   : > { %v1708_v43 = vrot.slane %v1707_v48, 4  ;;  %v1759_v40 = vmax.f32 %v1758_v23, %v901_v32  ;;  %v1671_v21 = vrot.slane %v1670_v33, 2  ;;  %v1684_v15 = vrot.slane %v1683_v25, 2  ;;  %v914_v23 = vld [vmem:[%s4116_s6 + $0xe60] sm:$0xff] }
 0x194   : > { %v1696_v28 = vmax.f32 %v1694_v11, %v1695_v16  ;;  %v1747_v3 = vrot.slane %v1746_v19, 4  ;;  %v1722_v51 = vmax.f32 %v1720_v27, %v1721_v56  ;;  %v1735_v9 = vmax.f32 %v1733_v47, %v1734_v4  ;;  %v4853_v27 = vld [vmem:[%s4116_s6 + $0xe28] sm:$0xff]  ;;  %v913_v47 = vld [vmem:[%s4116_s6 + $0xe58] sm:$0xff]  ;;  %v4863_v56 = vld [vmem:[%s4116_s6 + $0xe30] sm:$0xff] }
 0x195   : > { %v1709_v17 = vmax.f32 %v1707_v48, %v1708_v43  ;;  %v1760_v50 = vrot.slane %v1759_v40, 4  ;;  %v1672_v2 = vmax.f32 %v1670_v33, %v1671_v21  ;;  %v1685_v14 = vmax.f32 %v1683_v25, %v1684_v15  ;;  %v4850_v48 = vld [vmem:[%s4116_s6 + $0xe20] sm:$0xff]  ;;  %v915_v33 = vld [vmem:[%s4116_s6 + $0xe68] sm:$0xff]  ;;  %v4866_v4 = vld [vmem:[%s4116_s6 + $0xe70] sm:$0xff] }
 0x196   : > { %v1697_v18 = vrot.slane %v1696_v28, 2  ;;  %v1748_v26 = vmax.f32 %v1746_v19, %v1747_v3  ;;  %v1723_v10 = vrot.slane %v1722_v51, 2  ;;  %v1736_v37 = vrot.slane %v1735_v9, 2  ;;  %v919_v21 = vld [vmem:[%s4116_s6 + $0xe88] sm:$0xff]  ;;  %v920_v15 = vld [vmem:[%s4116_s6 + $0xe90] sm:$0xff] }
 0x197   : > { %v1710_v22 = vrot.slane %v1709_v17, 2  ;;  %v1761_v53 = vmax.f32 %v1759_v40, %v1760_v50  ;;  %v1673_v13 = vrot.slane %v1672_v2, 1  ;;  %v1686_v6 = vrot.slane %v1685_v14, 1  ;;  %v918_v40 = vld [vmem:[%s4116_s6 + $0xe80] sm:$0xff]  ;;  %v917_v50 = vld [vmem:[%s4116_s6 + $0xe78] sm:$0xff] }
 0x198   : > { %v1698_v54 = vmax.f32 %v1696_v28, %v1697_v18  ;;  %v1749_v58 = vrot.slane %v1748_v26, 2  ;;  %v1724_v41 = vmax.f32 %v1722_v51, %v1723_v10  ;;  %v1737_v38 = vmax.f32 %v1735_v9, %v1736_v37  ;;  %v909_v9 = vld [vmem:[%s4116_s6 + $0xe38] sm:$0xff]  ;;  %v923_v18 = vld [vmem:[%s4116_s6 + $0xea8] sm:$0xff] }
 0x199   : > { %v1711_v32 = vmax.f32 %v1709_v17, %v1710_v22  ;;  %v1762_v11 = vrot.slane %v1761_v53, 2  ;;  %v4858_v25 = vmax.f32 %v1672_v2, %v1673_v13  ;;  %v4860_v16 = vmax.f32 %v1685_v14, %v1686_v6  ;;  %v921_v2 = vld [vmem:[%s4116_s6 + $0xe98] sm:$0xff]  ;;  %v922_v14 = vld [vmem:[%s4116_s6 + $0xea0] sm:$0xff]  ;;  %v924_v13 = vld [vmem:[%s4116_s6 + $0xeb0] sm:$0xff] }
 0x19a   : > { %v1699_v19 = vrot.slane %v1698_v54, 1  ;;  %v1750_v43 = vmax.f32 %v1748_v26, %v1749_v58  ;;  %v1725_v3 = vrot.slane %v1724_v41, 1  ;;  %v1738_v17 = vrot.slane %v1737_v38, 1  ;;  %v926_v6 = vld [vmem:[%s4116_s6 + $0xec0] sm:$0xff]  ;;  %v927_v58 = vld [vmem:[%s4116_s6 + $0xec8] sm:$0xff] }
 0x19b   : > { %5326 = vst [vmem:[#allocation67_spill] sm:$0xff] %v4860_v16  ;;  %v1712_v28 = vrot.slane %v1711_v32, 1  ;;  %v1763_v51 = vmax.f32 %v1761_v53, %v1762_v11  ;;  %v1766_v10 = vmax.f32 %v902_v34, %v910_v7  ;;  %v1779_v37 = vmax.f32 %v903_v57, %v911_v44  ;;  %v928_v53 = vld [vmem:[%s4116_s6 + $0xed0] sm:$0xff]  ;;  %v930_v34 = vld [vmem:[%s4116_s6 + $0xee0] sm:$0xff]  ;;  %v931_v57 = vld [vmem:[%s4116_s6 + $0xee8] sm:$0xff] }
 0x19c   : > { %v4876_v26 = vmax.f32 %v1698_v54, %v1699_v19  ;;  %v1751_v22 = vrot.slane %v1750_v43, 1  ;;  %v4884_v63 = vmax.f32 %v1724_v41, %v1725_v3  ;;  %v4886_v16 = vmax.f32 %v1737_v38, %v1738_v17  ;;  %v925_v54 = vld [vmem:[%s4116_s6 + $0xeb8] sm:$0xff]  ;;  %v932_v41 = vld [vmem:[%s4116_s6 + $0xef0] sm:$0xff]  ;;  %v934_v38 = vld [vmem:[%s4116_s6 + $0xf00] sm:$0xff] }
 0x19d   : > { %v4882_v11 = vmax.f32 %v1711_v32, %v1712_v28  ;;  %v1764_v36 = vrot.slane %v1763_v51, 1  ;;  %v929_v19 = vld [vmem:[%s4116_s6 + $0xed8] sm:$0xff]  ;;  %v1767_v44 = vmax.f32 %v1766_v10, %v918_v40  ;;  %v1792_v32 = vmax.f32 %v4839_v1, %v4844_v46  ;;  %v935_v28 = vld [vmem:[%s4116_s6 + $0xf08] sm:$0xff]  ;;  %v936_v3 = vld [vmem:[%s4116_s6 + $0xf10] sm:$0xff] }
 0x19e   : > { %5327 = vst [vmem:[#allocation68_spill] sm:$0xff] %v4876_v26  ;;  %5328 = vst [vmem:[#allocation69_spill] sm:$0xff] %v4884_v63  ;;  %v4892_v7 = vmax.f32 %v1750_v43, %v1751_v22  ;;  %v1780_v26 = vmax.f32 %v1779_v37, %v919_v21  ;;  %v1818_v63 = vmax.f32 %v4850_v48, %v914_v23  ;;  %v933_v40 = vld [vmem:[%s4116_s6 + $0xef8] sm:$0xff]  ;;  %v938_v1 = vld [vmem:[%s4116_s6 + $0xf20] sm:$0xff] }
 0x19f   : > { %5329 = vst [vmem:[#allocation70_spill] sm:$0xff] %v4886_v16  ;;  %v4900_v17 = vmax.f32 %v1763_v51, %v1764_v36  ;;  %v1805_v16 = vmax.f32 %v4847_v39, %v913_v47  ;;  %v1831_v43 = vmax.f32 %v4853_v27, %v915_v33  ;;  %v937_v21 = vld [vmem:[%s4116_s6 + $0xf18] sm:$0xff]  ;;  %v939_v46 = vld [vmem:[%s4116_s6 + $0xf28] sm:$0xff]  ;;  %v1768_v22 = vmax.f32 %v1767_v44, %v926_v6  ;;  %v940_v39 = vld [vmem:[%s4116_s6 + $0xf30] sm:$0xff] }
 0x1a0   : > { %5330 = vst [vmem:[#allocation71_spill] sm:$0xff] %v4892_v7  ;;  %v1781_v10 = vmax.f32 %v1780_v26, %v927_v58  ;;  %v1793_v37 = vmax.f32 %v1792_v32, %v920_v15  ;;  %v1844_v36 = vmax.f32 %v4863_v56, %v4866_v4  ;;  %v942_v48 = vld [vmem:[%s4116_s6 + $0xf40] sm:$0xff]  ;;  %v943_v47 = vld [vmem:[%s4116_s6 + $0xf48] sm:$0xff]  ;;  %v1819_v23 = vmax.f32 %v1818_v63, %v922_v14  ;;  %v944_v6 = vld [vmem:[%s4116_s6 + $0xf50] sm:$0xff] }
 0x1a1   : > { %5331 = vst [vmem:[#allocation72_spill] sm:$0xff] %v4900_v17  ;;  %v1806_v27 = vmax.f32 %v1805_v16, %v921_v2  ;;  %v1832_v33 = vmax.f32 %v1831_v43, %v923_v18  ;;  %v1857_v51 = vmax.f32 %v909_v9, %v917_v50  ;;  %v941_v17 = vld [vmem:[%s4116_s6 + $0xf38] sm:$0xff]  ;;  %v1769_v15 = vmax.f32 %v1768_v22, %v934_v38  ;;  %v946_v4 = vld [vmem:[%s4116_s6 + $0xf60] sm:$0xff]  ;;  %v951_v7 = vld [vmem:[%s4116_s6 + $0xf88] sm:$0xff] }
 0x1a2   : > { %v945_v26 = vld [vmem:[%s4116_s6 + $0xf58] sm:$0xff]  ;;  %v1782_v58 = vmax.f32 %v1781_v10, %v935_v28  ;;  %v1794_v44 = vmax.f32 %v1793_v37, %v928_v53  ;;  %v1845_v56 = vmax.f32 %v1844_v36, %v924_v13  ;;  %v950_v32 = vld [vmem:[%s4116_s6 + $0xf80] sm:$0xff]  ;;  %v1820_v63 = vmax.f32 %v1819_v23, %v930_v34  ;;  %v947_v50 = vld [vmem:[%s4116_s6 + $0xf68] sm:$0xff] }
 0x1a3   : > { %v1807_v16 = vmax.f32 %v1806_v27, %v929_v19  ;;  %v1833_v2 = vmax.f32 %v1832_v33, %v931_v57  ;;  %v1858_v9 = vmax.f32 %v1857_v51, %v925_v54  ;;  %v948_v14 = vld [vmem:[%s4116_s6 + $0xf70] sm:$0xff]  ;;  %v949_v18 = vld [vmem:[%s4116_s6 + $0xf78] sm:$0xff]  ;;  %v1770_v38 = vmax.f32 %v1769_v15, %v942_v48  ;;  %v958_v22 = vld [vmem:[%s4116_s6 + $0xfc0] sm:$0xff] }
 0x1a4   : > { %v1783_v28 = vmax.f32 %v1782_v58, %v943_v47  ;;  %v1795_v53 = vmax.f32 %v1794_v44, %v936_v3  ;;  %v1846_v13 = vmax.f32 %v1845_v56, %v932_v41  ;;  %v952_v43 = vld [vmem:[%s4116_s6 + $0xf90] sm:$0xff]  ;;  %v959_v10 = vld [vmem:[%s4116_s6 + $0xfc8] sm:$0xff]  ;;  %v1821_v34 = vmax.f32 %v1820_v63, %v938_v1  ;;  %v953_v37 = vld [vmem:[%s4116_s6 + $0xf98] sm:$0xff] }
 0x1a5   : > { %v1808_v19 = vmax.f32 %v1807_v16, %v937_v21  ;;  %v1834_v57 = vmax.f32 %v1833_v2, %v939_v46  ;;  %v1859_v54 = vmax.f32 %v1858_v9, %v933_v40  ;;  %v954_v36 = vld [vmem:[%s4116_s6 + $0xfa0] sm:$0xff]  ;;  %v955_v27 = vld [vmem:[%s4116_s6 + $0xfa8] sm:$0xff]  ;;  %v1771_v48 = vmax.f32 %v1770_v38, %v950_v32  ;;  %v956_v23 = vld [vmem:[%s4116_s6 + $0xfb0] sm:$0xff] }
 0x1a6   : > { %v1784_v47 = vmax.f32 %v1783_v28, %v951_v7  ;;  %v1796_v3 = vmax.f32 %v1795_v53, %v944_v6  ;;  %v1847_v41 = vmax.f32 %v1846_v13, %v940_v39  ;;  %v957_v33 = vld [vmem:[%s4116_s6 + $0xfb8] sm:$0xff]  ;;  %v960_v51 = vld [vmem:[%s4116_s6 + $0xfd0] sm:$0xff]  ;;  %v1822_v21 = vmax.f32 %v1821_v34, %v946_v4  ;;  %v962_v40 = vld [vmem:[%s4116_s6 + $0xfe0] sm:$0xff] }
 0x1a7   : > { %v1809_v15 = vmax.f32 %v1808_v19, %v945_v26  ;;  %v1835_v1 = vmax.f32 %v1834_v57, %v947_v50  ;;  %v1860_v46 = vmax.f32 %v1859_v54, %v941_v17  ;;  %v961_v58 = vld [vmem:[%s4116_s6 + $0xfd8] sm:$0xff]  ;;  %v963_v44 = vld [vmem:[%s4116_s6 + $0xfe8] sm:$0xff]  ;;  %v1772_v56 = vmax.f32 %v1771_v48, %v958_v22  ;;  %v964_v32 = vld [vmem:[%s4116_s6 + $0xff0] sm:$0xff] }
 0x1a8   : > { %v1785_v16 = vmax.f32 %v1784_v47, %v959_v10  ;;  %v1797_v63 = vmax.f32 %v1796_v3, %v952_v43  ;;  %v1848_v2 = vmax.f32 %v1847_v41, %v948_v14  ;;  %v1823_v6 = vmax.f32 %v1822_v21, %v954_v36  ;;  %v965_v38 = vld [vmem:[%s4116_s6 + $0xff8] sm:$0xff] }
 0x1a9   : > { %v1810_v7 = vmax.f32 %v1809_v15, %v953_v37  ;;  %v1836_v9 = vmax.f32 %v1835_v1, %v955_v27  ;;  %v1861_v39 = vmax.f32 %v1860_v46, %v949_v18  ;;  %v1773_v28 = vrot.slane %v1772_v56, 4 }
 0x1aa   : > { %v1786_v53 = vrot.slane %v1785_v16, 4  ;;  %v1798_v26 = vmax.f32 %v1797_v63, %v960_v51  ;;  %v1849_v13 = vmax.f32 %v1848_v2, %v956_v23  ;;  %v1824_v50 = vmax.f32 %v1823_v6, %v962_v40 }
 0x1ab   : > { %v1811_v4 = vmax.f32 %v1810_v7, %v961_v58  ;;  %v1837_v17 = vmax.f32 %v1836_v9, %v963_v44  ;;  %v1862_v19 = vmax.f32 %v1861_v39, %v957_v33  ;;  %v1774_v34 = vmax.f32 %v1772_v56, %v1773_v28 }
 0x1ac   : > { %v1787_v57 = vmax.f32 %v1785_v16, %v1786_v53  ;;  %v1799_v22 = vrot.slane %v1798_v26, 4  ;;  %v1850_v10 = vmax.f32 %v1849_v13, %v964_v32  ;;  %v1825_v14 = vrot.slane %v1824_v50, 4 }
 0x1ad   : > { %v1812_v43 = vrot.slane %v1811_v4, 4  ;;  %v1838_v54 = vrot.slane %v1837_v17, 4  ;;  %v1863_v37 = vmax.f32 %v1862_v19, %v965_v38  ;;  %v1775_v36 = vrot.slane %v1774_v34, 2 }
 0x1ae   : > { %v1788_v27 = vrot.slane %v1787_v57, 2  ;;  %v1800_v18 = vmax.f32 %v1798_v26, %v1799_v22  ;;  %v1851_v48 = vrot.slane %v1850_v10, 4  ;;  %v1826_v3 = vmax.f32 %v1824_v50, %v1825_v14 }
 0x1af   : > { %v1813_v47 = vmax.f32 %v1811_v4, %v1812_v43  ;;  %v1839_v41 = vmax.f32 %v1837_v17, %v1838_v54  ;;  %v1864_v23 = vrot.slane %v1863_v37, 4  ;;  %v1776_v51 = vmax.f32 %v1774_v34, %v1775_v36 }
 0x1b0   : > { %v1789_v15 = vmax.f32 %v1787_v57, %v1788_v27  ;;  %v1801_v21 = vrot.slane %v1800_v18, 2  ;;  %v1852_v33 = vmax.f32 %v1850_v10, %v1851_v48  ;;  %v1827_v46 = vrot.slane %v1826_v3, 2  ;;  %v5335_v48 = vld [vmem:[#allocation55_spill] sm:$0xff] }
 0x1b1   : > { %v1814_v1 = vrot.slane %v1813_v47, 2  ;;  %v1840_v58 = vrot.slane %v1839_v41, 2  ;;  %v1865_v40 = vmax.f32 %v1863_v37, %v1864_v23  ;;  %v1777_v44 = vrot.slane %v1776_v51, 1 }
 0x1b2   : > { %v1790_v56 = vrot.slane %v1789_v15, 1  ;;  %v1802_v16 = vmax.f32 %v1800_v18, %v1801_v21  ;;  %v1853_v63 = vrot.slane %v1852_v33, 2  ;;  %v1828_v32 = vmax.f32 %v1826_v3, %v1827_v46  ;;  %v5334_v18 = vld [vmem:[#allocation61_spill] sm:$0xff]  ;;  %v5337_v3 = vld [vmem:[#allocation68_spill] sm:$0xff] }
 0x1b3   : > { %v1815_v2 = vmax.f32 %v1813_v47, %v1814_v1  ;;  %v1841_v7 = vmax.f32 %v1839_v41, %v1840_v58  ;;  %v1866_v6 = vrot.slane %v1865_v40, 2  ;;  %v1778_v9 = vmax.f32 %v1776_v51, %v1777_v44  ;;  %v5336_v47 = vld [vmem:[#allocation67_spill] sm:$0xff]  ;;  %v5338_v41 = vld [vmem:[#allocation62_spill] sm:$0xff] }
 0x1b4   : > { %v1791_v39 = vmax.f32 %v1789_v15, %v1790_v56  ;;  %v1803_v38 = vrot.slane %v1802_v16, 1  ;;  %v1854_v28 = vmax.f32 %v1852_v33, %v1853_v63  ;;  %v1829_v26 = vrot.slane %v1828_v32, 1  ;;  %v5339_v51 = vld [vmem:[#allocation38_spill] sm:$0xff]  ;;  %v5342_v56 = vld [vmem:[#allocation51_spill] sm:$0xff] }
 0x1b5   : > { %v1816_v53 = vrot.slane %v1815_v2, 1  ;;  %v1842_v13 = vrot.slane %v1841_v7, 1  ;;  %v1867_v4 = vmax.f32 %v1865_v40, %v1866_v6  ;;  %v1935_v43 = vsel %vm1934_vm0, %v4353_v30, %v4260_v59  ;;  %v5340_v15 = vld [vmem:[#allocation42_spill] sm:$0xff]  ;;  %v5343_v63 = vld [vmem:[#allocation39_spill] sm:$0xff]  ;;  %v5346_v6 = vld [vmem:[#allocation44_spill] sm:$0xff] }
 0x1b6   : > { %v1804_v50 = vmax.f32 %v1802_v16, %v1803_v38  ;;  %v1855_v17 = vrot.slane %v1854_v28, 1  ;;  %v4937_v34 = vmax.f32 %v1828_v32, %v1829_v26  ;;  %v1937_v54 = vsel %vm1936_vm1, %v4454_v35, %v1935_v43  ;;  %v5341_v58 = vld [vmem:[#allocation46_spill] sm:$0xff]  ;;  %v5348_v38 = vld [vmem:[#allocation47_spill] sm:$0xff]  ;;  %v5353_v43 = vld [vmem:[#allocation52_spill] sm:$0xff] }
 0x1b7   : > { %v1817_v19 = vmax.f32 %v1815_v2, %v1816_v53  ;;  %v4939_v57 = vmax.f32 %v1841_v7, %v1842_v13  ;;  %v1868_v22 = vrot.slane %v1867_v4, 1  ;;  %v1939_v37 = vsel %vm1938_vm2, %v4555_v20, %v1937_v54  ;;  %v5344_v2 = vld [vmem:[#allocation43_spill] sm:$0xff]  ;;  %v5345_v7 = vld [vmem:[#allocation40_spill] sm:$0xff]  ;;  %v5350_v13 = vld [vmem:[#allocation41_spill] sm:$0xff] }
 0x1b8   : > { %v4941_v10 = vmax.f32 %v1854_v28, %v1855_v17  ;;  %v1948_v36 = vsel %vm1934_vm0, %v4355_v31, %v4262_v60  ;;  %v1955_v59 = vsel %vm1934_vm0, %v4371_v49, %v4264_v61  ;;  %v1941_v30 = vsel %vm1940_vm3, %v4656_v12, %v1939_v37  ;;  %v5349_v53 = vld [vmem:[#allocation48_spill] sm:$0xff]  ;;  %v1030_v17 = vld [vmem:[#allocation2] sm:$0xff]  ;;  %v5354_v37 = vld [vmem:[#allocation53_spill] sm:$0xff] }
 0x1b9   : > { %v4946_v14 = vmax.f32 %v1867_v4, %v1868_v22  ;;  %v1949_v35 = vsel %vm1936_vm1, %v4456_v42, %v1948_v36  ;;  %v1956_v27 = vsel %vm1936_vm1, %v4472_v52, %v1955_v59  ;;  %v1962_v20 = vsel %vm1934_vm0, %v4377_v62, %v4270_v5  ;;  %v5332_v62 = vld [vmem:[#allocation50_spill] sm:$0xff]  ;;  %v5351_v4 = vld [vmem:[#allocation45_spill] sm:$0xff] }
 0x1ba   : > { %v1943_v60 = vsel %vm1942_vm4, %v4757_v45, %v1941_v30  ;;  %v1950_v31 = vsel %vm1938_vm2, %v4557_v0, %v1949_v35  ;;  %v1957_v61 = vsel %vm1938_vm2, %v4573_v55, %v1956_v27  ;;  %v1963_v49 = vsel %vm1936_vm1, %v4478_v24, %v1962_v20  ;;  %v5333_v45 = vld [vmem:[#allocation60_spill] sm:$0xff]  ;;  %v5355_v59 = vld [vmem:[#allocation49_spill] sm:$0xff] }
 0x1bb   : > { %v1945_v42 = vsel %vm1944_vm5, %v4858_v25, %v1943_v60  ;;  %v1951_v52 = vsel %vm1940_vm3, %v4658_v29, %v1950_v31  ;;  %v1958_v5 = vsel %vm1940_vm3, %v4674_v8, %v1957_v61  ;;  %v1964_v12 = vsel %vm1938_vm2, %v5332_v62, %v1963_v49  ;;  %v5040_v35 = vld [vmem:[%s4123_s12] sm:$0xff]  ;;  %v5043_v27 = vld [vmem:[%s4123_s12 + $0x8] sm:$0xff] }
 0x1bc   : > { %v4984_v0 = vsel %vm1946_vm6, %v1778_v9, %v1945_v42  ;;  %v1952_v55 = vsel %vm1942_vm4, %v5333_v45, %v1951_v52  ;;  %v1959_v24 = vsel %vm1942_vm4, %v5334_v18, %v1958_v5  ;;  %v1965_v25 = vsel %vm1940_vm3, %v5335_v48, %v1964_v12  ;;  %v1031_v20 = vld [vmem:[#allocation2 + $0x8] sm:$0xff]  ;;  %v5356_v60 = vld [vmem:[#allocation69_spill] sm:$0xff]  ;;  %v5358_v42 = vld [vmem:[#allocation58_spill] sm:$0xff] }
 0x1bd   : > { %v1953_v29 = vsel %vm1944_vm5, %v5336_v47, %v1952_v55  ;;  %v1960_v8 = vsel %vm1944_vm5, %v5337_v3, %v1959_v24  ;;  %v1966_v23 = vsel %vm1942_vm4, %v5338_v41, %v1965_v25  ;;  %v1969_v21 = vsel %vm1934_vm0, %v5340_v15, %v5339_v51  ;;  %v5357_v61 = vld [vmem:[#allocation57_spill] sm:$0xff]  ;;  %v5359_v5 = vld [vmem:[#allocation54_spill] sm:$0xff]  ;;  %v5054_v12 = vld [vmem:[%s4123_s12 + $0x40] sm:$0xff] }
 0x1be   : > { %v5002_v33 = vsel %vm1946_vm6, %v1791_v39, %v1953_v29  ;;  %v5005_v1 = vsel %vm1946_vm6, %v1804_v50, %v1960_v8  ;;  %v1967_v46 = vsel %vm1944_vm5, %v4882_v11, %v1966_v23  ;;  %v1970_v40 = vsel %vm1936_vm1, %v5341_v58, %v1969_v21  ;;  %v5347_v39 = vld [vmem:[#allocation56_spill] sm:$0xff]  ;;  %v1033_v3 = vld [vmem:[#allocation2 + $0x18] sm:$0xff]  ;;  %v1034_v8 = vld [vmem:[#allocation2 + $0x20] sm:$0xff] }
 0x1bf   : > { %v5012_v44 = vsel %vm1946_vm6, %v1817_v19, %v1967_v46  ;;  %v1971_v16 = vsel %vm1938_vm2, %v5342_v56, %v1970_v40  ;;  %v1976_v32 = vsel %vm1934_vm0, %v5344_v2, %v5343_v63  ;;  %v1983_v9 = vsel %vm1934_vm0, %v5346_v6, %v5345_v7  ;;  %v5352_v19 = vld [vmem:[#allocation63_spill] sm:$0xff]  ;;  %v5057_v45 = vld [vmem:[%s4123_s12 + $0x48] sm:$0xff]  ;;  %v968_v40 = vld [vmem:[%s4123_s12 + $0x10] sm:$0xff] }
 0x1c0   : > { %v1972_v11 = vsel %vm1940_vm3, %v5347_v39, %v1971_v16  ;;  %v1977_v28 = vsel %vm1936_vm1, %v5348_v38, %v1976_v32  ;;  %v1984_v26 = vsel %vm1936_vm1, %v5349_v53, %v1983_v9  ;;  %v1990_v50 = vsel %vm1934_vm0, %v5351_v4, %v5350_v13  ;;  %v5060_v55 = vld [vmem:[%s4123_s12 + $0x80] sm:$0xff]  ;;  %v5063_v18 = vld [vmem:[%s4123_s12 + $0x88] sm:$0xff]  ;;  %v1037_v63 = vld [vmem:[#allocation2 + $0x38] sm:$0xff] }
 0x1c1   : > { %v1973_v22 = vsel %vm1942_vm4, %v5352_v19, %v1972_v11  ;;  %v1978_v54 = vsel %vm1938_vm2, %v5353_v43, %v1977_v28  ;;  %v1985_v36 = vsel %vm1938_vm2, %v5354_v37, %v1984_v26  ;;  %v1991_v30 = vsel %vm1936_vm1, %v5355_v59, %v1990_v50  ;;  %v5066_v24 = vld [vmem:[%s4123_s12 + $0xc0] sm:$0xff]  ;;  %v5069_v48 = vld [vmem:[%s4123_s12 + $0xc8] sm:$0xff]  ;;  %v5363_v2 = vld [vmem:[#allocation70_spill] sm:$0xff] }
 0x1c2   : > { %v1974_v31 = vsel %vm1944_vm5, %v5356_v60, %v1973_v22  ;;  %v1979_v49 = vsel %vm1940_vm3, %v5357_v61, %v1978_v54  ;;  %v1986_v52 = vsel %vm1940_vm3, %v5358_v42, %v1985_v36  ;;  %v1992_v62 = vsel %vm1938_vm2, %v5359_v5, %v1991_v30  ;;  %v5072_v25 = vld [vmem:[%s4123_s12 + $0x100] sm:$0xff]  ;;  %v5075_v47 = vld [vmem:[%s4123_s12 + $0x108] sm:$0xff]  ;;  %v5365_v6 = vld [vmem:[#allocation66_spill] sm:$0xff] }
 0x1c3   : > { %v1032_v29 = vld [vmem:[#allocation2 + $0x10] sm:$0xff]  ;;  %v1975_v41 = vsel %vm1946_vm6, %v4937_v34, %v1974_v31  ;;  %v5362_v46 = vld [vmem:[#allocation59_spill] sm:$0xff]  ;;  %v2005_v39 = vmax.f32 %v1030_v17, %v4984_v0  ;;  %v976_v11 = vld [vmem:[%s4123_s12 + $0x50] sm:$0xff]  ;;  %v2006_v19 = vmax.f32 %v1031_v20, %v5002_v33  ;;  %v2035_v42 = vmax.f32 %v5054_v12, %v5057_v45 }
 0x1c4   : > { %v5360_v23 = vld [vmem:[#allocation64_spill] sm:$0xff]  ;;  %v5361_v15 = vld [vmem:[#allocation65_spill] sm:$0xff]  ;;  %v1993_v58 = vsel %vm1940_vm3, %v5362_v46, %v1992_v62  ;;  %v5364_v32 = vld [vmem:[#allocation71_spill] sm:$0xff]  ;;  %v2009_v37 = vmax.f32 %v1034_v8, %v1975_v41  ;;  %v2061_v5 = vmax.f32 %v5066_v24, %v5069_v48 }
 0x1c5   : > { %v1980_v51 = vsel %vm1942_vm4, %v5360_v23, %v1979_v49  ;;  %v1987_v21 = vsel %vm1942_vm4, %v5361_v15, %v1986_v52  ;;  %v1035_v56 = vld [vmem:[#allocation2 + $0x28] sm:$0xff]  ;;  %v1036_v16 = vld [vmem:[#allocation2 + $0x30] sm:$0xff]  ;;  %v1994_v9 = vsel %vm1942_vm4, %v5365_v6, %v1993_v58  ;;  %v5105_v0 = vld [vmem:[%s4123_s12 + $0x18] sm:$0xff]  ;;  %2013 = vst [vmem:[#allocation2] sm:$0xff] %v2005_v39  ;;  %v2048_v52 = vmax.f32 %v5060_v55, %v5063_v18 }
 0x1c6   : > { %v1981_v34 = vsel %vm1944_vm5, %v5363_v2, %v1980_v51  ;;  %v1988_v7 = vsel %vm1944_vm5, %v5364_v32, %v1987_v21  ;;  %v1006_v38 = vld [vmem:[%s4123_s12 + $0x140] sm:$0xff]  ;;  %v1007_v28 = vld [vmem:[%s4123_s12 + $0x148] sm:$0xff]  ;;  %v5115_v36 = vld [vmem:[%s4123_s12 + $0x58] sm:$0xff]  ;;  %2014 = vst [vmem:[#allocation2 + $0x8] sm:$0xff] %v2006_v19  ;;  %v2036_v8 = vmax.f32 %v2035_v42, %v976_v11 }
 0x1c7   : > { %v1014_v53 = vld [vmem:[%s4123_s12 + $0x180] sm:$0xff]  ;;  %v1982_v26 = vsel %vm1946_vm6, %v4939_v57, %v1981_v34  ;;  %v1989_v13 = vsel %vm1946_vm6, %v4941_v10, %v1988_v7  ;;  %v1015_v17 = vld [vmem:[%s4123_s12 + $0x188] sm:$0xff]  ;;  %v2007_v57 = vmax.f32 %v1032_v29, %v5005_v1  ;;  %v2008_v10 = vmax.f32 %v1033_v3, %v5012_v44  ;;  %v984_v33 = vld [vmem:[%s4123_s12 + $0x90] sm:$0xff]  ;;  %2017 = vst [vmem:[#allocation2 + $0x20] sm:$0xff] %v2009_v37 }
 0x1c8   : > { %v5366_v4 = vld [vmem:[#allocation72_spill] sm:$0xff]  ;;  %v992_v59 = vld [vmem:[%s4123_s12 + $0xd0] sm:$0xff]  ;;  %v2010_v20 = vmax.f32 %v1035_v56, %v1982_v26  ;;  %v2011_v60 = vmax.f32 %v1036_v16, %v1989_v13  ;;  %v985_v62 = vld [vmem:[%s4123_s12 + $0x98] sm:$0xff]  ;;  %v2087_v45 = vmax.f32 %v1006_v38, %v1007_v28  ;;  %v2100_v55 = vmax.f32 %v1014_v53, %v1015_v17 }
 0x1c9   : > { %v1995_v50 = vsel %vm1944_vm5, %v5366_v4, %v1994_v9  ;;  %v1022_v22 = vld [vmem:[%s4123_s12 + $0x1c0] sm:$0xff]  ;;  %v1023_v43 = vld [vmem:[%s4123_s12 + $0x1c8] sm:$0xff]  ;;  %v1000_v30 = vld [vmem:[%s4123_s12 + $0x110] sm:$0xff]  ;;  %2015 = vst [vmem:[#allocation2 + $0x10] sm:$0xff] %v2007_v57  ;;  %v2049_v41 = vmax.f32 %v2048_v52, %v984_v33  ;;  %v2062_v23 = vmax.f32 %v2061_v5, %v992_v59  ;;  %v2037_v6 = vmax.f32 %v2036_v8, %v5115_v36 }
 0x1ca   : > { %v1996_v54 = vsel %vm1946_vm6, %v4946_v14, %v1995_v50  ;;  %v2022_v14 = vmax.f32 %v5040_v35, %v5043_v27  ;;  %v970_v1 = vld [vmem:[%s4123_s12 + $0x20] sm:$0xff]  ;;  %v1008_v44 = vld [vmem:[%s4123_s12 + $0x150] sm:$0xff]  ;;  %2016 = vst [vmem:[#allocation2 + $0x18] sm:$0xff] %v2008_v10  ;;  %v2074_v35 = vmax.f32 %v5072_v25, %v5075_v47  ;;  %v993_v29 = vld [vmem:[%s4123_s12 + $0xd8] sm:$0xff]  ;;  %v2113_v18 = vmax.f32 %v1022_v22, %v1023_v43 }
 0x1cb   : > { %v2012_v31 = vmax.f32 %v1037_v63, %v1996_v54  ;;  %v1016_v61 = vld [vmem:[%s4123_s12 + $0x190] sm:$0xff]  ;;  %v978_v27 = vld [vmem:[%s4123_s12 + $0x60] sm:$0xff]  ;;  %v1001_v3 = vld [vmem:[%s4123_s12 + $0x118] sm:$0xff]  ;;  %2018 = vst [vmem:[#allocation2 + $0x28] sm:$0xff] %v2010_v20  ;;  %v2088_v56 = vmax.f32 %v2087_v45, %v1008_v44  ;;  %v2050_v9 = vmax.f32 %v2049_v41, %v985_v62  ;;  %v2063_v39 = vmax.f32 %v2062_v23, %v993_v29 }
 0x1cc   : > { %v1024_v49 = vld [vmem:[%s4123_s12 + $0x1d0] sm:$0xff]  ;;  %2019 = vst [vmem:[#allocation2 + $0x30] sm:$0xff] %v2011_v60  ;;  %v2023_v12 = vmax.f32 %v2022_v14, %v968_v40  ;;  %v971_v24 = vld [vmem:[%s4123_s12 + $0x28] sm:$0xff]  ;;  %v1009_v48 = vld [vmem:[%s4123_s12 + $0x158] sm:$0xff]  ;;  %v2075_v51 = vmax.f32 %v2074_v35, %v1000_v30  ;;  %v2101_v16 = vmax.f32 %v2100_v55, %v1016_v61  ;;  %v2038_v54 = vmax.f32 %v2037_v6, %v978_v27 }
 0x1cd   : > { %2020 = vst [vmem:[#allocation2 + $0x38] sm:$0xff] %v2012_v31  ;;  %v1017_v25 = vld [vmem:[%s4123_s12 + $0x198] sm:$0xff]  ;;  %v979_v15 = vld [vmem:[%s4123_s12 + $0x68] sm:$0xff]  ;;  %v986_v21 = vld [vmem:[%s4123_s12 + $0xa0] sm:$0xff]  ;;  %v2114_v63 = vmax.f32 %v2113_v18, %v1024_v49  ;;  %v2089_v4 = vmax.f32 %v2088_v56, %v1009_v48 }
 0x1ce   : > { %v1025_v47 = vld [vmem:[%s4123_s12 + $0x1d8] sm:$0xff]  ;;  %v994_v46 = vld [vmem:[%s4123_s12 + $0xe0] sm:$0xff]  ;;  %v2024_v40 = vmax.f32 %v2023_v12, %v5105_v0  ;;  %v972_v2 = vld [vmem:[%s4123_s12 + $0x30] sm:$0xff]  ;;  %v2076_v11 = vmax.f32 %v2075_v51, %v1001_v3  ;;  %v2102_v50 = vmax.f32 %v2101_v16, %v1017_v25  ;;  %v2051_v57 = vmax.f32 %v2050_v9, %v986_v21 }
 0x1cf   : > { %v1002_v58 = vld [vmem:[%s4123_s12 + $0x120] sm:$0xff]  ;;  %v980_v38 = vld [vmem:[%s4123_s12 + $0x70] sm:$0xff]  ;;  %v987_v28 = vld [vmem:[%s4123_s12 + $0xa8] sm:$0xff]  ;;  %v2115_v19 = vmax.f32 %v2114_v63, %v1025_v47  ;;  %v2064_v10 = vmax.f32 %v2063_v39, %v994_v46  ;;  %v2039_v49 = vmax.f32 %v2038_v54, %v979_v15 }
 0x1d0   : > { %v1010_v34 = vld [vmem:[%s4123_s12 + $0x160] sm:$0xff]  ;;  %v995_v53 = vld [vmem:[%s4123_s12 + $0xe8] sm:$0xff]  ;;  %v2025_v13 = vmax.f32 %v2024_v40, %v970_v1  ;;  %v973_v0 = vld [vmem:[%s4123_s12 + $0x38] sm:$0xff]  ;;  %v2077_v37 = vmax.f32 %v2076_v11, %v1002_v58  ;;  %v2052_v42 = vmax.f32 %v2051_v57, %v987_v28 }
 0x1d1   : > { %v1018_v32 = vld [vmem:[%s4123_s12 + $0x1a0] sm:$0xff]  ;;  %v1003_v26 = vld [vmem:[%s4123_s12 + $0x128] sm:$0xff]  ;;  %v981_v36 = vld [vmem:[%s4123_s12 + $0x78] sm:$0xff]  ;;  %v2090_v60 = vmax.f32 %v2089_v4, %v1010_v34  ;;  %v2065_v52 = vmax.f32 %v2064_v10, %v995_v53  ;;  %v2040_v48 = vmax.f32 %v2039_v49, %v980_v38 }
 0x1d2   : > { %v1026_v7 = vld [vmem:[%s4123_s12 + $0x1e0] sm:$0xff]  ;;  %v1011_v17 = vld [vmem:[%s4123_s12 + $0x168] sm:$0xff]  ;;  %v988_v33 = vld [vmem:[%s4123_s12 + $0xb0] sm:$0xff]  ;;  %v2026_v20 = vmax.f32 %v2025_v13, %v971_v24  ;;  %v2103_v31 = vmax.f32 %v2102_v50, %v1018_v32  ;;  %v2078_v5 = vmax.f32 %v2077_v37, %v1003_v26 }
 0x1d3   : > { %v1019_v22 = vld [vmem:[%s4123_s12 + $0x1a8] sm:$0xff]  ;;  %v996_v59 = vld [vmem:[%s4123_s12 + $0xf0] sm:$0xff]  ;;  %v2116_v14 = vmax.f32 %v2115_v19, %v1026_v7  ;;  %v989_v35 = vld [vmem:[%s4123_s12 + $0xb8] sm:$0xff]  ;;  %v2091_v3 = vmax.f32 %v2090_v60, %v1011_v17  ;;  %v2053_v25 = vmax.f32 %v2052_v42, %v988_v33  ;;  %v2041_v21 = vmax.f32 %v2040_v48, %v981_v36 }
 0x1d4   : > { %v1027_v43 = vld [vmem:[%s4123_s12 + $0x1e8] sm:$0xff]  ;;  %v1004_v30 = vld [vmem:[%s4123_s12 + $0x130] sm:$0xff]  ;;  %v997_v27 = vld [vmem:[%s4123_s12 + $0xf8] sm:$0xff]  ;;  %v2027_v29 = vmax.f32 %v2026_v20, %v972_v2  ;;  %v2104_v12 = vmax.f32 %v2103_v31, %v1019_v22  ;;  %v2066_v47 = vmax.f32 %v2065_v52, %v996_v59 }
 0x1d5   : > { %v1012_v1 = vld [vmem:[%s4123_s12 + $0x170] sm:$0xff]  ;;  %v1005_v62 = vld [vmem:[%s4123_s12 + $0x138] sm:$0xff]  ;;  %v2117_v45 = vmax.f32 %v2116_v14, %v1027_v43  ;;  %v2079_v8 = vmax.f32 %v2078_v5, %v1004_v30  ;;  %v2054_v46 = vmax.f32 %v2053_v25, %v989_v35  ;;  %v2042_v34 = vrot.slane %v2041_v21, 4 }
 0x1d6   : > { %v1020_v44 = vld [vmem:[%s4123_s12 + $0x1b0] sm:$0xff]  ;;  %v1013_v55 = vld [vmem:[%s4123_s12 + $0x178] sm:$0xff]  ;;  %v2028_v41 = vmax.f32 %v2027_v29, %v973_v0  ;;  %v2092_v23 = vmax.f32 %v2091_v3, %v1012_v1  ;;  %v2067_v58 = vmax.f32 %v2066_v47, %v997_v27 }
 0x1d7   : > { %v1028_v61 = vld [vmem:[%s4123_s12 + $0x1f0] sm:$0xff]  ;;  %v1021_v18 = vld [vmem:[%s4123_s12 + $0x1b8] sm:$0xff]  ;;  %v2105_v51 = vmax.f32 %v2104_v12, %v1020_v44  ;;  %v2080_v40 = vmax.f32 %v2079_v8, %v1005_v62  ;;  %v2055_v32 = vrot.slane %v2054_v46, 4  ;;  %v2043_v28 = vmax.f32 %v2041_v21, %v2042_v34  ;;  %v2173_v21 = vld [vmem:[#allocation9 + $0x80] sm:$0xff] (!%p2947_p1) }
 0x1d8   : > { %v1029_v24 = vld [vmem:[%s4123_s12 + $0x1f8] sm:$0xff]  ;;  %v2118_v15 = vmax.f32 %v2117_v45, %v1028_v61  ;;  %v2029_v56 = vrot.slane %v2028_v41, 4  ;;  %v2093_v16 = vmax.f32 %v2092_v23, %v1013_v55  ;;  %v2068_v7 = vrot.slane %v2067_v58, 4 }
 0x1d9   : > { %v2106_v63 = vmax.f32 %v2105_v51, %v1021_v18  ;;  %v2081_v6 = vrot.slane %v2080_v40, 4  ;;  %v2056_v53 = vmax.f32 %v2054_v46, %v2055_v32  ;;  %v2044_v17 = vrot.slane %v2043_v28, 2  ;;  %v2021_v8 = vld [vmem:[#allocation3] sm:$0xff]  ;;  %v2174_v46 = vld [vmem:[#allocation9 + $0x88] sm:$0xff] (!%p2947_p1)  ;;  %v2189_v32 = vld [vmem:[#allocation9 + $0x100] sm:$0xff] (!%p2947_p1) }
 0x1da   : > { %v2119_v2 = vmax.f32 %v2118_v15, %v1029_v24  ;;  %v2030_v9 = vmax.f32 %v2028_v41, %v2029_v56  ;;  %v2094_v39 = vrot.slane %v2093_v16, 4  ;;  %v2069_v26 = vmax.f32 %v2067_v58, %v2068_v7  ;;  %v2157_v58 = vld [vmem:[#allocation9] sm:$0xff] (!%p2947_p1)  ;;  %v2158_v56 = vld [vmem:[#allocation9 + $0x8] sm:$0xff] (!%p2947_p1) }
 0x1db   : > { %v2107_v11 = vrot.slane %v2106_v63, 4  ;;  %v2082_v13 = vmax.f32 %v2080_v40, %v2081_v6  ;;  %v2057_v22 = vrot.slane %v2056_v53, 2  ;;  %v2045_v33 = vmax.f32 %v2043_v28, %v2044_v17  ;;  %v2190_v7 = vld [vmem:[#allocation9 + $0x108] sm:$0xff] (!%p2947_p1)  ;;  %v2175_v6 = vld [vmem:[#allocation9 + $0x90] sm:$0xff] (!%p2947_p1) }
 0x1dc   : > { %v2120_v38 = vrot.slane %v2119_v2, 4  ;;  %v2031_v4 = vrot.slane %v2030_v9, 2  ;;  %v2095_v50 = vmax.f32 %v2093_v16, %v2094_v39  ;;  %v2070_v43 = vrot.slane %v2069_v26, 2  ;;  %v2205_v16 = vld [vmem:[#allocation9 + $0x180] sm:$0xff] (!%p2947_p1)  ;;  %v2176_v39 = vld [vmem:[#allocation9 + $0x98] sm:$0xff] (!%p2947_p1)  ;;  %v2178_v17 = vld [vmem:[#allocation9 + $0xa8] sm:$0xff] (!%p2947_p1) }
 0x1dd   : > { %v2108_v19 = vmax.f32 %v2106_v63, %v2107_v11  ;;  %v2083_v54 = vrot.slane %v2082_v13, 2  ;;  %v2058_v59 = vmax.f32 %v2056_v53, %v2057_v22  ;;  %v2046_v44 = vrot.slane %v2045_v33, 1  ;;  %v2206_v63 = vld [vmem:[#allocation9 + $0x188] sm:$0xff] (!%p2947_p1)  ;;  %v2159_v11 = vld [vmem:[#allocation9 + $0x10] sm:$0xff] (!%p2947_p1) }
 0x1de   : > { %v2121_v0 = vmax.f32 %v2119_v2, %v2120_v38  ;;  %v2032_v57 = vmax.f32 %v2030_v9, %v2031_v4  ;;  %v2096_v10 = vrot.slane %v2095_v50, 2  ;;  %v2071_v30 = vmax.f32 %v2069_v26, %v2070_v43  ;;  %v2160_v38 = vld [vmem:[#allocation9 + $0x18] sm:$0xff] (!%p2947_p1)  ;;  %v2207_v26 = vld [vmem:[#allocation9 + $0x190] sm:$0xff] (!%p2947_p1) }
 0x1df   : > { %v2109_v37 = vrot.slane %v2108_v19, 2  ;;  %v2084_v20 = vmax.f32 %v2082_v13, %v2083_v54  ;;  %v2059_v61 = vrot.slane %v2058_v59, 1  ;;  %v2047_v27 = vmax.f32 %v2045_v33, %v2046_v44  ;;  %v2208_v13 = vld [vmem:[#allocation9 + $0x198] sm:$0xff] (!%p2947_p1)  ;;  %v2191_v4 = vld [vmem:[#allocation9 + $0x110] sm:$0xff] (!%p2947_p1)  ;;  %v2161_v54 = vld [vmem:[#allocation9 + $0x20] sm:$0xff] (!%p2947_p1) }
 0x1e0   : > { %v2122_v36 = vrot.slane %v2121_v0, 2  ;;  %v2033_v60 = vrot.slane %v2032_v57, 1  ;;  %v2097_v31 = vmax.f32 %v2095_v50, %v2096_v10  ;;  %v2072_v49 = vrot.slane %v2071_v30, 1  ;;  %v2209_v10 = vld [vmem:[#allocation9 + $0x1a0] sm:$0xff] (!%p2947_p1)  ;;  %v2194_v33 = vld [vmem:[#allocation9 + $0x128] sm:$0xff] (!%p2947_p1)  ;;  %v2164_v44 = vld [vmem:[#allocation9 + $0x38] sm:$0xff] (!%p2947_p1) }
 0x1e1   : > { %v2110_v14 = vmax.f32 %v2108_v19, %v2109_v37  ;;  %v2085_v42 = vrot.slane %v2084_v20, 1  ;;  %v2060_v62 = vmax.f32 %v2058_v59, %v2059_v61  ;;  %v3201_v40 = vpack.c.bf16 (!%p2947_p1), %v2174_v46, %v2173_v21  ;;  %v2192_v19 = vld [vmem:[#allocation9 + $0x118] sm:$0xff] (!%p2947_p1)  ;;  %v2210_v37 = vld [vmem:[#allocation9 + $0x1a8] sm:$0xff] (!%p2947_p1)  ;;  %v2211_v61 = vld [vmem:[#allocation9 + $0x1b0] sm:$0xff] (!%p2947_p1) }
 0x1e2   : > { %v2123_v1 = vmax.f32 %v2121_v0, %v2122_v36  ;;  %v2034_v52 = vmax.f32 %v2032_v57, %v2033_v60  ;;  %v2098_v5 = vrot.slane %v2097_v31, 1  ;;  %v2073_v29 = vmax.f32 %v2071_v30, %v2072_v49  ;;  %v2177_v0 = vld [vmem:[#allocation9 + $0xa0] sm:$0xff] (!%p2947_p1)  ;;  %v2162_v57 = vld [vmem:[#allocation9 + $0x28] sm:$0xff] (!%p2947_p1)  ;;  %v2180_v60 = vld [vmem:[#allocation9 + $0xb8] sm:$0xff] (!%p2947_p1) }
 0x1e3   : > { %v2111_v35 = vrot.slane %v2110_v14, 1  ;;  %v2086_v12 = vmax.f32 %v2084_v20, %v2085_v42  ;;  %v3203_v2 = vpack.c.bf16 (!%p2947_p1), %v2158_v56, %v2157_v58  ;;  %v3233_v34 = vpack.c.bf16 (!%p2947_p1), %v2206_v63, %v2205_v16  ;;  %3202 = vmatprep.subr.bf16.mxu0 (!%p2947_p1), %v3201_v40  ;;  %v2193_v36 = vld [vmem:[#allocation9 + $0x120] sm:$0xff] (!%p2947_p1)  ;;  %v2179_v20 = vld [vmem:[#allocation9 + $0xb0] sm:$0xff] (!%p2947_p1)  ;;  %v2212_v49 = vld [vmem:[#allocation9 + $0x1b8] sm:$0xff] (!%p2947_p1) }
 0x1e4   : > { %v2124_v3 = vrot.slane %v2123_v1, 1  ;;  %v2099_v45 = vmax.f32 %v2097_v31, %v2098_v5  ;;  %v2134_v55 = vsel %vm1934_vm0, %v2047_v27, %v2034_v52  ;;  %v3235_v9 = vpack.c.bf16 (!%p2947_p1), %v2190_v7, %v2189_v32  ;;  %v2163_v31 = vld [vmem:[#allocation9 + $0x30] sm:$0xff] (!%p2947_p1)  ;;  %v2196_v5 = vld [vmem:[#allocation9 + $0x138] sm:$0xff] (!%p2947_p1)  ;;  %v2182_v27 = vld [vmem:[#allocation9 + $0xc8] sm:$0xff] (!%p2947_p1) }
 0x1e5   : > { %v2112_v18 = vmax.f32 %v2110_v14, %v2111_v35  ;;  %v2135_v24 = vsel %vm1936_vm1, %v2060_v62, %v2134_v55  ;;  %3204 = vmatpush3.bf16.msra.mxu0 (!%p2947_p1), %v3203_v2  ;;  %3234 = vmatprep.subr.bf16.mxu1 (!%p2947_p1), %v3233_v34  ;;  %v3205_v28 = vpack.c.bf16 (!%p2947_p1), %v2176_v39, %v2175_v6  ;;  %v2195_v52 = vld [vmem:[#allocation9 + $0x130] sm:$0xff] (!%p2947_p1)  ;;  %v2181_v35 = vld [vmem:[#allocation9 + $0xc0] sm:$0xff] (!%p2947_p1)  ;;  %v2168_v58 = vld [vmem:[#allocation9 + $0x58] sm:$0xff] (!%p2947_p1) }
 0x1e6   : > { %v2125_v48 = vmax.f32 %v2123_v1, %v2124_v3  ;;  %v2136_v25 = vsel %vm1938_vm2, %v2073_v29, %v2135_v24  ;;  %v3207_v53 = vpack.c.bf16 (!%p2947_p1), %v2160_v38, %v2159_v11  ;;  %3236 = vmatpush3.bf16.msra.mxu1 (!%p2947_p1), %v3235_v9  ;;  %v3237_v50 = vpack.c.bf16 (!%p2947_p1), %v2208_v13, %v2207_v26  ;;  %v2213_v29 = vld [vmem:[#allocation9 + $0x1c0] sm:$0xff] (!%p2947_p1)  ;;  %v2214_v3 = vld [vmem:[#allocation9 + $0x1c8] sm:$0xff] (!%p2947_p1)  ;;  %v2167_v46 = vld [vmem:[#allocation9 + $0x50] sm:$0xff] (!%p2947_p1) }
 0x1e7   : > { %v2137_v47 = vsel %vm1940_vm3, %v2086_v12, %v2136_v25  ;;  %2147 = sbr.rel (%p2947_p1) target bundleno = 1148 (0x47c), region = 76  ;;  %3206 = vmatprep.subr.bf16.mxu0 (!%p2947_p1), %v3205_v28  ;;  %v3239_v22 = vpack.c.bf16 (!%p2947_p1), %v2192_v19, %v2191_v4  ;;  %v3209_v43 = vpack.c.bf16 (!%p2947_p1), %v2178_v17, %v2177_v0  ;;  %v3211_v59 = vpack.c.bf16 (!%p2947_p1), %v2162_v57, %v2161_v54  ;;  %v2165_v55 = vld [vmem:[#allocation9 + $0x40] sm:$0xff] (!%p2947_p1)  ;;  %v2198_v25 = vld [vmem:[#allocation9 + $0x148] sm:$0xff] (!%p2947_p1)  ;;  %v2199_v40 = vld [vmem:[#allocation9 + $0x150] sm:$0xff] (!%p2947_p1) }
 0x1e8   : > { %v2138_v41 = vsel %vm1942_vm4, %v2099_v45, %v2137_v47  ;;  %3238 = vmatprep.subr.bf16.mxu1 (!%p2947_p1), %v3237_v50  ;;  %v3241_v30 = vpack.c.bf16 (!%p2947_p1), %v2210_v37, %v2209_v10  ;;  %v3243_v14 = vpack.c.bf16 (!%p2947_p1), %v2194_v33, %v2193_v36  ;;  %v3213_v1 = vpack.c.bf16 (!%p2947_p1), %v2180_v60, %v2179_v20  ;;  %v2197_v24 = vld [vmem:[#allocation9 + $0x140] sm:$0xff] (!%p2947_p1)  ;;  %v2183_v47 = vld [vmem:[#allocation9 + $0xd0] sm:$0xff] (!%p2947_p1)  ;;  %v2200_v16 = vld [vmem:[#allocation9 + $0x158] sm:$0xff] (!%p2947_p1) }
 0x1e9   : > { %v2139_v23 = vsel %vm1944_vm5, %v2112_v18, %v2138_v41  ;;  %3208 = vmatpush3.bf16.msra.mxu0 (!%p2947_p1), %v3207_v53  ;;  %v3245_v42 = vpack.c.bf16 (!%p2947_p1), %v2212_v49, %v2211_v61  ;;  %v3215_v62 = vpack.c.bf16 (!%p2947_p1), %v2164_v44, %v2163_v31  ;;  %v3247_v12 = vpack.c.bf16 (!%p2947_p1), %v2196_v5, %v2195_v52  ;;  %v2166_v18 = vld [vmem:[#allocation9 + $0x48] sm:$0xff] (!%p2947_p1)  ;;  %v2215_v41 = vld [vmem:[#allocation9 + $0x1d0] sm:$0xff] (!%p2947_p1)  ;;  %v2185_v63 = vld [vmem:[#allocation9 + $0xe0] sm:$0xff] (!%p2947_p1) }
 0x1ea   : > { %v2140_v51 = vsel %vm1946_vm6, %v2125_v48, %v2139_v23  ;;  %3240 = vmatpush3.bf16.msra.mxu1 (!%p2947_p1), %v3239_v22  ;;  %3210 = vmatprep.subr.bf16.mxu0 (!%p2947_p1), %v3209_v43  ;;  %v3217_v45 = vpack.c.bf16 (!%p2947_p1), %v2182_v27, %v2181_v35  ;;  %v3249_v48 = vpack.c.bf16 (!%p2947_p1), %v2214_v3, %v2213_v29  ;;  %v2216_v23 = vld [vmem:[#allocation9 + $0x1d8] sm:$0xff] (!%p2947_p1)  ;;  %v2186_v2 = vld [vmem:[#allocation9 + $0xe8] sm:$0xff] (!%p2947_p1)  ;;  %v2217_v34 = vld [vmem:[#allocation9 + $0x1e0] sm:$0xff] (!%p2947_p1) }
 0x1eb   : > { %v2142_v15 = vmax.f32 %v2021_v8, %v2140_v51  ;;  %3242 = vmatprep.subr.bf16.mxu1 (!%p2947_p1), %v3241_v30  ;;  %v2184_v8 = vld [vmem:[#allocation9 + $0xd8] sm:$0xff] (!%p2947_p1)  ;;  %v3219_v51 = vpack.c.bf16 (!%p2947_p1), %v2166_v18, %v2165_v55  ;;  %v3253_v56 = vpack.c.bf16 (!%p2947_p1), %v2216_v23, %v2215_v41  ;;  %v2218_v32 = vld [vmem:[#allocation9 + $0x1e8] sm:$0xff] (!%p2947_p1)  ;;  %v3223_v7 = vpack.c.bf16 (!%p2947_p1), %v2168_v58, %v2167_v46  ;;  %v2169_v6 = vld [vmem:[#allocation9 + $0x60] sm:$0xff] (!%p2947_p1) }
 0x1ec   : > { %v3221_v21 = vpack.c.bf16 (!%p2947_p1), %v2184_v8, %v2183_v47  ;;  %v2170_v9 = vld [vmem:[#allocation9 + $0x68] sm:$0xff] (!%p2947_p1)  ;;  %v3255_v39 = vpack.c.bf16 (!%p2947_p1), %v2200_v16, %v2199_v40  ;;  %v3225_v11 = vpack.c.bf16 (!%p2947_p1), %v2186_v2, %v2185_v63  ;;  %v2201_v38 = vld [vmem:[#allocation9 + $0x160] sm:$0xff] (!%p2947_p1)  ;;  %v3257_v26 = vpack.c.bf16 (!%p2947_p1), %v2218_v32, %v2217_v34  ;;  %v2187_v13 = vld [vmem:[#allocation9 + $0xf0] sm:$0xff] (!%p2947_p1) }
 0x1ed   : > { %2143 = vst [vmem:[#allocation3] sm:$0xff] %v2142_v15  ;;  %3212 = vmatpush3.bf16.msra.mxu0 (!%p2947_p1), %v3211_v59  ;;  %v3251_v15 = vpack.c.bf16 (!%p2947_p1), %v2198_v25, %v2197_v24  ;;  %v2202_v28 = vld [vmem:[#allocation9 + $0x168] sm:$0xff] (!%p2947_p1)  ;;  %v2149_v53 = vld [vmem:[#allocation2 + $0x8] sm:$0xff] (!%p2947_p1)  ;;  %v2188_v4 = vld [vmem:[#allocation9 + $0xf8] sm:$0xff] (!%p2947_p1)  ;;  %v3227_v17 = vpack.c.bf16 (!%p2947_p1), %v2170_v9, %v2169_v6 }
 0x1ee   : > { %3244 = vmatpush3.bf16.msra.mxu1 %v3243_v14  ;;  %3214 = vmatprep.subr.bf16.mxu0 %v3213_v1  ;;  %v2151_v50 = vld [vmem:[#allocation2 + $0x18] sm:$0xff]  ;;  %v2220_v0 = vld [vmem:[#allocation9 + $0x1f8] sm:$0xff]  ;;  %v3259_v22 = vpack.c.bf16 %v2202_v28, %v2201_v38  ;;  %v3229_v43 = vpack.c.bf16 %v2188_v4, %v2187_v13  ;;  %v2237_v33 = vld [vmem:[#allocation9 + $0x280] sm:$0xff] }
 0x1ef   : > { %3246 = vmatprep.subr.bf16.mxu1 %v3245_v42  ;;  %2356 = vmatprep.mubr.f32.mxu0 %v2149_v53  ;;  %v2219_v19 = vld [vmem:[#allocation9 + $0x1f0] sm:$0xff]  ;;  %v2172_v57 = vld [vmem:[#allocation9 + $0x78] sm:$0xff]  ;;  %v2238_v59 = vld [vmem:[#allocation9 + $0x288] sm:$0xff] }
 0x1f0   : > { %2426 = vmatprep.mubr.f32.mxu1 %v2151_v50  ;;  %v2171_v54 = vld [vmem:[#allocation9 + $0x70] sm:$0xff]  ;;  %v3261_v37 = vpack.c.bf16 %v2220_v0, %v2219_v19  ;;  %v2204_v36 = vld [vmem:[#allocation9 + $0x178] sm:$0xff]  ;;  %v2269_v30 = vld [vmem:[#allocation9 + $0x380] sm:$0xff]  ;;  %v3265_v14 = vpack.c.bf16 %v2238_v59, %v2237_v33 }
 0x1f1   : > { %3216 = vmatpush3.bf16.msra.mxu0 %v3215_v62  ;;  %v2203_v10 = vld [vmem:[#allocation9 + $0x170] sm:$0xff]  ;;  %v2270_v20 = vld [vmem:[#allocation9 + $0x388] sm:$0xff]  ;;  %v3231_v60 = vpack.c.bf16 %v2172_v57, %v2171_v54  ;;  %v2221_v1 = vld [vmem:[#allocation9 + $0x200] sm:$0xff] }
 0x1f2   : > { %3248 = vmatpush3.bf16.msra.mxu1 %v3247_v12  ;;  %3218 = vmatprep.subr.bf16.mxu0 %v3217_v45  ;;  %v3263_v31 = vpack.c.bf16 %v2204_v36, %v2203_v10  ;;  %v2222_v44 = vld [vmem:[#allocation9 + $0x208] sm:$0xff]  ;;  %v2253_v61 = vld [vmem:[#allocation9 + $0x300] sm:$0xff]  ;;  %v3297_v49 = vpack.c.bf16 %v2270_v20, %v2269_v30  ;;  %v2239_v52 = vld [vmem:[#allocation9 + $0x290] sm:$0xff] }
 0x1f3   : > { %3250 = vmatprep.subr.bf16.mxu1 %v3249_v48  ;;  %v2254_v42 = vld [vmem:[#allocation9 + $0x308] sm:$0xff]  ;;  %v2240_v5 = vld [vmem:[#allocation9 + $0x298] sm:$0xff]  ;;  %v2271_v35 = vld [vmem:[#allocation9 + $0x390] sm:$0xff]  ;;  %v3267_v29 = vpack.c.bf16 %v2222_v44, %v2221_v1 }
 0x1f4   : > { %v2272_v27 = vld [vmem:[#allocation9 + $0x398] sm:$0xff]  ;;  %v2150_v3 = vld [vmem:[#allocation2 + $0x10] sm:$0xff]  ;;  %v3299_v12 = vpack.c.bf16 %v2254_v42, %v2253_v61  ;;  %v3269_v45 = vpack.c.bf16 %v2240_v5, %v2239_v52  ;;  %v2223_v55 = vld [vmem:[#allocation9 + $0x210] sm:$0xff] }
 0x1f5   : > { %3220 = vmatpush3.bf16.msra.mxu0 %v3219_v51  ;;  %v2148_v62 = vld [vmem:[#allocation2] sm:$0xff]  ;;  %v2255_v24 = vld [vmem:[#allocation9 + $0x310] sm:$0xff]  ;;  %v3301_v48 = vpack.c.bf16 %v2272_v27, %v2271_v35  ;;  %v2241_v47 = vld [vmem:[#allocation9 + $0x2a0] sm:$0xff] }
 0x1f6   : > { %3252 = vmatpush3.bf16.msra.mxu1 %v3251_v15  ;;  %3222 = vmatprep.subr.bf16.mxu0 %v3221_v21  ;;  %v2224_v18 = vld [vmem:[#allocation9 + $0x218] sm:$0xff]  ;;  %v2242_v8 = vld [vmem:[#allocation9 + $0x2a8] sm:$0xff]  ;;  %v2273_v41 = vld [vmem:[#allocation9 + $0x3a0] sm:$0xff] }
 0x1f7   : > { %3254 = vmatprep.subr.bf16.mxu1 %v3253_v56  ;;  %v2256_v25 = vld [vmem:[#allocation9 + $0x318] sm:$0xff]  ;;  %v2274_v23 = vld [vmem:[#allocation9 + $0x3a8] sm:$0xff]  ;;  %v3271_v51 = vpack.c.bf16 %v2224_v18, %v2223_v55  ;;  %v3273_v21 = vpack.c.bf16 %v2242_v8, %v2241_v47  ;;  %v2225_v46 = vld [vmem:[#allocation9 + $0x220] sm:$0xff] }
 0x1f8   : > { %v3303_v15 = vpack.c.bf16 %v2256_v25, %v2255_v24  ;;  %v2226_v58 = vld [vmem:[#allocation9 + $0x228] sm:$0xff]  ;;  %v2257_v40 = vld [vmem:[#allocation9 + $0x320] sm:$0xff]  ;;  %v3305_v56 = vpack.c.bf16 %v2274_v23, %v2273_v41  ;;  %v2243_v63 = vld [vmem:[#allocation9 + $0x2b0] sm:$0xff] }
 0x1f9   : > { %3224 = vmatpush3.bf16.msra.mxu0 %v3223_v7  ;;  %v2258_v16 = vld [vmem:[#allocation9 + $0x328] sm:$0xff]  ;;  %v2244_v2 = vld [vmem:[#allocation9 + $0x2b8] sm:$0xff]  ;;  %v2275_v34 = vld [vmem:[#allocation9 + $0x3b0] sm:$0xff]  ;;  %v3275_v7 = vpack.c.bf16 %v2226_v58, %v2225_v46 }
 0x1fa   : > { %3256 = vmatpush3.bf16.msra.mxu1 %v3255_v39  ;;  %3226 = vmatprep.subr.bf16.mxu0 %v3225_v11  ;;  %v2276_v32 = vld [vmem:[#allocation9 + $0x3b8] sm:$0xff]  ;;  %v3307_v6 = vpack.c.bf16 %v2258_v16, %v2257_v40  ;;  %v3277_v9 = vpack.c.bf16 %v2244_v2, %v2243_v63  ;;  %v2227_v39 = vld [vmem:[#allocation9 + $0x230] sm:$0xff]  ;;  %v2246_v13 = vld [vmem:[#allocation9 + $0x2c8] sm:$0xff] }
 0x1fb   : > { %3258 = vmatprep.subr.bf16.mxu1 %v3257_v26  ;;  %v2228_v11 = vld [vmem:[#allocation9 + $0x238] sm:$0xff]  ;;  %v2259_v38 = vld [vmem:[#allocation9 + $0x330] sm:$0xff]  ;;  %v3309_v28 = vpack.c.bf16 %v2276_v32, %v2275_v34  ;;  %v2245_v26 = vld [vmem:[#allocation9 + $0x2c0] sm:$0xff] }
 0x1fc   : > { %v2260_v53 = vld [vmem:[#allocation9 + $0x338] sm:$0xff]  ;;  %v2277_v4 = vld [vmem:[#allocation9 + $0x3c0] sm:$0xff]  ;;  %v2278_v50 = vld [vmem:[#allocation9 + $0x3c8] sm:$0xff]  ;;  %v3279_v19 = vpack.c.bf16 %v2228_v11, %v2227_v39 }
 0x1fd   : > { %3228 = vmatpush3.bf16.msra.mxu0 %v3227_v17  ;;  %v2153_v0 = vld [vmem:[#allocation2 + $0x28] sm:$0xff]  ;;  %v2155_v17 = vld [vmem:[#allocation2 + $0x38] sm:$0xff]  ;;  %v2230_v57 = vld [vmem:[#allocation9 + $0x248] sm:$0xff] }
 0x1fe   : > { %3260 = vmatpush3.bf16.msra.mxu1 %v3259_v22  ;;  %3230 = vmatprep.subr.bf16.mxu0 %v3229_v43  ;;  %v3311_v22 = vpack.c.bf16 %v2260_v53, %v2259_v38  ;;  %v3281_v43 = vpack.c.bf16 %v2246_v13, %v2245_v26  ;;  %v2229_v54 = vld [vmem:[#allocation9 + $0x240] sm:$0xff]  ;;  %v2262_v36 = vld [vmem:[#allocation9 + $0x348] sm:$0xff]  ;;  %v2247_v33 = vld [vmem:[#allocation9 + $0x2d0] sm:$0xff] }
 0x1ff   : > { %3262 = vmatprep.subr.bf16.mxu1 %v3261_v37  ;;  %v2261_v10 = vld [vmem:[#allocation9 + $0x340] sm:$0xff]  ;;  %v3313_v37 = vpack.c.bf16 %v2278_v50, %v2277_v4  ;;  %v2248_v59 = vld [vmem:[#allocation9 + $0x2d8] sm:$0xff]  ;;  %v2279_v30 = vld [vmem:[#allocation9 + $0x3d0] sm:$0xff] }
 0x200   : > { %v2280_v20 = vld [vmem:[#allocation9 + $0x3d8] sm:$0xff]  ;;  %v2231_v1 = vld [vmem:[#allocation9 + $0x250] sm:$0xff]  ;;  %v2249_v52 = vld [vmem:[#allocation9 + $0x2e0] sm:$0xff] }
 0x201   : > { %3232 = vmatpush3.bf16.msra.mxu0 %v3231_v60  ;;  %v3283_v60 = vpack.c.bf16 %v2230_v57, %v2229_v54  ;;  %v2232_v44 = vld [vmem:[#allocation9 + $0x258] sm:$0xff]  ;;  %v2263_v61 = vld [vmem:[#allocation9 + $0x350] sm:$0xff]  ;;  %v2250_v5 = vld [vmem:[#allocation9 + $0x2e8] sm:$0xff] }
 0x202   : > { %3264 = vmatpush3.bf16.msra.mxu1 %v3263_v31  ;;  %3266 = vmatprep.subr.bf16.mxu0 %v3265_v14  ;;  %v3315_v31 = vpack.c.bf16 %v2262_v36, %v2261_v10  ;;  %v3285_v14 = vpack.c.bf16 %v2248_v59, %v2247_v33  ;;  %v2264_v42 = vld [vmem:[#allocation9 + $0x358] sm:$0xff]  ;;  %v2281_v35 = vld [vmem:[#allocation9 + $0x3e0] sm:$0xff]  ;;  %v2282_v27 = vld [vmem:[#allocation9 + $0x3e8] sm:$0xff]  ;;  %v3822_v59 = vmov 0.0  }
 0x203   : > { %3298 = vmatprep.subr.bf16.mxu1 %v3297_v49  ;;  %v3317_v49 = vpack.c.bf16 %v2280_v20, %v2279_v30  ;;  %v2265_v55 = vld [vmem:[#allocation9 + $0x360] sm:$0xff]  ;;  %v3321_v18 = vpack.c.bf16 %v2282_v27, %v2281_v35  ;;  %v2266_v24 = vld [vmem:[#allocation9 + $0x368] sm:$0xff]  ;;  %v2252_v25 = vld [vmem:[#allocation9 + $0x2f8] sm:$0xff] }
 0x204   : > { %2357 = vmatmul.mubr.f32.vlgmr.msra.gmra.mrb[0].mxu0 %v2148_v62  ;;  %v3287_v62 = vpack.c.bf16 %v2232_v44, %v2231_v1  ;;  %v2283_v47 = vld [vmem:[#allocation9 + $0x3f0] sm:$0xff]  ;;  %v2284_v8 = vld [vmem:[#allocation9 + $0x3f8] sm:$0xff]  ;;  %v3323_v23 = vpack.c.bf16 %v2266_v24, %v2265_v55  ;;  %v2154_v2 = vld [vmem:[#allocation2 + $0x30] sm:$0xff] }
 0x205   : > { %3268 = vmatpush3.bf16.msra.mxu0 %v3267_v29  ;;  %2427 = vmatmul.mubr.f32.vlgmr.msra.gmra.mrb[0].mxu1 %v2150_v3  ;;  %v3319_v29 = vpack.c.bf16 %v2264_v42, %v2263_v61  ;;  %v3289_v3 = vpack.c.bf16 %v2250_v5, %v2249_v52  ;;  %v3325_v46 = vpack.c.bf16 %v2284_v8, %v2283_v47  ;;  %v2267_v58 = vld [vmem:[#allocation9 + $0x370] sm:$0xff]  ;;  %v2268_v40 = vld [vmem:[#allocation9 + $0x378] sm:$0xff]  ;;  %v2573_v34 = vld [vmem:[#allocation12] sm:$0xff] }
 0x206   : > { %3300 = vmatpush3.bf16.msra.mxu1 %v3299_v12  ;;  %3270 = vmatprep.subr.bf16.mxu0 %v3269_v45  ;;  %v2233_v12 = vld [vmem:[#allocation9 + $0x260] sm:$0xff]  ;;  %v2234_v45 = vld [vmem:[#allocation9 + $0x268] sm:$0xff]  ;;  %v3327_v16 = vpack.c.bf16 %v2268_v40, %v2267_v58  ;;  %v2152_v63 = vld [vmem:[#allocation2 + $0x20] sm:$0xff] }
 0x207   : > { %3302 = vmatprep.subr.bf16.mxu1 %v3301_v48  ;;  %2496 = vmatprep.mubr.f32.mxu0 %v2153_v0  ;;  %v2251_v48 = vld [vmem:[#allocation9 + $0x2f0] sm:$0xff]  ;;  %v3291_v41 = vpack.c.bf16 %v2234_v45, %v2233_v12  ;;  %v2576_v39 = vld [vmem:[#allocation12 + $0x18] sm:$0xff]  ;;  %v2577_v38 = vld [vmem:[#allocation12 + $0x20] sm:$0xff] }
 0x208   : > { %2566 = vmatprep.mubr.f32.mxu1 %v2155_v17  ;;  %v2574_v32 = vld [vmem:[#allocation12 + $0x8] sm:$0xff]  ;;  %v2579_v26 = vld [vmem:[#allocation12 + $0x30] sm:$0xff]  ;;  %v2580_v13 = vld [vmem:[#allocation12 + $0x38] sm:$0xff] }
 0x209   : > { %3272 = vmatpush3.bf16.msra.mxu0 %v3271_v51  ;;  %v3293_v51 = vpack.c.bf16 %v2252_v25, %v2251_v48  ;;  %v3339_v4 = vpack.c.bf16 %v2580_v13, %v2579_v26  ;;  %v2581_v50 = vld [vmem:[#allocation12 + $0x40] sm:$0xff]  ;;  %v2583_v17 = vld [vmem:[#allocation12 + $0x50] sm:$0xff]  ;;  %v2586_v57 = vld [vmem:[#allocation12 + $0x68] sm:$0xff]  ;;  %v2738_v48 = vlaneseq }
 0x20a   : > { %3304 = vmatpush3.bf16.msra.mxu1 %v3303_v15  ;;  %3274 = vmatprep.subr.bf16.mxu0 %v3273_v21  ;;  %v2235_v15 = vld [vmem:[#allocation9 + $0x270] sm:$0xff]  ;;  %v2236_v21 = vld [vmem:[#allocation9 + $0x278] sm:$0xff]  ;;  %v2585_v54 = vld [vmem:[#allocation12 + $0x60] sm:$0xff] }
 0x20b   : > { %3306 = vmatprep.subr.bf16.mxu1 %v3305_v56  ;;  %v3295_v56 = vpack.c.bf16 %v2236_v21, %v2235_v15  ;;  %v3348_v10 = vpack.c.bf16 %v2586_v57, %v2585_v54  ;;  %v2588_v36 = vld [vmem:[#allocation12 + $0x78] sm:$0xff]  ;;  %v2949_v24 = vld [vmem:[#allocation13] ss:$0 sm:$0xff]  ;;  %v2739_v8 = vand.u32 127, %v2738_v48 }
 0x20c   : > { %v2156_v30 = vld [vmem:[#allocation3] sm:$0xff] }
 0x20d   : > { %3276 = vmatpush3.bf16.msra.mxu0 %v3275_v7  ;;  %v2575_v7 = vld [vmem:[#allocation12 + $0x10] sm:$0xff]  ;;  %vm2740_vm8 = vcmp.lt.s32.totalorder %v2739_v8, 96 }
 0x20e   : > { %3308 = vmatpush3.bf16.msra.mxu1 %v3307_v6  ;;  %3278 = vmatprep.subr.bf16.mxu0 %v3277_v9  ;;  %v3820_v6 = vmov 0.0|0.0   ;;  %v3330_v9 = vpack.c.bf16 %v2574_v32, %v2573_v34  ;;  %v3333_v11 = vpack.c.bf16 %v2576_v39, %v2575_v7 }
 0x20f   : > { %3310 = vmatprep.subr.bf16.mxu1 %v3309_v28  ;;  %v2578_v28 = vld [vmem:[#allocation12 + $0x28] sm:$0xff] }
 0x210   : > { %v3336_v53 = vpack.c.bf16 %v2578_v28, %v2577_v38 }
 0x211   : > { %3280 = vmatpush3.bf16.msra.mxu0 %v3279_v19  ;;  %v2582_v19 = vld [vmem:[#allocation12 + $0x48] sm:$0xff] }
 0x212   : > { %3312 = vmatpush3.bf16.msra.mxu1 %v3311_v22  ;;  %3282 = vmatprep.subr.bf16.mxu0 %v3281_v43  ;;  %v3342_v0 = vpack.c.bf16 %v2582_v19, %v2581_v50  ;;  %v2584_v22 = vld [vmem:[#allocation12 + $0x58] sm:$0xff] }
 0x213   : > { %3314 = vmatprep.subr.bf16.mxu1 %v3313_v37  ;;  %v3345_v43 = vpack.c.bf16 %v2584_v22, %v2583_v17  ;;  %v2587_v37 = vld [vmem:[#allocation12 + $0x70] sm:$0xff] }
 0x214   : > { %v3351_v33 = vpack.c.bf16 %v2588_v36, %v2587_v37 }
 0x215   : > { %3284 = vmatpush3.bf16.msra.mxu0 %v3283_v60  ;;  %v2948_v60 = vld [vmem:[#allocation10] ss:$0 sm:$0xff] }
 0x216   : > { %3316 = vmatpush3.bf16.msra.mxu1 %v3315_v31  ;;  %3286 = vmatprep.subr.bf16.mxu0 %v3285_v14 }
 0x217   : > { %3318 = vmatprep.subr.bf16.mxu1 %v3317_v49 }
 0x219   : > { %3288 = vmatpush3.bf16.msra.mxu0 %v3287_v62 }
 0x21a   : > { %3320 = vmatpush3.bf16.msra.mxu1 %v3319_v29  ;;  %3290 = vmatprep.subr.bf16.mxu0 %v3289_v3 }
 0x21b   : > { %3322 = vmatprep.subr.bf16.mxu1 %v3321_v18 }
 0x21d   : > { %3292 = vmatpush3.bf16.msra.mxu0 %v3291_v41 }
 0x21e   : > { %3324 = vmatpush3.bf16.msra.mxu1 %v3323_v23  ;;  %3294 = vmatprep.subr.bf16.mxu0 %v3293_v51 }
 0x21f   : > { %3326 = vmatprep.subr.bf16.mxu1 %v3325_v46 }
 0x221   : > { %3296 = vmatpush3.bf16.msra.mxu0 %v3295_v56 }
 0x222   : > { %3328 = vmatpush3.bf16.msra.mxu1 %v3327_v16  ;;  %3329 = vmatprep.subr.bf16.mxu0 %v3820_v6 }
 0x223   : > { %3353 = vmatprep.subr.bf16.mxu1 %v3820_v6 }
 0x224   : > { %2497 = vmatmul.mubr.f32.vlgmr.msra.gmra.mrb[2].mxu0 %v2152_v63 }
 0x225   : > { %2567 = vmatmul.mubr.f32.vlgmr.msra.gmra.mrb[2].mxu1 %v2154_v2  ;;  %3331 = vmatpush3.bf16.msra.mxu0 %v3330_v9 }
 0x226   : > { %3355 = vmatpush3.bf16.msra.mxu1 %v3330_v9  ;;  %3332 = vmatprep.subr.bf16.mxu0 %v3820_v6 }
 0x227   : > { %3356 = vmatprep.subr.bf16.mxu1 %v3820_v6  ;;  %3198 = vmatprep.mubr.msk.f32.mxu1 %vm3821_vm7, %v3822_v59 }
 0x228   : > { %3163 = vmatprep.mubr.msk.f32.mxu0 %vm3821_vm7, %v3822_v59 }
 0x229   : > { %3334 = vmatpush3.bf16.msra.mxu0 %v3333_v11 }
 0x22a   : > { %3358 = vmatpush3.bf16.msra.mxu1 %v3333_v11  ;;  %3335 = vmatprep.subr.bf16.mxu0 %v3820_v6 }
 0x22b   : > { %3359 = vmatprep.subr.bf16.mxu1 %v3820_v6 }
 0x22d   : > { %3337 = vmatpush3.bf16.msra.mxu0 %v3336_v53 }
 0x22e   : > { %3361 = vmatpush3.bf16.msra.mxu1 %v3336_v53  ;;  %3338 = vmatprep.subr.bf16.mxu0 %v3820_v6 }
 0x22f   : > { %3362 = vmatprep.subr.bf16.mxu1 %v3820_v6 }
 0x231   : > { %3340 = vmatpush3.bf16.msra.mxu0 %v3339_v4 }
 0x232   : > { %3364 = vmatpush3.bf16.msra.mxu1 %v3339_v4  ;;  %3341 = vmatprep.subr.bf16.mxu0 %v3820_v6 }
 0x233   : > { %3365 = vmatprep.subr.bf16.mxu1 %v3820_v6 }
 0x235   : > { %3343 = vmatpush3.bf16.msra.mxu0 %v3342_v0 }
 0x236   : > { %3367 = vmatpush3.bf16.msra.mxu1 %v3342_v0  ;;  %3344 = vmatprep.subr.bf16.mxu0 %v3820_v6 }
 0x237   : > { %3368 = vmatprep.subr.bf16.mxu1 %v3820_v6 }
 0x239   : > { %3346 = vmatpush3.bf16.msra.mxu0 %v3345_v43 }
 0x23a   : > { %3370 = vmatpush3.bf16.msra.mxu1 %v3345_v43  ;;  %3347 = vmatprep.subr.bf16.mxu0 %v3820_v6 }
 0x23b   : > { %3371 = vmatprep.subr.bf16.mxu1 %v3820_v6 }
 0x23d   : > { %3349 = vmatpush3.bf16.msra.mxu0 %v3348_v10 }
 0x23e   : > { %3373 = vmatpush3.bf16.msra.mxu1 %v3348_v10  ;;  %3350 = vmatprep.subr.bf16.mxu0 %v3820_v6 }
 0x23f   : > { %3374 = vmatprep.subr.bf16.mxu1 %v3820_v6 }
 0x241   : > { %3352 = vmatpush3.bf16.msra.mxu0 %v3351_v33 }
 0x242   : > { %3376 = vmatpush3.bf16.msra.mxu1 %v3351_v33 }
 0x245   : > { %3199 = vmatmul.mubr.f32.vlgmr.msra.gmra.mrb[4].mxu1 %v2156_v30 }
 0x2d7   : > { %v2989_v20 = vpop.f32.mrb[0].mxu0 }
 0x2d8   : > { %v2990_v31 = vpop.f32.mrb[1].mxu0  ;;  %v3024_v14 = vpop.f32.mrb[0].mxu1 }
 0x2d9   : > { %v2991_v1 = vadd.f32 %v2990_v31, %v2989_v20  ;;  %v3025_v44 = vpop.f32.mrb[1].mxu1 }
 0x2da   : > { %v3026_v61 = vadd.f32 %v3025_v44, %v3024_v14 }
 0x2db   : > { %v2359_v49 = vadd.f32 %v2991_v1, %v2948_v60 }
 0x2dd   : > { %v2429_v42 = vadd.f32 %v3026_v61, %v2359_v49 }
 0x2f7   : > { %v3059_v52 = vpop.f32.mrb[2].mxu0 }
 0x2f8   : > { %v3060_v5 = vpop.f32.mrb[3].mxu0  ;;  %v3094_v35 = vpop.f32.mrb[2].mxu1 }
 0x2f9   : > { %v3061_v27 = vadd.f32 %v3060_v5, %v3059_v52  ;;  %v3095_v62 = vpop.f32.mrb[3].mxu1 }
 0x2fa   : > { %v3096_v29 = vadd.f32 %v3095_v62, %v3094_v35 }
 0x2fb   : > { %v2499_v3 = vadd.f32 %v3061_v27, %v2429_v42 }
 0x2fd   : > { %v2569_v12 = vadd.f32 %v3096_v29, %v2499_v3 }
 0x2ff   : > { %v2572_v45 = vmax.f32 %v2569_v12, 0.0 }
 0x301   : > { %3164 = vmatmul.mubr.f32.vlgmr.msra.gmra.mrb[4].mxu0 %v2572_v45 }
 0x318   : > { %v2732_v55 = vpop.f32.mrb[4].mxu1 }
 0x319   : > { %v3200_v18 = vpop.f32.mrb[5].mxu1  ;;  %v2733_v25 = vadd.f32 %v2949_v24, %v2732_v55 }
 0x3d4   : > { %v2662_v47 = vpop.f32.mrb[4].mxu0 }
 0x3d5   : > { %v2663_v41 = vadd.f32 %v2949_v24, %v2662_v47  ;;  %v3165_v23 = vpop.f32.mrb[5].mxu0 }
 0x3d7   : > { %v2736_v51 = vsub.f32 %v2663_v41, %v2733_v25 }
 0x3d9   : > { %v2737_v15 = vadd.f32 1e-06, %v2736_v51 }
 0x3db   : > { %v2741_v21 = vsel %vm2740_vm8, %v2737_v15, 0.0 }
 0x3dc   : > { %v2742_v46 = vmul.f32 %v2741_v21, %v2741_v21 }
 0x3de   : > { %2743 = vadd.xlane.f32.xlu0 %v2742_v46 }
 0x46b   : > { %v2744_v58 = vpop.xlane.xlu0 %2743 }
 0x46c   : > { %3548 = vrsqrt.f32 %v2744_v58  ;;  %vm2747_vm9 = vcmp.eq.f32.partialorder %v2744_v58, inf  ;;  %v2750_v16 = vand.u32 2147483648, %v2744_v58  ;;  %vm2749_vm10 = vcmp.eq.f32.partialorder %v2744_v58, 0.0 }
 0x476   : > { %v3549_v40 = vpop.eup %3548 }
 0x477   : > { %v2746_v56 = vmul.f32 %v3549_v40, %v2744_v58 }
 0x479   : > { %v2748_v63 = vsel %vm2747_vm9, %v2744_v58, %v2746_v56 }
 0x47a   : > { %v2751_v2 = vsel %vm2749_vm10, %v2750_v16, %v2748_v63 }
 0x47b   : > { %2752 = vst [vmem:[%s436_s17] sm:$0xff] %v2751_v2 }
 0x47c PF: > { %s5368_s11 = sld [smem:[#allocation31_spill]]  ;;  %s5369_s23 = sld [smem:[#allocation34_spill]] }
 0x47d   : > { %s5370_s19 = sld [smem:[#allocation74_spill]]  ;;  %s2767_s21 = sshll.u32 %s436_s17, 4  ;;  %s2768_s21 = int_to_ptr.vmem [resolvable:$true] %s2767_s21 }
 0x47e   : > { %s2754_s27 = scalar_lea.sflag [#allocation6], %s434_s16  ;;  %s3662_s28 = scalar_lea.vmem %s2768_s21, 128 }
 0x47f   : > { %p3663_p2 = scmp.ne.s32.totalorder %s2768_s21, %s3662_s28  ;;  %s3823_s6 = smov [#allocation15]  }
 0x480   : > { %s3666_s14 = sshll.u32 %s3823_s6, 4  ;;  %s3667_s14 = int_to_ptr.vmem [resolvable:$false] %s3666_s14 }
 0x481   : > { %s3668_s18 = scalar_lea.vmem %s3667_s14, 256  ;;  %p3669_p11 = scmp.lt.s32.totalorder %s2768_s21, %s3667_s14 }
 0x482   : > { %s2951_s9 = sshll.u32 %s5368_s11, 7  ;;  %p5371_p8 = scmp.ne.s32.totalorder %s5369_s23, 0 }
 0x483   : > { %s5187_s24 = scalar_lea.hbm %s5370_s19, %s2951_s9  ;;  %p3670_p7 = scmp.lt.s32.totalorder %s3668_s18, %s3662_s28 }
 0x484   : > { %p3664_p6 = pnand %p3663_p2, %p5371_p8 }
 0x485   : > { %p3671_p12 = por %p3670_p7, %p3669_p11 }
 0x486   : > { %p3665_p9 = pneg %p3664_p6 }
 0x488   : > { %p3672_p3 = pnand %p3671_p12, %p3665_p9 }
 0x48a   : > { %3675 = shalt.err (!%p3672_p3)
}
 0x48b   : > { %s3676_s20 = scalar_lea.hbm %s5187_s24, 128  ;;  %s3680_s13 = scalar_lea.hbm %s5370_s19, 256 }
 0x48c   : > { %p3677_p4 = scmp.ne.s32.totalorder %s5187_s24, %s3676_s20  ;;  %p3681_p13 = scmp.lt.u32.totalorder %s5187_s24, %s5370_s19 }
 0x48d   : > { %p3682_p0 = scmp.lt.u32.totalorder %s3680_s13, %s3676_s20  ;;  %p3684_p2 = scmp.lt.u32.totalorder %s3676_s20, %s5187_s24 }
 0x48e   : > { %p3678_p5 = pnand %p3677_p4, %p5371_p8 }
 0x48f   : > { %p3683_p1 = por %p3682_p0, %p3681_p13 }
 0x490   : > { %p3679_p10 = pneg %p3678_p5 }
 0x491   : > { %p3685_p6 = por %p3684_p2, %p3683_p1 }
 0x493   : > { %p3686_p9 = pnand %p3685_p6, %p3679_p10 }
 0x495   : > { %3689 = shalt.err (!%p3686_p9)
}
 0x496   : > { %3411 = dma.vmem_to_hbm [thread:$0]  (%p5371_p8), %s2768_s21, 128, %s5187_s24, %s2754_s27  }
 0x497 PF: > { %s5372_s8 = sld [smem:[#allocation28_spill]]  ;;  %s5373_s11 = sld [smem:[#allocation37_spill]] }
 0x498   : > { %p3438_p11 = scmp.ge.s32.totalorder %s3800_s7, 2 }
 0x49d   : > { %s2779_s9 = sand.u32 1, %s5372_s8   ;;  %p5374_p7 = scmp.ne.s32.totalorder %s5373_s11, 0 }
 0x49e   : > { %s2780_s10 = scalar_lea.sflag [#allocation6], %s2779_s9 }
 0x49f   : > { %p3427_p12 = pnand %p3438_p11, %p5374_p7 }
 0x4a1   : > { %3755 = dma.done.wait (!%p3427_p12), %s2780_s10, 128  }
 0x4a2   : > { %3757 = vsyncadd (!%p3427_p12), %s2780_s10, 4294967168  ;;  %s27_s7 = sadd.s32 1, %s3800_s7   ;;  %s5375_s15 = sld [smem:[#allocation29_spill]] }
 0x4a3   : > { %p24_p3 = scmp.ge.s32.totalorder %s27_s7, 6   ;;  %s5376_s23 = sld [smem:[#allocation35_spill]] }
 0x4a4   : > { %s5377_s27 = sld [smem:[#allocation36_spill]]  ;;  %s5378_s6 = sld [smem:[#allocation32_spill]] }
 0x4a5   : > { %s5379_s14 = sld [smem:[#allocation33_spill]]  ;;  %s5380_s21 = smov %s3764_s22 }
 0x4a6   : > { %s5382_s24 = smov %s3776_s25  ;;  %s5383_s25 = smov %s3780_s26 }
 0x4a7   : > { %s5386_s28 = smov %s3796_s30  ;;  %26 = sbr.rel (!%p24_p3) target bundleno = 16 (0x10), region = 136 }
 0x4a8   : > { %s5381_s22 = smov %s5375_s15 }
 0x4aa   : > { %s5384_s26 = smov %s5377_s27  ;;  %s5385_s27 = smov %s3792_s29 }
 0x4ab   : > { %s5387_s29 = smov %s5378_s6  ;;  %s5388_s30 = smov %s5379_s14 }
 0x4ae   :  { %2785 = vsyncpa [#allocation5], 1 }
 0x4af   :  { %2787 = vsyncpa [#allocation5 + $0x1], 1 }
 0x4b0   :  { %2788 = vsyncpa [#allocation8], 1 }
 0x4b1   :  { %2790 = vsyncpa [#allocation8 + $0x1], 1 }
 0x4b2   :  { %2791 = vsyncpa [#allocation11], 1 }
 0x4b3   :  { %2792 = vsyncpa [#allocation14], 1 }
 0x4b4   :  { %2793 = vsyncpa [#allocation6], 1 }
 0x4b5   :  { %2795 = vsyncpa [#allocation6 + $0x1], 1 }

</bundles_post_ra>
